<compile_context>
chip_gen: v7x
topology: tpu7x:2x2x1
jax: 0.10.0
libtpu: 0.0.40
codegen_flags: <defaults>
</compile_context>

<pallas_src>
import math
from functools import partial

import numpy as np
import jax
import jax.numpy as jnp
from jax.experimental import pallas as pl
from jax.experimental.pallas import tpu as pltpu


# ----------------------------- in-kernel helpers ----------------------------

def _layer_norm(z, g, b, eps=1e-5):
    """PyTorch-style LayerNorm over the last dim (biased variance, eps=1e-5)."""
    mu = jnp.mean(z, axis=-1, keepdims=True)
    var = jnp.mean(jnp.square(z - mu), axis=-1, keepdims=True)
    return (z - mu) * jax.lax.rsqrt(var + eps) * g + b


def _attn_out(q, k, v, wo, bo, H, Dh, mask=None):
    """Multi-head attention core fused with the output projection.

    q (Lq, H*Dh) / k,v (Lk, H*Dh) are f32; wo (H*Dh, E) is bf16; bo (1, E) f32.
    Per head the (p @ v) result is immediately multiplied by the matching row
    block of Wo and accumulated into a lane-dense (Lq, E) register accumulator
    (mathematically identical to concat-heads @ Wo, no Dh-minor staging).
    """
    scale = 1.0 / math.sqrt(Dh)
    out = None
    for h in range(H):
        qh = q[:, h * Dh:(h + 1) * Dh]
        kh = k[:, h * Dh:(h + 1) * Dh]
        vh = v[:, h * Dh:(h + 1) * Dh]
        s = jnp.dot(qh, kh.T, preferred_element_type=jnp.float32) * scale
        if mask is not None:
            s = s + mask
        s = s - jnp.max(s, axis=-1, keepdims=True)
        p = jnp.exp(s)
        p = p / jnp.sum(p, axis=-1, keepdims=True)      # exact softmax
        ah = jnp.dot(p, vh, preferred_element_type=jnp.float32)          # (Lq, Dh)
        oh = jnp.dot(ah.astype(jnp.bfloat16), wo[h * Dh:(h + 1) * Dh, :],
                     preferred_element_type=jnp.float32)                 # (Lq, E)
        out = oh if out is None else out + oh
    return out + bo


def _self_attn(x, wqkv, bqkv, wo, bo, H, Dh, mask=None):
    """Self-attention with one packed (L,E)@(E,3E) QKV projection."""
    E = H * Dh
    qkv = jnp.dot(x.astype(jnp.bfloat16), wqkv,
                  preferred_element_type=jnp.float32) + bqkv
    return _attn_out(qkv[:, :E], qkv[:, E:2 * E], qkv[:, 2 * E:],
                     wo, bo, H, Dh, mask)


def _cross_attn(x, mem, wq, bq, wkv, bkv, wo, bo, H, Dh):
    """Cross-attention: packed Q projection of x, packed KV projection of mem."""
    E = H * Dh
    q = jnp.dot(x.astype(jnp.bfloat16), wq,
                preferred_element_type=jnp.float32) + bq
    kv = jnp.dot(mem.astype(jnp.bfloat16), wkv,
                 preferred_element_type=jnp.float32) + bkv
    return _attn_out(q, kv[:, :E], kv[:, E:], wo, bo, H, Dh)


def _ffn(x, w1, b1, w2, b2):
    """Fused feed-forward: (x @ w1 + b1) -> ReLU -> (@ w2 + b2)."""
    h = jnp.dot(x.astype(jnp.bfloat16), w1,
                preferred_element_type=jnp.float32) + b1
    h = jnp.maximum(h, 0.0)
    return jnp.dot(h.astype(jnp.bfloat16), w2,
                   preferred_element_type=jnp.float32) + b2


# ----------------------------- fused stack kernels ---------------------------

def _encoder_stack_kernel(S, H, Dh, n_layers,
                          src_ref, win_ref, bpe_ref,
                          wqkv, bqkv, wo, bo, g1, b1,
                          fw1, fb1, fw2, fb2, g2, b2,
                          gf, bf,
                          out_ref, x_scr):
    """Whole nn.TransformerEncoder (input proj + PE + layers + final LN).

    grid = (batch, layer); the activation (S, E) stays resident in x_scr across
    the layer axis; the output is written only at the last layer.
    """
    l = pl.program_id(1)

    @pl.when(l == 0)
    def _():   # input projection fused with (bias + positional encoding) table
        x_scr[...] = jnp.dot(src_ref[...], win_ref[...],
                             preferred_element_type=jnp.float32) + bpe_ref[...]

    x = x_scr[...]
    sa = _self_attn(x, wqkv[...], bqkv[...], wo[...], bo[...], H, Dh)
    x2 = _layer_norm(x + sa, g1[...], b1[...])
    ff = _ffn(x2, fw1[...], fb1[...], fw2[...], fb2[...])
    x3 = _layer_norm(x2 + ff, g2[...], b2[...])
    x_scr[...] = x3

    @pl.when(l == n_layers - 1)
    def _():
        out_ref[...] = _layer_norm(x3, gf[...], bf[...])


def _decoder_stack_kernel(T, S, H, Dh, n_layers,
                          tgt_ref, wdin_ref, bpe_ref, mem_ref, int_ref, mask_ref,
                          sa_wqkv, sa_bqkv, sa_wo, sa_bo, g1, b1,
                          ia_wv, ia_bv, ia_wo, ia_bo, g2, b2,
                          ca_wq, ca_bq, ca_wkv, ca_bkv, ca_wo, ca_bo, g3, b3,
                          fw1, fb1, fw2, fb2, g4, b4,
                          gf, bf, wout, bout,
                          out_ref, y_scr):
    """Whole intent-cross-attention decoder stack + final LN + output projection."""
    l = pl.program_id(1)
    E = H * Dh

    @pl.when(l == 0)
    def _():
        y_scr[...] = jnp.dot(tgt_ref[...], wdin_ref[...],
                             preferred_element_type=jnp.float32) + bpe_ref[...]

    y = y_scr[...]
    mem = mem_ref[...]

    # 1) masked self-attention + residual + LN
    sa = _self_attn(y, sa_wqkv[...], sa_bqkv[...], sa_wo[...], sa_bo[...],
                    H, Dh, mask=mask_ref[...])
    x2 = _layer_norm(y + sa, g1[...], b1[...])

    # 2) intent cross-attention (single intent token: softmax == 1, so the
    #    result is V -> output projection, independent of the queries; exact).
    iv = jnp.dot(int_ref[...].astype(jnp.bfloat16), ia_wv[...],
                 preferred_element_type=jnp.float32) + ia_bv[...]        # (1, E)
    io = jnp.dot(iv.astype(jnp.bfloat16), ia_wo[...],
                 preferred_element_type=jnp.float32) + ia_bo[...]        # (1, E)
    x3 = _layer_norm(x2 + jnp.broadcast_to(io, (T, E)), g2[...], b2[...])

    # 3) cross-attention over the encoder memory + residual + LN
    ca = _cross_attn(x3, mem, ca_wq[...], ca_bq[...], ca_wkv[...], ca_bkv[...],
                     ca_wo[...], ca_bo[...], H, Dh)
    x4 = _layer_norm(x3 + ca, g3[...], b3[...])

    # 4) feed-forward + residual + LN
    ff = _ffn(x4, fw1[...], fb1[...], fw2[...], fb2[...])
    x5 = _layer_norm(x4 + ff, g4[...], b4[...])
    y_scr[...] = x5

    @pl.when(l == n_layers - 1)
    def _():   # final decoder LayerNorm fused with the (lane-dense) out proj
        yn = _layer_norm(x5, gf[...], bf[...])
        out_ref[...] = jnp.dot(yn.astype(jnp.bfloat16), wout[...],
                               preferred_element_type=jnp.float32) + bout[...]


# ----------------------------- BlockSpec helpers -----------------------------

def _shared_spec(arr):
    nd = arr.ndim
    return pl.BlockSpec(arr.shape, lambda b, l, nd=nd: (0,) * nd)


def _stacked_spec(arr):   # leading layer axis, squeezed in the kernel
    nd = arr.ndim
    return pl.BlockSpec((None,) + arr.shape[1:],
                        lambda b, l, nd=nd: (l,) + (0,) * (nd - 1))


def _per_batch_spec(arr):  # leading batch axis, squeezed in the kernel
    nd = arr.ndim
    return pl.BlockSpec((None,) + arr.shape[1:],
                        lambda b, l, nd=nd: (b,) + (0,) * (nd - 1))


# ----------------------------- stack wrappers --------------------------------

_ENC_STACKED = ("wqkv", "bqkv", "wo", "bo", "ln1_g", "ln1_b",
                "ff_w1", "ff_b1", "ff_w2", "ff_b2", "ln2_g", "ln2_b")

_DEC_STACKED = ("sa_wqkv", "sa_bqkv", "sa_wo", "sa_bo", "ln1_g", "ln1_b",
                "ia_wv", "ia_bv", "ia_wo", "ia_bo", "ln2_g", "ln2_b",
                "ca_wq", "ca_bq", "ca_wkv", "ca_bkv", "ca_wo", "ca_bo",
                "ln3_g", "ln3_b",
                "ff_w1", "ff_b1", "ff_w2", "ff_b2", "ln4_g", "ln4_b")


def encoder_stack(params, src, bpe_s, nhead):
    B, S, _ = src.shape
    enc = params["enc"]
    n_layers, E = enc["wqkv"].shape[0], enc["wqkv"].shape[1]
    Dh = E // nhead

    args, specs = [], []

    def add(a, spec):
        args.append(a)
        specs.append(spec)

    add(src, _per_batch_spec(src))
    add(params["w_enc_in"], _shared_spec(params["w_enc_in"]))
    add(bpe_s, _shared_spec(bpe_s))
    for k in _ENC_STACKED:
        add(enc[k], _stacked_spec(enc[k]))
    for a in (params["enc_norm_g"], params["enc_norm_b"]):
        add(a, _shared_spec(a))

    kern = partial(_encoder_stack_kernel, S, nhead, Dh, n_layers)
    return pl.pallas_call(
        kern,
        grid=(B, n_layers),
        in_specs=specs,
        out_specs=pl.BlockSpec((None, S, E), lambda b, l: (b, 0, 0)),
        out_shape=jax.ShapeDtypeStruct((B, S, E), jnp.float32),
        scratch_shapes=[pltpu.VMEM((S, E), jnp.float32)],
        compiler_params=pltpu.CompilerParams(
            dimension_semantics=("parallel", "arbitrary")),
    )(*args)


def decoder_stack(params, tgt, bpe_t, memory, intent, tgt_mask, nhead):
    B, T, _ = tgt.shape
    S = memory.shape[1]
    dec = params["dec"]
    n_layers, E = dec["sa_wqkv"].shape[0], dec["sa_wqkv"].shape[1]
    Dh = E // nhead
    Pout = params["w_out"].shape[1]

    args, specs = [], []

    def add(a, spec):
        args.append(a)
        specs.append(spec)

    add(tgt, _per_batch_spec(tgt))
    add(params["w_dec_in"], _shared_spec(params["w_dec_in"]))
    add(bpe_t, _shared_spec(bpe_t))
    add(memory, _per_batch_spec(memory))
    add(intent, _per_batch_spec(intent))
    add(tgt_mask, _shared_spec(tgt_mask))
    for k in _DEC_STACKED:
        add(dec[k], _stacked_spec(dec[k]))
    for a in (params["dec_norm_g"], params["dec_norm_b"],
              params["w_out"], params["b_out"]):
        add(a, _shared_spec(a))

    kern = partial(_decoder_stack_kernel, T, S, nhead, Dh, n_layers)
    return pl.pallas_call(
        kern,
        grid=(B, n_layers),
        in_specs=specs,
        out_specs=pl.BlockSpec((None, T, Pout), lambda b, l: (b, 0, 0)),
        out_shape=jax.ShapeDtypeStruct((B, T, Pout), jnp.float32),
        scratch_shapes=[pltpu.VMEM((T, E), jnp.float32)],
        compiler_params=pltpu.CompilerParams(
            dimension_semantics=("parallel", "arbitrary")),
    )(*args)


# ----------------------------- model forward ---------------------------------

def sinusoidal_pe(length, d_model):
    pos = np.arange(length, dtype=np.float32)[:, None]
    div = np.exp(np.arange(0, d_model, 2, dtype=np.float32)
                 * (-math.log(10000.0) / d_model))
    pe = np.zeros((length, d_model), np.float32)
    pe[:, 0::2] = np.sin(pos * div)
    pe[:, 1::2] = np.cos(pos * div)
    return pe


def forward(params, src, intent, tgt, tgt_mask=None,
            src_pad_mask=None, tgt_pad_mask=None, *, nhead):
    """Matches CNNTransformerWithDecoderIntentCrossAttention.forward.

    src: (B, S, dim_feature_in)  intent: (B, 1, dim_model)  tgt: (B, T, dim_feature_out)
    """
    # TODO(synk): src_pad_mask / tgt_pad_mask (key-padding) not wired; demo uses None.
    del src_pad_mask, tgt_pad_mask
    B, S, _ = src.shape
    _, T, Fout = tgt.shape
    E = params["w_enc_in"].shape[1]

    # fold input-projection bias + positional encoding into one additive table
    bpe_s = jnp.asarray(sinusoidal_pe(S, E)) + params["b_enc_in"]
    bpe_t = jnp.asarray(sinusoidal_pe(T, E)) + params["b_dec_in"]

    if tgt_mask is None:
        tgt_mask = jnp.zeros((T, T), jnp.float32)

    memory = encoder_stack(params, src, bpe_s, nhead)                 # (B, S, E)
    out_pad = decoder_stack(params, tgt, bpe_t, memory, intent,
                            tgt_mask, nhead)                          # (B, T, Pout)
    return out_pad[:, :, :Fout]                                       # (B, T, Fout)


# --------------------------- parameter creation -------------------------------

def _ln_stack(n, e):
    return jnp.ones((n, 1, e), jnp.float32), jnp.zeros((n, 1, e), jnp.float32)


def init_params(key, dim_model, dim_feature_in, dim_feature_out,
                nhead, num_encoder_layers, num_decoder_layers, dim_ff,
                out_pad=128, scale=0.02):
    E, FF = dim_model, dim_ff
    keys = iter(jax.random.split(key, 32))

    def w32(shape):
        return scale * jax.random.normal(next(keys), shape, jnp.float32)

    def w16(shape):   # bf16 weights for MXU matmuls (f32 accumulation in-kernel)
        return w32(shape).astype(jnp.bfloat16)

    p = {
        "w_enc_in": w32((dim_feature_in, E)),
        "b_enc_in": jnp.zeros((1, E), jnp.float32),
        "w_dec_in": w32((dim_feature_out, E)),
        "b_dec_in": jnp.zeros((1, E), jnp.float32),
        "enc_norm_g": jnp.ones((1, E), jnp.float32),
        "enc_norm_b": jnp.zeros((1, E), jnp.float32),
        "dec_norm_g": jnp.ones((1, E), jnp.float32),
        "dec_norm_b": jnp.zeros((1, E), jnp.float32),
    }
    # lane-dense (128-padded) output projection; valid columns = [:dim_feature_out]
    w_out = jnp.zeros((E, out_pad), jnp.float32)
    w_out = w_out.at[:, :dim_feature_out].set(w32((E, dim_feature_out)))
    p["w_out"] = w_out.astype(jnp.bfloat16)
    p["b_out"] = jnp.zeros((1, out_pad), jnp.float32)

    ne, nd = num_encoder_layers, num_decoder_layers
    enc = {
        "wqkv": w16((ne, E, 3 * E)), "bqkv": jnp.zeros((ne, 1, 3 * E), jnp.float32),
        "wo": w16((ne, E, E)), "bo": jnp.zeros((ne, 1, E), jnp.float32),
        "ff_w1": w16((ne, E, FF)), "ff_b1": jnp.zeros((ne, 1, FF), jnp.float32),
        "ff_w2": w16((ne, FF, E)), "ff_b2": jnp.zeros((ne, 1, E), jnp.float32),
    }
    enc["ln1_g"], enc["ln1_b"] = _ln_stack(ne, E)
    enc["ln2_g"], enc["ln2_b"] = _ln_stack(ne, E)
    p["enc"] = enc

    dec = {
        "sa_wqkv": w16((nd, E, 3 * E)),
        "sa_bqkv": jnp.zeros((nd, 1, 3 * E), jnp.float32),
        "sa_wo": w16((nd, E, E)), "sa_bo": jnp.zeros((nd, 1, E), jnp.float32),
        "ia_wv": w16((nd, E, E)), "ia_bv": jnp.zeros((nd, 1, E), jnp.float32),
        "ia_wo": w16((nd, E, E)), "ia_bo": jnp.zeros((nd, 1, E), jnp.float32),
        "ca_wq": w16((nd, E, E)), "ca_bq": jnp.zeros((nd, 1, E), jnp.float32),
        "ca_wkv": w16((nd, E, 2 * E)),
        "ca_bkv": jnp.zeros((nd, 1, 2 * E), jnp.float32),
        "ca_wo": w16((nd, E, E)), "ca_bo": jnp.zeros((nd, 1, E), jnp.float32),
        "ff_w1": w16((nd, E, FF)), "ff_b1": jnp.zeros((nd, 1, FF), jnp.float32),
        "ff_w2": w16((nd, FF, E)), "ff_b2": jnp.zeros((nd, 1, E), jnp.float32),
    }
    for i in range(1, 5):
        dec[f"ln{i}_g"], dec[f"ln{i}_b"] = _ln_stack(nd, E)
    p["dec"] = dec
    return p


# ---------------------------------- main --------------------------------------

if __name__ == "__main__":
    # Small shapes consistent with the module's forward.
    B, S, T = 2, 8, 8
    DIM_MODEL, F_IN, F_OUT, NHEAD = 32, 6, 3, 4
    N_ENC, N_DEC = 2, 2
    DIM_FF = 2048          # nn.TransformerEncoderLayer default
    # dropout_p treated as 0.0 (eval-mode semantics): every Dropout is identity.

    root = jax.random.PRNGKey(0)
    kp, ks, kt, ki = jax.random.split(root, 4)

    params = init_params(kp, DIM_MODEL, F_IN, F_OUT, NHEAD, N_ENC, N_DEC, DIM_FF)

    src = jax.random.normal(ks, (B, S, F_IN), jnp.float32)
    tgt = jax.random.normal(kt, (B, T, F_OUT), jnp.float32)
    intent = jax.random.normal(ki, (B, 1, DIM_MODEL), jnp.float32)

    # causal (square subsequent) additive mask for the decoder self-attention
    idx = jnp.arange(T)
    tgt_mask = jnp.where(idx[None, :] <= idx[:, None], 0.0, -1e9).astype(jnp.float32)

    fwd = jax.jit(partial(forward, nhead=NHEAD))
    out = jax.block_until_ready(fwd(params, src, intent, tgt, tgt_mask))
    assert out.shape == (B, T, F_OUT), out.shape
    assert bool(jnp.all(jnp.isfinite(out)))
    print("KERNEL_OK")
</pallas_src>

<mosaic_0001>
module attributes {stable_mosaic.version = 11 : i64} {
  func.func @_encoder_stack_kernel(%arg0: i32, %arg1: i32, %arg2: memref<1x8x6xf32, #tpu.memory_space<vmem>>, %arg3: memref<6x32xf32, #tpu.memory_space<vmem>>, %arg4: memref<8x32xf32, #tpu.memory_space<vmem>>, %arg5: memref<1x32x96xbf16, #tpu.memory_space<vmem>>, %arg6: memref<1x1x96xf32, #tpu.memory_space<vmem>>, %arg7: memref<1x32x32xbf16, #tpu.memory_space<vmem>>, %arg8: memref<1x1x32xf32, #tpu.memory_space<vmem>>, %arg9: memref<1x1x32xf32, #tpu.memory_space<vmem>>, %arg10: memref<1x1x32xf32, #tpu.memory_space<vmem>>, %arg11: memref<1x32x2048xbf16, #tpu.memory_space<vmem>>, %arg12: memref<1x1x2048xf32, #tpu.memory_space<vmem>>, %arg13: memref<1x2048x32xbf16, #tpu.memory_space<vmem>>, %arg14: memref<1x1x32xf32, #tpu.memory_space<vmem>>, %arg15: memref<1x1x32xf32, #tpu.memory_space<vmem>>, %arg16: memref<1x1x32xf32, #tpu.memory_space<vmem>>, %arg17: memref<1x32xf32, #tpu.memory_space<vmem>>, %arg18: memref<1x32xf32, #tpu.memory_space<vmem>>, %arg19: memref<1x8x32xf32, #tpu.memory_space<vmem>>, %arg20: memref<8x32xf32, #tpu.memory_space<vmem>>) attributes {dimension_semantics = [#tpu.dimension_semantics<parallel>, #tpu.dimension_semantics<arbitrary>], iteration_bounds = array<i64: 2, 2>, scalar_prefetch = 0 : i64, scratch_operands = 1 : i64, tpu.core_type = #tpu.core_type<tc>, window_params = [{transform_indices = @transform_0, window_bounds = array<i64: 1, 8, 6>}, {pipeline_mode = #tpu.pipeline_mode<synchronous>, transform_indices = @transform_1, window_bounds = array<i64: 6, 32>}, {pipeline_mode = #tpu.pipeline_mode<synchronous>, transform_indices = @transform_2, window_bounds = array<i64: 8, 32>}, {transform_indices = @transform_3, window_bounds = array<i64: 1, 32, 96>}, {transform_indices = @transform_4, window_bounds = array<i64: 1, 1, 96>}, {transform_indices = @transform_5, window_bounds = array<i64: 1, 32, 32>}, {transform_indices = @transform_6, window_bounds = array<i64: 1, 1, 32>}, {transform_indices = @transform_7, window_bounds = array<i64: 1, 1, 32>}, {transform_indices = @transform_8, window_bounds = array<i64: 1, 1, 32>}, {transform_indices = @transform_9, window_bounds = array<i64: 1, 32, 2048>}, {transform_indices = @transform_10, window_bounds = array<i64: 1, 1, 2048>}, {transform_indices = @transform_11, window_bounds = array<i64: 1, 2048, 32>}, {transform_indices = @transform_12, window_bounds = array<i64: 1, 1, 32>}, {transform_indices = @transform_13, window_bounds = array<i64: 1, 1, 32>}, {transform_indices = @transform_14, window_bounds = array<i64: 1, 1, 32>}, {pipeline_mode = #tpu.pipeline_mode<synchronous>, transform_indices = @transform_15, window_bounds = array<i64: 1, 32>}, {pipeline_mode = #tpu.pipeline_mode<synchronous>, transform_indices = @transform_16, window_bounds = array<i64: 1, 32>}, {transform_indices = @transform_17, window_bounds = array<i64: 1, 8, 32>}]} {
    %c0_i32 = arith.constant 0 : i32
    %0 = arith.cmpi eq, %arg1, %c0_i32 : i32
    %1 = arith.extui %0 : i1 to i32
    %c0_i32_0 = arith.constant 0 : i32
    %2 = arith.cmpi ne, %1, %c0_i32_0 : i32
    scf.if %2 {
      %c0_78 = arith.constant 0 : index
      %c0_79 = arith.constant 0 : index
      %c0_80 = arith.constant 0 : index
      %180 = vector.load %arg2[%c0_78, %c0_79, %c0_80] : memref<1x8x6xf32, #tpu.memory_space<vmem>>, vector<1x8x6xf32>
      %181 = vector.shape_cast %180 : vector<1x8x6xf32> to vector<8x6xf32>
      %c0_81 = arith.constant 0 : index
      %c0_82 = arith.constant 0 : index
      %182 = vector.load %arg3[%c0_81, %c0_82] : memref<6x32xf32, #tpu.memory_space<vmem>>, vector<6x32xf32>
      %cst_83 = arith.constant dense<0.000000e+00> : vector<8x32xf32>
      %183 = tpu.matmul %181, %182, %cst_83 {dimension_numbers = #tpu.dot_dimension_numbers<[1], [0], [0], [1], [0, 0, 1, 1], [], []>} : vector<8x6xf32>, vector<6x32xf32>, vector<8x32xf32> -> vector<8x32xf32>
      %c0_84 = arith.constant 0 : index
      %c0_85 = arith.constant 0 : index
      %184 = vector.load %arg4[%c0_84, %c0_85] : memref<8x32xf32, #tpu.memory_space<vmem>>, vector<8x32xf32>
      %185 = arith.addf %183, %184 : vector<8x32xf32>
      %c0_86 = arith.constant 0 : index
      %c0_87 = arith.constant 0 : index
      %186 = vector.load %arg20[%c0_86, %c0_87] : memref<8x32xf32, #tpu.memory_space<vmem>>, vector<8x32xf32>
      tpu.vector_store %arg20[%c0_86, %c0_87], %185 {strides = array<i32>} : memref<8x32xf32, #tpu.memory_space<vmem>>, vector<8x32xf32>,
    } else {
    }
    %c0 = arith.constant 0 : index
    %c0_1 = arith.constant 0 : index
    %3 = vector.load %arg20[%c0, %c0_1] : memref<8x32xf32, #tpu.memory_space<vmem>>, vector<8x32xf32>
    %c0_2 = arith.constant 0 : index
    %c0_3 = arith.constant 0 : index
    %c0_4 = arith.constant 0 : index
    %4 = vector.load %arg5[%c0_2, %c0_3, %c0_4] : memref<1x32x96xbf16, #tpu.memory_space<vmem>>, vector<1x32x96xbf16>
    %5 = vector.shape_cast %4 : vector<1x32x96xbf16> to vector<32x96xbf16>
    %c0_5 = arith.constant 0 : index
    %c0_6 = arith.constant 0 : index
    %c0_7 = arith.constant 0 : index
    %6 = vector.load %arg6[%c0_5, %c0_6, %c0_7] : memref<1x1x96xf32, #tpu.memory_space<vmem>>, vector<1x1x96xf32>
    %7 = vector.shape_cast %6 : vector<1x1x96xf32> to vector<1x96xf32>
    %c0_8 = arith.constant 0 : index
    %c0_9 = arith.constant 0 : index
    %c0_10 = arith.constant 0 : index
    %8 = vector.load %arg7[%c0_8, %c0_9, %c0_10] : memref<1x32x32xbf16, #tpu.memory_space<vmem>>, vector<1x32x32xbf16>
    %9 = vector.shape_cast %8 : vector<1x32x32xbf16> to vector<32x32xbf16>
    %c0_11 = arith.constant 0 : index
    %c0_12 = arith.constant 0 : index
    %c0_13 = arith.constant 0 : index
    %10 = vector.load %arg8[%c0_11, %c0_12, %c0_13] : memref<1x1x32xf32, #tpu.memory_space<vmem>>, vector<1x1x32xf32>
    %11 = vector.shape_cast %10 : vector<1x1x32xf32> to vector<1x32xf32>
    %12 = arith.truncf %3 : vector<8x32xf32> to vector<8x32xbf16>
    %cst = arith.constant dense<0.000000e+00> : vector<8x96xf32>
    %13 = tpu.matmul %12, %5, %cst {dimension_numbers = #tpu.dot_dimension_numbers<[1], [0], [0], [1], [0, 0, 1, 1], [], []>} : vector<8x32xbf16>, vector<32x96xbf16>, vector<8x96xf32> -> vector<8x96xf32>
    %14 = vector.broadcast %7 : vector<1x96xf32> to vector<8x96xf32>
    %15 = arith.addf %13, %14 : vector<8x96xf32>
    %16 = vector.extract_strided_slice %15 {offsets = [0, 0], sizes = [8, 32], strides = [1, 1]} : vector<8x96xf32> to vector<8x32xf32>
    %17 = vector.extract_strided_slice %15 {offsets = [0, 32], sizes = [8, 32], strides = [1, 1]} : vector<8x96xf32> to vector<8x32xf32>
    %18 = vector.extract_strided_slice %15 {offsets = [0, 64], sizes = [8, 32], strides = [1, 1]} : vector<8x96xf32> to vector<8x32xf32>
    %19 = vector.extract_strided_slice %16 {offsets = [0, 0], sizes = [8, 8], strides = [1, 1]} : vector<8x32xf32> to vector<8x8xf32>
    %20 = vector.extract_strided_slice %17 {offsets = [0, 0], sizes = [8, 8], strides = [1, 1]} : vector<8x32xf32> to vector<8x8xf32>
    %21 = vector.extract_strided_slice %18 {offsets = [0, 0], sizes = [8, 8], strides = [1, 1]} : vector<8x32xf32> to vector<8x8xf32>
    %22 = tpu.transpose %20, [1, 0] : vector<8x8xf32> -> vector<8x8xf32>
    %cst_14 = arith.constant dense<0.000000e+00> : vector<8x8xf32>
    %23 = tpu.matmul %19, %22, %cst_14 {dimension_numbers = #tpu.dot_dimension_numbers<[1], [0], [0], [1], [0, 0, 1, 1], [], []>} : vector<8x8xf32>, vector<8x8xf32>, vector<8x8xf32> -> vector<8x8xf32>
    %cst_15 = arith.constant 0.353553385 : f32
    %24 = vector.broadcast %cst_15 : f32 to vector<8x8xf32>
    %25 = arith.mulf %23, %24 : vector<8x8xf32>
    %cst_16 = arith.constant dense<0xFF800000> : vector<8xf32>
    %26 = vector.multi_reduction <maximumf>, %25, %cst_16 [1] : vector<8x8xf32> to vector<8xf32>
    %27 = vector.shape_cast %26 : vector<8xf32> to vector<8x1xf32>
    %28 = vector.broadcast %27 : vector<8x1xf32> to vector<8x8xf32>
    %29 = arith.subf %25, %28 : vector<8x8xf32>
    %30 = math.exp %29 : vector<8x8xf32>
    %cst_17 = arith.constant dense<0.000000e+00> : vector<8xf32>
    %31 = vector.multi_reduction <add>, %30, %cst_17 [1] : vector<8x8xf32> to vector<8xf32>
    %32 = vector.shape_cast %31 : vector<8xf32> to vector<8x1xf32>
    %33 = vector.broadcast %32 : vector<8x1xf32> to vector<8x8xf32>
    %34 = arith.divf %30, %33 : vector<8x8xf32>
    %cst_18 = arith.constant dense<0.000000e+00> : vector<8x8xf32>
    %35 = tpu.matmul %34, %21, %cst_18 {dimension_numbers = #tpu.dot_dimension_numbers<[1], [0], [0], [1], [0, 0, 1, 1], [], []>} : vector<8x8xf32>, vector<8x8xf32>, vector<8x8xf32> -> vector<8x8xf32>
    %36 = arith.truncf %35 : vector<8x8xf32> to vector<8x8xbf16>
    %37 = vector.extract_strided_slice %9 {offsets = [0, 0], sizes = [8, 32], strides = [1, 1]} : vector<32x32xbf16> to vector<8x32xbf16>
    %cst_19 = arith.constant dense<0.000000e+00> : vector<8x32xf32>
    %38 = tpu.matmul %36, %37, %cst_19 {dimension_numbers = #tpu.dot_dimension_numbers<[1], [0], [0], [1], [0, 0, 1, 1], [], []>} : vector<8x8xbf16>, vector<8x32xbf16>, vector<8x32xf32> -> vector<8x32xf32>
    %39 = vector.extract_strided_slice %16 {offsets = [0, 8], sizes = [8, 8], strides = [1, 1]} : vector<8x32xf32> to vector<8x8xf32>
    %40 = vector.extract_strided_slice %17 {offsets = [0, 8], sizes = [8, 8], strides = [1, 1]} : vector<8x32xf32> to vector<8x8xf32>
    %41 = vector.extract_strided_slice %18 {offsets = [0, 8], sizes = [8, 8], strides = [1, 1]} : vector<8x32xf32> to vector<8x8xf32>
    %42 = tpu.transpose %40, [1, 0] : vector<8x8xf32> -> vector<8x8xf32>
    %cst_20 = arith.constant dense<0.000000e+00> : vector<8x8xf32>
    %43 = tpu.matmul %39, %42, %cst_20 {dimension_numbers = #tpu.dot_dimension_numbers<[1], [0], [0], [1], [0, 0, 1, 1], [], []>} : vector<8x8xf32>, vector<8x8xf32>, vector<8x8xf32> -> vector<8x8xf32>
    %cst_21 = arith.constant 0.353553385 : f32
    %44 = vector.broadcast %cst_21 : f32 to vector<8x8xf32>
    %45 = arith.mulf %43, %44 : vector<8x8xf32>
    %cst_22 = arith.constant dense<0xFF800000> : vector<8xf32>
    %46 = vector.multi_reduction <maximumf>, %45, %cst_22 [1] : vector<8x8xf32> to vector<8xf32>
    %47 = vector.shape_cast %46 : vector<8xf32> to vector<8x1xf32>
    %48 = vector.broadcast %47 : vector<8x1xf32> to vector<8x8xf32>
    %49 = arith.subf %45, %48 : vector<8x8xf32>
    %50 = math.exp %49 : vector<8x8xf32>
    %cst_23 = arith.constant dense<0.000000e+00> : vector<8xf32>
    %51 = vector.multi_reduction <add>, %50, %cst_23 [1] : vector<8x8xf32> to vector<8xf32>
    %52 = vector.shape_cast %51 : vector<8xf32> to vector<8x1xf32>
    %53 = vector.broadcast %52 : vector<8x1xf32> to vector<8x8xf32>
    %54 = arith.divf %50, %53 : vector<8x8xf32>
    %cst_24 = arith.constant dense<0.000000e+00> : vector<8x8xf32>
    %55 = tpu.matmul %54, %41, %cst_24 {dimension_numbers = #tpu.dot_dimension_numbers<[1], [0], [0], [1], [0, 0, 1, 1], [], []>} : vector<8x8xf32>, vector<8x8xf32>, vector<8x8xf32> -> vector<8x8xf32>
    %56 = arith.truncf %55 : vector<8x8xf32> to vector<8x8xbf16>
    %57 = vector.extract_strided_slice %9 {offsets = [8, 0], sizes = [8, 32], strides = [1, 1]} : vector<32x32xbf16> to vector<8x32xbf16>
    %cst_25 = arith.constant dense<0.000000e+00> : vector<8x32xf32>
    %58 = tpu.matmul %56, %57, %cst_25 {dimension_numbers = #tpu.dot_dimension_numbers<[1], [0], [0], [1], [0, 0, 1, 1], [], []>} : vector<8x8xbf16>, vector<8x32xbf16>, vector<8x32xf32> -> vector<8x32xf32>
    %59 = arith.addf %38, %58 : vector<8x32xf32>
    %60 = vector.extract_strided_slice %16 {offsets = [0, 16], sizes = [8, 8], strides = [1, 1]} : vector<8x32xf32> to vector<8x8xf32>
    %61 = vector.extract_strided_slice %17 {offsets = [0, 16], sizes = [8, 8], strides = [1, 1]} : vector<8x32xf32> to vector<8x8xf32>
    %62 = vector.extract_strided_slice %18 {offsets = [0, 16], sizes = [8, 8], strides = [1, 1]} : vector<8x32xf32> to vector<8x8xf32>
    %63 = tpu.transpose %61, [1, 0] : vector<8x8xf32> -> vector<8x8xf32>
    %cst_26 = arith.constant dense<0.000000e+00> : vector<8x8xf32>
    %64 = tpu.matmul %60, %63, %cst_26 {dimension_numbers = #tpu.dot_dimension_numbers<[1], [0], [0], [1], [0, 0, 1, 1], [], []>} : vector<8x8xf32>, vector<8x8xf32>, vector<8x8xf32> -> vector<8x8xf32>
    %cst_27 = arith.constant 0.353553385 : f32
    %65 = vector.broadcast %cst_27 : f32 to vector<8x8xf32>
    %66 = arith.mulf %64, %65 : vector<8x8xf32>
    %cst_28 = arith.constant dense<0xFF800000> : vector<8xf32>
    %67 = vector.multi_reduction <maximumf>, %66, %cst_28 [1] : vector<8x8xf32> to vector<8xf32>
    %68 = vector.shape_cast %67 : vector<8xf32> to vector<8x1xf32>
    %69 = vector.broadcast %68 : vector<8x1xf32> to vector<8x8xf32>
    %70 = arith.subf %66, %69 : vector<8x8xf32>
    %71 = math.exp %70 : vector<8x8xf32>
    %cst_29 = arith.constant dense<0.000000e+00> : vector<8xf32>
    %72 = vector.multi_reduction <add>, %71, %cst_29 [1] : vector<8x8xf32> to vector<8xf32>
    %73 = vector.shape_cast %72 : vector<8xf32> to vector<8x1xf32>
    %74 = vector.broadcast %73 : vector<8x1xf32> to vector<8x8xf32>
    %75 = arith.divf %71, %74 : vector<8x8xf32>
    %cst_30 = arith.constant dense<0.000000e+00> : vector<8x8xf32>
    %76 = tpu.matmul %75, %62, %cst_30 {dimension_numbers = #tpu.dot_dimension_numbers<[1], [0], [0], [1], [0, 0, 1, 1], [], []>} : vector<8x8xf32>, vector<8x8xf32>, vector<8x8xf32> -> vector<8x8xf32>
    %77 = arith.truncf %76 : vector<8x8xf32> to vector<8x8xbf16>
    %78 = vector.extract_strided_slice %9 {offsets = [16, 0], sizes = [8, 32], strides = [1, 1]} : vector<32x32xbf16> to vector<8x32xbf16>
    %cst_31 = arith.constant dense<0.000000e+00> : vector<8x32xf32>
    %79 = tpu.matmul %77, %78, %cst_31 {dimension_numbers = #tpu.dot_dimension_numbers<[1], [0], [0], [1], [0, 0, 1, 1], [], []>} : vector<8x8xbf16>, vector<8x32xbf16>, vector<8x32xf32> -> vector<8x32xf32>
    %80 = arith.addf %59, %79 : vector<8x32xf32>
    %81 = vector.extract_strided_slice %16 {offsets = [0, 24], sizes = [8, 8], strides = [1, 1]} : vector<8x32xf32> to vector<8x8xf32>
    %82 = vector.extract_strided_slice %17 {offsets = [0, 24], sizes = [8, 8], strides = [1, 1]} : vector<8x32xf32> to vector<8x8xf32>
    %83 = vector.extract_strided_slice %18 {offsets = [0, 24], sizes = [8, 8], strides = [1, 1]} : vector<8x32xf32> to vector<8x8xf32>
    %84 = tpu.transpose %82, [1, 0] : vector<8x8xf32> -> vector<8x8xf32>
    %cst_32 = arith.constant dense<0.000000e+00> : vector<8x8xf32>
    %85 = tpu.matmul %81, %84, %cst_32 {dimension_numbers = #tpu.dot_dimension_numbers<[1], [0], [0], [1], [0, 0, 1, 1], [], []>} : vector<8x8xf32>, vector<8x8xf32>, vector<8x8xf32> -> vector<8x8xf32>
    %cst_33 = arith.constant 0.353553385 : f32
    %86 = vector.broadcast %cst_33 : f32 to vector<8x8xf32>
    %87 = arith.mulf %85, %86 : vector<8x8xf32>
    %cst_34 = arith.constant dense<0xFF800000> : vector<8xf32>
    %88 = vector.multi_reduction <maximumf>, %87, %cst_34 [1] : vector<8x8xf32> to vector<8xf32>
    %89 = vector.shape_cast %88 : vector<8xf32> to vector<8x1xf32>
    %90 = vector.broadcast %89 : vector<8x1xf32> to vector<8x8xf32>
    %91 = arith.subf %87, %90 : vector<8x8xf32>
    %92 = math.exp %91 : vector<8x8xf32>
    %cst_35 = arith.constant dense<0.000000e+00> : vector<8xf32>
    %93 = vector.multi_reduction <add>, %92, %cst_35 [1] : vector<8x8xf32> to vector<8xf32>
    %94 = vector.shape_cast %93 : vector<8xf32> to vector<8x1xf32>
    %95 = vector.broadcast %94 : vector<8x1xf32> to vector<8x8xf32>
    %96 = arith.divf %92, %95 : vector<8x8xf32>
    %cst_36 = arith.constant dense<0.000000e+00> : vector<8x8xf32>
    %97 = tpu.matmul %96, %83, %cst_36 {dimension_numbers = #tpu.dot_dimension_numbers<[1], [0], [0], [1], [0, 0, 1, 1], [], []>} : vector<8x8xf32>, vector<8x8xf32>, vector<8x8xf32> -> vector<8x8xf32>
    %98 = arith.truncf %97 : vector<8x8xf32> to vector<8x8xbf16>
    %99 = vector.extract_strided_slice %9 {offsets = [24, 0], sizes = [8, 32], strides = [1, 1]} : vector<32x32xbf16> to vector<8x32xbf16>
    %cst_37 = arith.constant dense<0.000000e+00> : vector<8x32xf32>
    %100 = tpu.matmul %98, %99, %cst_37 {dimension_numbers = #tpu.dot_dimension_numbers<[1], [0], [0], [1], [0, 0, 1, 1], [], []>} : vector<8x8xbf16>, vector<8x32xbf16>, vector<8x32xf32> -> vector<8x32xf32>
    %101 = arith.addf %80, %100 : vector<8x32xf32>
    %102 = vector.broadcast %11 : vector<1x32xf32> to vector<8x32xf32>
    %103 = arith.addf %101, %102 : vector<8x32xf32>
    %104 = arith.addf %3, %103 : vector<8x32xf32>
    %c0_38 = arith.constant 0 : index
    %c0_39 = arith.constant 0 : index
    %c0_40 = arith.constant 0 : index
    %105 = vector.load %arg9[%c0_38, %c0_39, %c0_40] : memref<1x1x32xf32, #tpu.memory_space<vmem>>, vector<1x1x32xf32>
    %106 = vector.shape_cast %105 : vector<1x1x32xf32> to vector<1x32xf32>
    %c0_41 = arith.constant 0 : index
    %c0_42 = arith.constant 0 : index
    %c0_43 = arith.constant 0 : index
    %107 = vector.load %arg10[%c0_41, %c0_42, %c0_43] : memref<1x1x32xf32, #tpu.memory_space<vmem>>, vector<1x1x32xf32>
    %108 = vector.shape_cast %107 : vector<1x1x32xf32> to vector<1x32xf32>
    %cst_44 = arith.constant dense<0.000000e+00> : vector<8xf32>
    %109 = vector.multi_reduction <add>, %104, %cst_44 [1] : vector<8x32xf32> to vector<8xf32>
    %110 = vector.shape_cast %109 : vector<8xf32> to vector<8x1xf32>
    %cst_45 = arith.constant 3.200000e+01 : f32
    %111 = vector.broadcast %cst_45 : f32 to vector<8x1xf32>
    %112 = arith.divf %110, %111 : vector<8x1xf32>
    %113 = vector.broadcast %112 : vector<8x1xf32> to vector<8x32xf32>
    %114 = arith.subf %104, %113 : vector<8x32xf32>
    %115 = arith.mulf %114, %114 : vector<8x32xf32>
    %cst_46 = arith.constant dense<0.000000e+00> : vector<8xf32>
    %116 = vector.multi_reduction <add>, %115, %cst_46 [1] : vector<8x32xf32> to vector<8xf32>
    %117 = vector.shape_cast %116 : vector<8xf32> to vector<8x1xf32>
    %cst_47 = arith.constant 3.200000e+01 : f32
    %118 = vector.broadcast %cst_47 : f32 to vector<8x1xf32>
    %119 = arith.divf %117, %118 : vector<8x1xf32>
    %120 = vector.broadcast %112 : vector<8x1xf32> to vector<8x32xf32>
    %121 = arith.subf %104, %120 : vector<8x32xf32>
    %cst_48 = arith.constant 9.99999974E-6 : f32
    %122 = vector.broadcast %cst_48 : f32 to vector<8x1xf32>
    %123 = arith.addf %119, %122 : vector<8x1xf32>
    %124 = math.rsqrt %123 : vector<8x1xf32>
    %125 = vector.broadcast %124 : vector<8x1xf32> to vector<8x32xf32>
    %126 = arith.mulf %121, %125 : vector<8x32xf32>
    %127 = vector.broadcast %106 : vector<1x32xf32> to vector<8x32xf32>
    %128 = arith.mulf %126, %127 : vector<8x32xf32>
    %129 = vector.broadcast %108 : vector<1x32xf32> to vector<8x32xf32>
    %130 = arith.addf %128, %129 : vector<8x32xf32>
    %c0_49 = arith.constant 0 : index
    %c0_50 = arith.constant 0 : index
    %c0_51 = arith.constant 0 : index
    %131 = vector.load %arg11[%c0_49, %c0_50, %c0_51] : memref<1x32x2048xbf16, #tpu.memory_space<vmem>>, vector<1x32x2048xbf16>
    %132 = vector.shape_cast %131 : vector<1x32x2048xbf16> to vector<32x2048xbf16>
    %c0_52 = arith.constant 0 : index
    %c0_53 = arith.constant 0 : index
    %c0_54 = arith.constant 0 : index
    %133 = vector.load %arg12[%c0_52, %c0_53, %c0_54] : memref<1x1x2048xf32, #tpu.memory_space<vmem>>, vector<1x1x2048xf32>
    %134 = vector.shape_cast %133 : vector<1x1x2048xf32> to vector<1x2048xf32>
    %c0_55 = arith.constant 0 : index
    %c0_56 = arith.constant 0 : index
    %c0_57 = arith.constant 0 : index
    %135 = vector.load %arg13[%c0_55, %c0_56, %c0_57] : memref<1x2048x32xbf16, #tpu.memory_space<vmem>>, vector<1x2048x32xbf16>
    %136 = vector.shape_cast %135 : vector<1x2048x32xbf16> to vector<2048x32xbf16>
    %c0_58 = arith.constant 0 : index
    %c0_59 = arith.constant 0 : index
    %c0_60 = arith.constant 0 : index
    %137 = vector.load %arg14[%c0_58, %c0_59, %c0_60] : memref<1x1x32xf32, #tpu.memory_space<vmem>>, vector<1x1x32xf32>
    %138 = vector.shape_cast %137 : vector<1x1x32xf32> to vector<1x32xf32>
    %139 = arith.truncf %130 : vector<8x32xf32> to vector<8x32xbf16>
    %cst_61 = arith.constant dense<0.000000e+00> : vector<8x2048xf32>
    %140 = tpu.matmul %139, %132, %cst_61 {dimension_numbers = #tpu.dot_dimension_numbers<[1], [0], [0], [1], [0, 0, 1, 1], [], []>} : vector<8x32xbf16>, vector<32x2048xbf16>, vector<8x2048xf32> -> vector<8x2048xf32>
    %141 = vector.broadcast %134 : vector<1x2048xf32> to vector<8x2048xf32>
    %142 = arith.addf %140, %141 : vector<8x2048xf32>
    %cst_62 = arith.constant 0.000000e+00 : f32
    %143 = vector.broadcast %cst_62 : f32 to vector<8x2048xf32>
    %144 = arith.maximumf %142, %143 : vector<8x2048xf32>
    %145 = arith.truncf %144 : vector<8x2048xf32> to vector<8x2048xbf16>
    %cst_63 = arith.constant dense<0.000000e+00> : vector<8x32xf32>
    %146 = tpu.matmul %145, %136, %cst_63 {dimension_numbers = #tpu.dot_dimension_numbers<[1], [0], [0], [1], [0, 0, 1, 1], [], []>} : vector<8x2048xbf16>, vector<2048x32xbf16>, vector<8x32xf32> -> vector<8x32xf32>
    %147 = vector.broadcast %138 : vector<1x32xf32> to vector<8x32xf32>
    %148 = arith.addf %146, %147 : vector<8x32xf32>
    %149 = arith.addf %130, %148 : vector<8x32xf32>
    %c0_64 = arith.constant 0 : index
    %c0_65 = arith.constant 0 : index
    %c0_66 = arith.constant 0 : index
    %150 = vector.load %arg15[%c0_64, %c0_65, %c0_66] : memref<1x1x32xf32, #tpu.memory_space<vmem>>, vector<1x1x32xf32>
    %151 = vector.shape_cast %150 : vector<1x1x32xf32> to vector<1x32xf32>
    %c0_67 = arith.constant 0 : index
    %c0_68 = arith.constant 0 : index
    %c0_69 = arith.constant 0 : index
    %152 = vector.load %arg16[%c0_67, %c0_68, %c0_69] : memref<1x1x32xf32, #tpu.memory_space<vmem>>, vector<1x1x32xf32>
    %153 = vector.shape_cast %152 : vector<1x1x32xf32> to vector<1x32xf32>
    %cst_70 = arith.constant dense<0.000000e+00> : vector<8xf32>
    %154 = vector.multi_reduction <add>, %149, %cst_70 [1] : vector<8x32xf32> to vector<8xf32>
    %155 = vector.shape_cast %154 : vector<8xf32> to vector<8x1xf32>
    %cst_71 = arith.constant 3.200000e+01 : f32
    %156 = vector.broadcast %cst_71 : f32 to vector<8x1xf32>
    %157 = arith.divf %155, %156 : vector<8x1xf32>
    %158 = vector.broadcast %157 : vector<8x1xf32> to vector<8x32xf32>
    %159 = arith.subf %149, %158 : vector<8x32xf32>
    %160 = arith.mulf %159, %159 : vector<8x32xf32>
    %cst_72 = arith.constant dense<0.000000e+00> : vector<8xf32>
    %161 = vector.multi_reduction <add>, %160, %cst_72 [1] : vector<8x32xf32> to vector<8xf32>
    %162 = vector.shape_cast %161 : vector<8xf32> to vector<8x1xf32>
    %cst_73 = arith.constant 3.200000e+01 : f32
    %163 = vector.broadcast %cst_73 : f32 to vector<8x1xf32>
    %164 = arith.divf %162, %163 : vector<8x1xf32>
    %165 = vector.broadcast %157 : vector<8x1xf32> to vector<8x32xf32>
    %166 = arith.subf %149, %165 : vector<8x32xf32>
    %cst_74 = arith.constant 9.99999974E-6 : f32
    %167 = vector.broadcast %cst_74 : f32 to vector<8x1xf32>
    %168 = arith.addf %164, %167 : vector<8x1xf32>
    %169 = math.rsqrt %168 : vector<8x1xf32>
    %170 = vector.broadcast %169 : vector<8x1xf32> to vector<8x32xf32>
    %171 = arith.mulf %166, %170 : vector<8x32xf32>
    %172 = vector.broadcast %151 : vector<1x32xf32> to vector<8x32xf32>
    %173 = arith.mulf %171, %172 : vector<8x32xf32>
    %174 = vector.broadcast %153 : vector<1x32xf32> to vector<8x32xf32>
    %175 = arith.addf %173, %174 : vector<8x32xf32>
    %c0_75 = arith.constant 0 : index
    %c0_76 = arith.constant 0 : index
    %176 = vector.load %arg20[%c0_75, %c0_76] : memref<8x32xf32, #tpu.memory_space<vmem>>, vector<8x32xf32>
    tpu.vector_store %arg20[%c0_75, %c0_76], %175 {strides = array<i32>} : memref<8x32xf32, #tpu.memory_space<vmem>>, vector<8x32xf32>,
    %c1_i32 = arith.constant 1 : i32
    %177 = arith.cmpi eq, %arg1, %c1_i32 : i32
    %178 = arith.extui %177 : i1 to i32
    %c0_i32_77 = arith.constant 0 : i32
    %179 = arith.cmpi ne, %178, %c0_i32_77 : i32
    scf.if %179 {
      %c0_78 = arith.constant 0 : index
      %c0_79 = arith.constant 0 : index
      %180 = vector.load %arg17[%c0_78, %c0_79] : memref<1x32xf32, #tpu.memory_space<vmem>>, vector<1x32xf32>
      %c0_80 = arith.constant 0 : index
      %c0_81 = arith.constant 0 : index
      %181 = vector.load %arg18[%c0_80, %c0_81] : memref<1x32xf32, #tpu.memory_space<vmem>>, vector<1x32xf32>
      %cst_82 = arith.constant dense<0.000000e+00> : vector<8xf32>
      %182 = vector.multi_reduction <add>, %175, %cst_82 [1] : vector<8x32xf32> to vector<8xf32>
      %183 = vector.shape_cast %182 : vector<8xf32> to vector<8x1xf32>
      %cst_83 = arith.constant 3.200000e+01 : f32
      %184 = vector.broadcast %cst_83 : f32 to vector<8x1xf32>
      %185 = arith.divf %183, %184 : vector<8x1xf32>
      %186 = vector.broadcast %185 : vector<8x1xf32> to vector<8x32xf32>
      %187 = arith.subf %175, %186 : vector<8x32xf32>
      %188 = arith.mulf %187, %187 : vector<8x32xf32>
      %cst_84 = arith.constant dense<0.000000e+00> : vector<8xf32>
      %189 = vector.multi_reduction <add>, %188, %cst_84 [1] : vector<8x32xf32> to vector<8xf32>
      %190 = vector.shape_cast %189 : vector<8xf32> to vector<8x1xf32>
      %cst_85 = arith.constant 3.200000e+01 : f32
      %191 = vector.broadcast %cst_85 : f32 to vector<8x1xf32>
      %192 = arith.divf %190, %191 : vector<8x1xf32>
      %193 = vector.broadcast %185 : vector<8x1xf32> to vector<8x32xf32>
      %194 = arith.subf %175, %193 : vector<8x32xf32>
      %cst_86 = arith.constant 9.99999974E-6 : f32
      %195 = vector.broadcast %cst_86 : f32 to vector<8x1xf32>
      %196 = arith.addf %192, %195 : vector<8x1xf32>
      %197 = math.rsqrt %196 : vector<8x1xf32>
      %198 = vector.broadcast %197 : vector<8x1xf32> to vector<8x32xf32>
      %199 = arith.mulf %194, %198 : vector<8x32xf32>
      %200 = vector.broadcast %180 : vector<1x32xf32> to vector<8x32xf32>
      %201 = arith.mulf %199, %200 : vector<8x32xf32>
      %202 = vector.broadcast %181 : vector<1x32xf32> to vector<8x32xf32>
      %203 = arith.addf %201, %202 : vector<8x32xf32>
      %c0_87 = arith.constant 0 : index
      %c0_88 = arith.constant 0 : index
      %c0_89 = arith.constant 0 : index
      %204 = vector.load %arg19[%c0_87, %c0_88, %c0_89] : memref<1x8x32xf32, #tpu.memory_space<vmem>>, vector<1x8x32xf32>
      %205 = vector.shape_cast %204 : vector<1x8x32xf32> to vector<8x32xf32>
      %206 = vector.shape_cast %203 : vector<8x32xf32> to vector<1x8x32xf32>
      tpu.vector_store %arg19[%c0_87, %c0_88, %c0_89], %206 {strides = array<i32>} : memref<1x8x32xf32, #tpu.memory_space<vmem>>, vector<1x8x32xf32>,
    } else {
    }
    return
  }
  func.func @transform_0(%arg0: i32, %arg1: i32) -> (i32, i32, i32) {
    %c0_i32 = arith.constant 0 : i32
    %c0_i32_0 = arith.constant 0 : i32
    %c0_i32_1 = arith.constant 0 : i32
    return %arg0, %c0_i32, %c0_i32_0 : i32, i32, i32
  }
  func.func @transform_1(%arg0: i32, %arg1: i32) -> (i32, i32) {
    %c0_i32 = arith.constant 0 : i32
    %c0_i32_0 = arith.constant 0 : i32
    %c0_i32_1 = arith.constant 0 : i32
    return %c0_i32, %c0_i32_0 : i32, i32
  }
  func.func @transform_2(%arg0: i32, %arg1: i32) -> (i32, i32) {
    %c0_i32 = arith.constant 0 : i32
    %c0_i32_0 = arith.constant 0 : i32
    %c0_i32_1 = arith.constant 0 : i32
    return %c0_i32, %c0_i32_0 : i32, i32
  }
  func.func @transform_3(%arg0: i32, %arg1: i32) -> (i32, i32, i32) {
    %c0_i32 = arith.constant 0 : i32
    %c0_i32_0 = arith.constant 0 : i32
    %c0_i32_1 = arith.constant 0 : i32
    return %arg1, %c0_i32, %c0_i32_0 : i32, i32, i32
  }
  func.func @transform_4(%arg0: i32, %arg1: i32) -> (i32, i32, i32) {
    %c0_i32 = arith.constant 0 : i32
    %c0_i32_0 = arith.constant 0 : i32
    %c0_i32_1 = arith.constant 0 : i32
    return %arg1, %c0_i32, %c0_i32_0 : i32, i32, i32
  }
  func.func @transform_5(%arg0: i32, %arg1: i32) -> (i32, i32, i32) {
    %c0_i32 = arith.constant 0 : i32
    %c0_i32_0 = arith.constant 0 : i32
    %c0_i32_1 = arith.constant 0 : i32
    return %arg1, %c0_i32, %c0_i32_0 : i32, i32, i32
  }
  func.func @transform_6(%arg0: i32, %arg1: i32) -> (i32, i32, i32) {
    %c0_i32 = arith.constant 0 : i32
    %c0_i32_0 = arith.constant 0 : i32
    %c0_i32_1 = arith.constant 0 : i32
    return %arg1, %c0_i32, %c0_i32_0 : i32, i32, i32
  }
  func.func @transform_7(%arg0: i32, %arg1: i32) -> (i32, i32, i32) {
    %c0_i32 = arith.constant 0 : i32
    %c0_i32_0 = arith.constant 0 : i32
    %c0_i32_1 = arith.constant 0 : i32
    return %arg1, %c0_i32, %c0_i32_0 : i32, i32, i32
  }
  func.func @transform_8(%arg0: i32, %arg1: i32) -> (i32, i32, i32) {
    %c0_i32 = arith.constant 0 : i32
    %c0_i32_0 = arith.constant 0 : i32
    %c0_i32_1 = arith.constant 0 : i32
    return %arg1, %c0_i32, %c0_i32_0 : i32, i32, i32
  }
  func.func @transform_9(%arg0: i32, %arg1: i32) -> (i32, i32, i32) {
    %c0_i32 = arith.constant 0 : i32
    %c0_i32_0 = arith.constant 0 : i32
    %c0_i32_1 = arith.constant 0 : i32
    return %arg1, %c0_i32, %c0_i32_0 : i32, i32, i32
  }
  func.func @transform_10(%arg0: i32, %arg1: i32) -> (i32, i32, i32) {
    %c0_i32 = arith.constant 0 : i32
    %c0_i32_0 = arith.constant 0 : i32
    %c0_i32_1 = arith.constant 0 : i32
    return %arg1, %c0_i32, %c0_i32_0 : i32, i32, i32
  }
  func.func @transform_11(%arg0: i32, %arg1: i32) -> (i32, i32, i32) {
    %c0_i32 = arith.constant 0 : i32
    %c0_i32_0 = arith.constant 0 : i32
    %c0_i32_1 = arith.constant 0 : i32
    return %arg1, %c0_i32, %c0_i32_0 : i32, i32, i32
  }
  func.func @transform_12(%arg0: i32, %arg1: i32) -> (i32, i32, i32) {
    %c0_i32 = arith.constant 0 : i32
    %c0_i32_0 = arith.constant 0 : i32
    %c0_i32_1 = arith.constant 0 : i32
    return %arg1, %c0_i32, %c0_i32_0 : i32, i32, i32
  }
  func.func @transform_13(%arg0: i32, %arg1: i32) -> (i32, i32, i32) {
    %c0_i32 = arith.constant 0 : i32
    %c0_i32_0 = arith.constant 0 : i32
    %c0_i32_1 = arith.constant 0 : i32
    return %arg1, %c0_i32, %c0_i32_0 : i32, i32, i32
  }
  func.func @transform_14(%arg0: i32, %arg1: i32) -> (i32, i32, i32) {
    %c0_i32 = arith.constant 0 : i32
    %c0_i32_0 = arith.constant 0 : i32
    %c0_i32_1 = arith.constant 0 : i32
    return %arg1, %c0_i32, %c0_i32_0 : i32, i32, i32
  }
  func.func @transform_15(%arg0: i32, %arg1: i32) -> (i32, i32) {
    %c0_i32 = arith.constant 0 : i32
    %c0_i32_0 = arith.constant 0 : i32
    %c0_i32_1 = arith.constant 0 : i32
    return %c0_i32, %c0_i32_0 : i32, i32
  }
  func.func @transform_16(%arg0: i32, %arg1: i32) -> (i32, i32) {
    %c0_i32 = arith.constant 0 : i32
    %c0_i32_0 = arith.constant 0 : i32
    %c0_i32_1 = arith.constant 0 : i32
    return %c0_i32, %c0_i32_0 : i32, i32
  }
  func.func @transform_17(%arg0: i32, %arg1: i32) -> (i32, i32, i32) {
    %c0_i32 = arith.constant 0 : i32
    %c0_i32_0 = arith.constant 0 : i32
    %c0_i32_1 = arith.constant 0 : i32
    return %arg0, %c0_i32, %c0_i32_0 : i32, i32, i32
  }
}

module attributes {stable_mosaic.version = 11 : i64} {
  func.func @_decoder_stack_kernel(%arg0: i32, %arg1: i32, %arg2: memref<1x8x3xf32, #tpu.memory_space<vmem>>, %arg3: memref<3x32xf32, #tpu.memory_space<vmem>>, %arg4: memref<8x32xf32, #tpu.memory_space<vmem>>, %arg5: memref<1x8x32xf32, #tpu.memory_space<vmem>>, %arg6: memref<1x1x32xf32, #tpu.memory_space<vmem>>, %arg7: memref<8x8xf32, #tpu.memory_space<vmem>>, %arg8: memref<1x32x96xbf16, #tpu.memory_space<vmem>>, %arg9: memref<1x1x96xf32, #tpu.memory_space<vmem>>, %arg10: memref<1x32x32xbf16, #tpu.memory_space<vmem>>, %arg11: memref<1x1x32xf32, #tpu.memory_space<vmem>>, %arg12: memref<1x1x32xf32, #tpu.memory_space<vmem>>, %arg13: memref<1x1x32xf32, #tpu.memory_space<vmem>>, %arg14: memref<1x32x32xbf16, #tpu.memory_space<vmem>>, %arg15: memref<1x1x32xf32, #tpu.memory_space<vmem>>, %arg16: memref<1x32x32xbf16, #tpu.memory_space<vmem>>, %arg17: memref<1x1x32xf32, #tpu.memory_space<vmem>>, %arg18: memref<1x1x32xf32, #tpu.memory_space<vmem>>, %arg19: memref<1x1x32xf32, #tpu.memory_space<vmem>>, %arg20: memref<1x32x32xbf16, #tpu.memory_space<vmem>>, %arg21: memref<1x1x32xf32, #tpu.memory_space<vmem>>, %arg22: memref<1x32x64xbf16, #tpu.memory_space<vmem>>, %arg23: memref<1x1x64xf32, #tpu.memory_space<vmem>>, %arg24: memref<1x32x32xbf16, #tpu.memory_space<vmem>>, %arg25: memref<1x1x32xf32, #tpu.memory_space<vmem>>, %arg26: memref<1x1x32xf32, #tpu.memory_space<vmem>>, %arg27: memref<1x1x32xf32, #tpu.memory_space<vmem>>, %arg28: memref<1x32x2048xbf16, #tpu.memory_space<vmem>>, %arg29: memref<1x1x2048xf32, #tpu.memory_space<vmem>>, %arg30: memref<1x2048x32xbf16, #tpu.memory_space<vmem>>, %arg31: memref<1x1x32xf32, #tpu.memory_space<vmem>>, %arg32: memref<1x1x32xf32, #tpu.memory_space<vmem>>, %arg33: memref<1x1x32xf32, #tpu.memory_space<vmem>>, %arg34: memref<1x32xf32, #tpu.memory_space<vmem>>, %arg35: memref<1x32xf32, #tpu.memory_space<vmem>>, %arg36: memref<32x128xbf16, #tpu.memory_space<vmem>>, %arg37: memref<1x128xf32, #tpu.memory_space<vmem>>, %arg38: memref<1x8x128xf32, #tpu.memory_space<vmem>>, %arg39: memref<8x32xf32, #tpu.memory_space<vmem>>) attributes {dimension_semantics = [#tpu.dimension_semantics<parallel>, #tpu.dimension_semantics<arbitrary>], iteration_bounds = array<i64: 2, 2>, scalar_prefetch = 0 : i64, scratch_operands = 1 : i64, tpu.core_type = #tpu.core_type<tc>, window_params = [{transform_indices = @transform_0, window_bounds = array<i64: 1, 8, 3>}, {pipeline_mode = #tpu.pipeline_mode<synchronous>, transform_indices = @transform_1, window_bounds = array<i64: 3, 32>}, {pipeline_mode = #tpu.pipeline_mode<synchronous>, transform_indices = @transform_2, window_bounds = array<i64: 8, 32>}, {transform_indices = @transform_3, window_bounds = array<i64: 1, 8, 32>}, {transform_indices = @transform_4, window_bounds = array<i64: 1, 1, 32>}, {pipeline_mode = #tpu.pipeline_mode<synchronous>, transform_indices = @transform_5, window_bounds = array<i64: 8, 8>}, {transform_indices = @transform_6, window_bounds = array<i64: 1, 32, 96>}, {transform_indices = @transform_7, window_bounds = array<i64: 1, 1, 96>}, {transform_indices = @transform_8, window_bounds = array<i64: 1, 32, 32>}, {transform_indices = @transform_9, window_bounds = array<i64: 1, 1, 32>}, {transform_indices = @transform_10, window_bounds = array<i64: 1, 1, 32>}, {transform_indices = @transform_11, window_bounds = array<i64: 1, 1, 32>}, {transform_indices = @transform_12, window_bounds = array<i64: 1, 32, 32>}, {transform_indices = @transform_13, window_bounds = array<i64: 1, 1, 32>}, {transform_indices = @transform_14, window_bounds = array<i64: 1, 32, 32>}, {transform_indices = @transform_15, window_bounds = array<i64: 1, 1, 32>}, {transform_indices = @transform_16, window_bounds = array<i64: 1, 1, 32>}, {transform_indices = @transform_17, window_bounds = array<i64: 1, 1, 32>}, {transform_indices = @transform_18, window_bounds = array<i64: 1, 32, 32>}, {transform_indices = @transform_19, window_bounds = array<i64: 1, 1, 32>}, {transform_indices = @transform_20, window_bounds = array<i64: 1, 32, 64>}, {transform_indices = @transform_21, window_bounds = array<i64: 1, 1, 64>}, {transform_indices = @transform_22, window_bounds = array<i64: 1, 32, 32>}, {transform_indices = @transform_23, window_bounds = array<i64: 1, 1, 32>}, {transform_indices = @transform_24, window_bounds = array<i64: 1, 1, 32>}, {transform_indices = @transform_25, window_bounds = array<i64: 1, 1, 32>}, {transform_indices = @transform_26, window_bounds = array<i64: 1, 32, 2048>}, {transform_indices = @transform_27, window_bounds = array<i64: 1, 1, 2048>}, {transform_indices = @transform_28, window_bounds = array<i64: 1, 2048, 32>}, {transform_indices = @transform_29, window_bounds = array<i64: 1, 1, 32>}, {transform_indices = @transform_30, window_bounds = array<i64: 1, 1, 32>}, {transform_indices = @transform_31, window_bounds = array<i64: 1, 1, 32>}, {pipeline_mode = #tpu.pipeline_mode<synchronous>, transform_indices = @transform_32, window_bounds = array<i64: 1, 32>}, {pipeline_mode = #tpu.pipeline_mode<synchronous>, transform_indices = @transform_33, window_bounds = array<i64: 1, 32>}, {pipeline_mode = #tpu.pipeline_mode<synchronous>, transform_indices = @transform_34, window_bounds = array<i64: 32, 128>}, {pipeline_mode = #tpu.pipeline_mode<synchronous>, transform_indices = @transform_35, window_bounds = array<i64: 1, 128>}, {transform_indices = @transform_36, window_bounds = array<i64: 1, 8, 128>}]} {
    %c0_i32 = arith.constant 0 : i32
    %0 = arith.cmpi eq, %arg1, %c0_i32 : i32
    %1 = arith.extui %0 : i1 to i32
    %c0_i32_0 = arith.constant 0 : i32
    %2 = arith.cmpi ne, %1, %c0_i32_0 : i32
    scf.if %2 {
      %c0_166 = arith.constant 0 : index
      %c0_167 = arith.constant 0 : index
      %c0_168 = arith.constant 0 : index
      %366 = vector.load %arg2[%c0_166, %c0_167, %c0_168] : memref<1x8x3xf32, #tpu.memory_space<vmem>>, vector<1x8x3xf32>
      %367 = vector.shape_cast %366 : vector<1x8x3xf32> to vector<8x3xf32>
      %c0_169 = arith.constant 0 : index
      %c0_170 = arith.constant 0 : index
      %368 = vector.load %arg3[%c0_169, %c0_170] : memref<3x32xf32, #tpu.memory_space<vmem>>, vector<3x32xf32>
      %cst_171 = arith.constant dense<0.000000e+00> : vector<8x32xf32>
      %369 = tpu.matmul %367, %368, %cst_171 {dimension_numbers = #tpu.dot_dimension_numbers<[1], [0], [0], [1], [0, 0, 1, 1], [], []>} : vector<8x3xf32>, vector<3x32xf32>, vector<8x32xf32> -> vector<8x32xf32>
      %c0_172 = arith.constant 0 : index
      %c0_173 = arith.constant 0 : index
      %370 = vector.load %arg4[%c0_172, %c0_173] : memref<8x32xf32, #tpu.memory_space<vmem>>, vector<8x32xf32>
      %371 = arith.addf %369, %370 : vector<8x32xf32>
      %c0_174 = arith.constant 0 : index
      %c0_175 = arith.constant 0 : index
      %372 = vector.load %arg39[%c0_174, %c0_175] : memref<8x32xf32, #tpu.memory_space<vmem>>, vector<8x32xf32>
      tpu.vector_store %arg39[%c0_174, %c0_175], %371 {strides = array<i32>} : memref<8x32xf32, #tpu.memory_space<vmem>>, vector<8x32xf32>,
    } else {
    }
    %c0 = arith.constant 0 : index
    %c0_1 = arith.constant 0 : index
    %3 = vector.load %arg39[%c0, %c0_1] : memref<8x32xf32, #tpu.memory_space<vmem>>, vector<8x32xf32>
    %c0_2 = arith.constant 0 : index
    %c0_3 = arith.constant 0 : index
    %c0_4 = arith.constant 0 : index
    %4 = vector.load %arg5[%c0_2, %c0_3, %c0_4] : memref<1x8x32xf32, #tpu.memory_space<vmem>>, vector<1x8x32xf32>
    %5 = vector.shape_cast %4 : vector<1x8x32xf32> to vector<8x32xf32>
    %c0_5 = arith.constant 0 : index
    %c0_6 = arith.constant 0 : index
    %c0_7 = arith.constant 0 : index
    %6 = vector.load %arg8[%c0_5, %c0_6, %c0_7] : memref<1x32x96xbf16, #tpu.memory_space<vmem>>, vector<1x32x96xbf16>
    %7 = vector.shape_cast %6 : vector<1x32x96xbf16> to vector<32x96xbf16>
    %c0_8 = arith.constant 0 : index
    %c0_9 = arith.constant 0 : index
    %c0_10 = arith.constant 0 : index
    %8 = vector.load %arg9[%c0_8, %c0_9, %c0_10] : memref<1x1x96xf32, #tpu.memory_space<vmem>>, vector<1x1x96xf32>
    %9 = vector.shape_cast %8 : vector<1x1x96xf32> to vector<1x96xf32>
    %c0_11 = arith.constant 0 : index
    %c0_12 = arith.constant 0 : index
    %c0_13 = arith.constant 0 : index
    %10 = vector.load %arg10[%c0_11, %c0_12, %c0_13] : memref<1x32x32xbf16, #tpu.memory_space<vmem>>, vector<1x32x32xbf16>
    %11 = vector.shape_cast %10 : vector<1x32x32xbf16> to vector<32x32xbf16>
    %c0_14 = arith.constant 0 : index
    %c0_15 = arith.constant 0 : index
    %c0_16 = arith.constant 0 : index
    %12 = vector.load %arg11[%c0_14, %c0_15, %c0_16] : memref<1x1x32xf32, #tpu.memory_space<vmem>>, vector<1x1x32xf32>
    %13 = vector.shape_cast %12 : vector<1x1x32xf32> to vector<1x32xf32>
    %c0_17 = arith.constant 0 : index
    %c0_18 = arith.constant 0 : index
    %14 = vector.load %arg7[%c0_17, %c0_18] : memref<8x8xf32, #tpu.memory_space<vmem>>, vector<8x8xf32>
    %15 = arith.truncf %3 : vector<8x32xf32> to vector<8x32xbf16>
    %cst = arith.constant dense<0.000000e+00> : vector<8x96xf32>
    %16 = tpu.matmul %15, %7, %cst {dimension_numbers = #tpu.dot_dimension_numbers<[1], [0], [0], [1], [0, 0, 1, 1], [], []>} : vector<8x32xbf16>, vector<32x96xbf16>, vector<8x96xf32> -> vector<8x96xf32>
    %17 = vector.broadcast %9 : vector<1x96xf32> to vector<8x96xf32>
    %18 = arith.addf %16, %17 : vector<8x96xf32>
    %19 = vector.extract_strided_slice %18 {offsets = [0, 0], sizes = [8, 32], strides = [1, 1]} : vector<8x96xf32> to vector<8x32xf32>
    %20 = vector.extract_strided_slice %18 {offsets = [0, 32], sizes = [8, 32], strides = [1, 1]} : vector<8x96xf32> to vector<8x32xf32>
    %21 = vector.extract_strided_slice %18 {offsets = [0, 64], sizes = [8, 32], strides = [1, 1]} : vector<8x96xf32> to vector<8x32xf32>
    %22 = vector.extract_strided_slice %19 {offsets = [0, 0], sizes = [8, 8], strides = [1, 1]} : vector<8x32xf32> to vector<8x8xf32>
    %23 = vector.extract_strided_slice %20 {offsets = [0, 0], sizes = [8, 8], strides = [1, 1]} : vector<8x32xf32> to vector<8x8xf32>
    %24 = vector.extract_strided_slice %21 {offsets = [0, 0], sizes = [8, 8], strides = [1, 1]} : vector<8x32xf32> to vector<8x8xf32>
    %25 = tpu.transpose %23, [1, 0] : vector<8x8xf32> -> vector<8x8xf32>
    %cst_19 = arith.constant dense<0.000000e+00> : vector<8x8xf32>
    %26 = tpu.matmul %22, %25, %cst_19 {dimension_numbers = #tpu.dot_dimension_numbers<[1], [0], [0], [1], [0, 0, 1, 1], [], []>} : vector<8x8xf32>, vector<8x8xf32>, vector<8x8xf32> -> vector<8x8xf32>
    %cst_20 = arith.constant 0.353553385 : f32
    %27 = vector.broadcast %cst_20 : f32 to vector<8x8xf32>
    %28 = arith.mulf %26, %27 : vector<8x8xf32>
    %29 = arith.addf %28, %14 : vector<8x8xf32>
    %cst_21 = arith.constant dense<0xFF800000> : vector<8xf32>
    %30 = vector.multi_reduction <maximumf>, %29, %cst_21 [1] : vector<8x8xf32> to vector<8xf32>
    %31 = vector.shape_cast %30 : vector<8xf32> to vector<8x1xf32>
    %32 = vector.broadcast %31 : vector<8x1xf32> to vector<8x8xf32>
    %33 = arith.subf %29, %32 : vector<8x8xf32>
    %34 = math.exp %33 : vector<8x8xf32>
    %cst_22 = arith.constant dense<0.000000e+00> : vector<8xf32>
    %35 = vector.multi_reduction <add>, %34, %cst_22 [1] : vector<8x8xf32> to vector<8xf32>
    %36 = vector.shape_cast %35 : vector<8xf32> to vector<8x1xf32>
    %37 = vector.broadcast %36 : vector<8x1xf32> to vector<8x8xf32>
    %38 = arith.divf %34, %37 : vector<8x8xf32>
    %cst_23 = arith.constant dense<0.000000e+00> : vector<8x8xf32>
    %39 = tpu.matmul %38, %24, %cst_23 {dimension_numbers = #tpu.dot_dimension_numbers<[1], [0], [0], [1], [0, 0, 1, 1], [], []>} : vector<8x8xf32>, vector<8x8xf32>, vector<8x8xf32> -> vector<8x8xf32>
    %40 = arith.truncf %39 : vector<8x8xf32> to vector<8x8xbf16>
    %41 = vector.extract_strided_slice %11 {offsets = [0, 0], sizes = [8, 32], strides = [1, 1]} : vector<32x32xbf16> to vector<8x32xbf16>
    %cst_24 = arith.constant dense<0.000000e+00> : vector<8x32xf32>
    %42 = tpu.matmul %40, %41, %cst_24 {dimension_numbers = #tpu.dot_dimension_numbers<[1], [0], [0], [1], [0, 0, 1, 1], [], []>} : vector<8x8xbf16>, vector<8x32xbf16>, vector<8x32xf32> -> vector<8x32xf32>
    %43 = vector.extract_strided_slice %19 {offsets = [0, 8], sizes = [8, 8], strides = [1, 1]} : vector<8x32xf32> to vector<8x8xf32>
    %44 = vector.extract_strided_slice %20 {offsets = [0, 8], sizes = [8, 8], strides = [1, 1]} : vector<8x32xf32> to vector<8x8xf32>
    %45 = vector.extract_strided_slice %21 {offsets = [0, 8], sizes = [8, 8], strides = [1, 1]} : vector<8x32xf32> to vector<8x8xf32>
    %46 = tpu.transpose %44, [1, 0] : vector<8x8xf32> -> vector<8x8xf32>
    %cst_25 = arith.constant dense<0.000000e+00> : vector<8x8xf32>
    %47 = tpu.matmul %43, %46, %cst_25 {dimension_numbers = #tpu.dot_dimension_numbers<[1], [0], [0], [1], [0, 0, 1, 1], [], []>} : vector<8x8xf32>, vector<8x8xf32>, vector<8x8xf32> -> vector<8x8xf32>
    %cst_26 = arith.constant 0.353553385 : f32
    %48 = vector.broadcast %cst_26 : f32 to vector<8x8xf32>
    %49 = arith.mulf %47, %48 : vector<8x8xf32>
    %50 = arith.addf %49, %14 : vector<8x8xf32>
    %cst_27 = arith.constant dense<0xFF800000> : vector<8xf32>
    %51 = vector.multi_reduction <maximumf>, %50, %cst_27 [1] : vector<8x8xf32> to vector<8xf32>
    %52 = vector.shape_cast %51 : vector<8xf32> to vector<8x1xf32>
    %53 = vector.broadcast %52 : vector<8x1xf32> to vector<8x8xf32>
    %54 = arith.subf %50, %53 : vector<8x8xf32>
    %55 = math.exp %54 : vector<8x8xf32>
    %cst_28 = arith.constant dense<0.000000e+00> : vector<8xf32>
    %56 = vector.multi_reduction <add>, %55, %cst_28 [1] : vector<8x8xf32> to vector<8xf32>
    %57 = vector.shape_cast %56 : vector<8xf32> to vector<8x1xf32>
    %58 = vector.broadcast %57 : vector<8x1xf32> to vector<8x8xf32>
    %59 = arith.divf %55, %58 : vector<8x8xf32>
    %cst_29 = arith.constant dense<0.000000e+00> : vector<8x8xf32>
    %60 = tpu.matmul %59, %45, %cst_29 {dimension_numbers = #tpu.dot_dimension_numbers<[1], [0], [0], [1], [0, 0, 1, 1], [], []>} : vector<8x8xf32>, vector<8x8xf32>, vector<8x8xf32> -> vector<8x8xf32>
    %61 = arith.truncf %60 : vector<8x8xf32> to vector<8x8xbf16>
    %62 = vector.extract_strided_slice %11 {offsets = [8, 0], sizes = [8, 32], strides = [1, 1]} : vector<32x32xbf16> to vector<8x32xbf16>
    %cst_30 = arith.constant dense<0.000000e+00> : vector<8x32xf32>
    %63 = tpu.matmul %61, %62, %cst_30 {dimension_numbers = #tpu.dot_dimension_numbers<[1], [0], [0], [1], [0, 0, 1, 1], [], []>} : vector<8x8xbf16>, vector<8x32xbf16>, vector<8x32xf32> -> vector<8x32xf32>
    %64 = arith.addf %42, %63 : vector<8x32xf32>
    %65 = vector.extract_strided_slice %19 {offsets = [0, 16], sizes = [8, 8], strides = [1, 1]} : vector<8x32xf32> to vector<8x8xf32>
    %66 = vector.extract_strided_slice %20 {offsets = [0, 16], sizes = [8, 8], strides = [1, 1]} : vector<8x32xf32> to vector<8x8xf32>
    %67 = vector.extract_strided_slice %21 {offsets = [0, 16], sizes = [8, 8], strides = [1, 1]} : vector<8x32xf32> to vector<8x8xf32>
    %68 = tpu.transpose %66, [1, 0] : vector<8x8xf32> -> vector<8x8xf32>
    %cst_31 = arith.constant dense<0.000000e+00> : vector<8x8xf32>
    %69 = tpu.matmul %65, %68, %cst_31 {dimension_numbers = #tpu.dot_dimension_numbers<[1], [0], [0], [1], [0, 0, 1, 1], [], []>} : vector<8x8xf32>, vector<8x8xf32>, vector<8x8xf32> -> vector<8x8xf32>
    %cst_32 = arith.constant 0.353553385 : f32
    %70 = vector.broadcast %cst_32 : f32 to vector<8x8xf32>
    %71 = arith.mulf %69, %70 : vector<8x8xf32>
    %72 = arith.addf %71, %14 : vector<8x8xf32>
    %cst_33 = arith.constant dense<0xFF800000> : vector<8xf32>
    %73 = vector.multi_reduction <maximumf>, %72, %cst_33 [1] : vector<8x8xf32> to vector<8xf32>
    %74 = vector.shape_cast %73 : vector<8xf32> to vector<8x1xf32>
    %75 = vector.broadcast %74 : vector<8x1xf32> to vector<8x8xf32>
    %76 = arith.subf %72, %75 : vector<8x8xf32>
    %77 = math.exp %76 : vector<8x8xf32>
    %cst_34 = arith.constant dense<0.000000e+00> : vector<8xf32>
    %78 = vector.multi_reduction <add>, %77, %cst_34 [1] : vector<8x8xf32> to vector<8xf32>
    %79 = vector.shape_cast %78 : vector<8xf32> to vector<8x1xf32>
    %80 = vector.broadcast %79 : vector<8x1xf32> to vector<8x8xf32>
    %81 = arith.divf %77, %80 : vector<8x8xf32>
    %cst_35 = arith.constant dense<0.000000e+00> : vector<8x8xf32>
    %82 = tpu.matmul %81, %67, %cst_35 {dimension_numbers = #tpu.dot_dimension_numbers<[1], [0], [0], [1], [0, 0, 1, 1], [], []>} : vector<8x8xf32>, vector<8x8xf32>, vector<8x8xf32> -> vector<8x8xf32>
    %83 = arith.truncf %82 : vector<8x8xf32> to vector<8x8xbf16>
    %84 = vector.extract_strided_slice %11 {offsets = [16, 0], sizes = [8, 32], strides = [1, 1]} : vector<32x32xbf16> to vector<8x32xbf16>
    %cst_36 = arith.constant dense<0.000000e+00> : vector<8x32xf32>
    %85 = tpu.matmul %83, %84, %cst_36 {dimension_numbers = #tpu.dot_dimension_numbers<[1], [0], [0], [1], [0, 0, 1, 1], [], []>} : vector<8x8xbf16>, vector<8x32xbf16>, vector<8x32xf32> -> vector<8x32xf32>
    %86 = arith.addf %64, %85 : vector<8x32xf32>
    %87 = vector.extract_strided_slice %19 {offsets = [0, 24], sizes = [8, 8], strides = [1, 1]} : vector<8x32xf32> to vector<8x8xf32>
    %88 = vector.extract_strided_slice %20 {offsets = [0, 24], sizes = [8, 8], strides = [1, 1]} : vector<8x32xf32> to vector<8x8xf32>
    %89 = vector.extract_strided_slice %21 {offsets = [0, 24], sizes = [8, 8], strides = [1, 1]} : vector<8x32xf32> to vector<8x8xf32>
    %90 = tpu.transpose %88, [1, 0] : vector<8x8xf32> -> vector<8x8xf32>
    %cst_37 = arith.constant dense<0.000000e+00> : vector<8x8xf32>
    %91 = tpu.matmul %87, %90, %cst_37 {dimension_numbers = #tpu.dot_dimension_numbers<[1], [0], [0], [1], [0, 0, 1, 1], [], []>} : vector<8x8xf32>, vector<8x8xf32>, vector<8x8xf32> -> vector<8x8xf32>
    %cst_38 = arith.constant 0.353553385 : f32
    %92 = vector.broadcast %cst_38 : f32 to vector<8x8xf32>
    %93 = arith.mulf %91, %92 : vector<8x8xf32>
    %94 = arith.addf %93, %14 : vector<8x8xf32>
    %cst_39 = arith.constant dense<0xFF800000> : vector<8xf32>
    %95 = vector.multi_reduction <maximumf>, %94, %cst_39 [1] : vector<8x8xf32> to vector<8xf32>
    %96 = vector.shape_cast %95 : vector<8xf32> to vector<8x1xf32>
    %97 = vector.broadcast %96 : vector<8x1xf32> to vector<8x8xf32>
    %98 = arith.subf %94, %97 : vector<8x8xf32>
    %99 = math.exp %98 : vector<8x8xf32>
    %cst_40 = arith.constant dense<0.000000e+00> : vector<8xf32>
    %100 = vector.multi_reduction <add>, %99, %cst_40 [1] : vector<8x8xf32> to vector<8xf32>
    %101 = vector.shape_cast %100 : vector<8xf32> to vector<8x1xf32>
    %102 = vector.broadcast %101 : vector<8x1xf32> to vector<8x8xf32>
    %103 = arith.divf %99, %102 : vector<8x8xf32>
    %cst_41 = arith.constant dense<0.000000e+00> : vector<8x8xf32>
    %104 = tpu.matmul %103, %89, %cst_41 {dimension_numbers = #tpu.dot_dimension_numbers<[1], [0], [0], [1], [0, 0, 1, 1], [], []>} : vector<8x8xf32>, vector<8x8xf32>, vector<8x8xf32> -> vector<8x8xf32>
    %105 = arith.truncf %104 : vector<8x8xf32> to vector<8x8xbf16>
    %106 = vector.extract_strided_slice %11 {offsets = [24, 0], sizes = [8, 32], strides = [1, 1]} : vector<32x32xbf16> to vector<8x32xbf16>
    %cst_42 = arith.constant dense<0.000000e+00> : vector<8x32xf32>
    %107 = tpu.matmul %105, %106, %cst_42 {dimension_numbers = #tpu.dot_dimension_numbers<[1], [0], [0], [1], [0, 0, 1, 1], [], []>} : vector<8x8xbf16>, vector<8x32xbf16>, vector<8x32xf32> -> vector<8x32xf32>
    %108 = arith.addf %86, %107 : vector<8x32xf32>
    %109 = vector.broadcast %13 : vector<1x32xf32> to vector<8x32xf32>
    %110 = arith.addf %108, %109 : vector<8x32xf32>
    %111 = arith.addf %3, %110 : vector<8x32xf32>
    %c0_43 = arith.constant 0 : index
    %c0_44 = arith.constant 0 : index
    %c0_45 = arith.constant 0 : index
    %112 = vector.load %arg12[%c0_43, %c0_44, %c0_45] : memref<1x1x32xf32, #tpu.memory_space<vmem>>, vector<1x1x32xf32>
    %113 = vector.shape_cast %112 : vector<1x1x32xf32> to vector<1x32xf32>
    %c0_46 = arith.constant 0 : index
    %c0_47 = arith.constant 0 : index
    %c0_48 = arith.constant 0 : index
    %114 = vector.load %arg13[%c0_46, %c0_47, %c0_48] : memref<1x1x32xf32, #tpu.memory_space<vmem>>, vector<1x1x32xf32>
    %115 = vector.shape_cast %114 : vector<1x1x32xf32> to vector<1x32xf32>
    %cst_49 = arith.constant dense<0.000000e+00> : vector<8xf32>
    %116 = vector.multi_reduction <add>, %111, %cst_49 [1] : vector<8x32xf32> to vector<8xf32>
    %117 = vector.shape_cast %116 : vector<8xf32> to vector<8x1xf32>
    %cst_50 = arith.constant 3.200000e+01 : f32
    %118 = vector.broadcast %cst_50 : f32 to vector<8x1xf32>
    %119 = arith.divf %117, %118 : vector<8x1xf32>
    %120 = vector.broadcast %119 : vector<8x1xf32> to vector<8x32xf32>
    %121 = arith.subf %111, %120 : vector<8x32xf32>
    %122 = arith.mulf %121, %121 : vector<8x32xf32>
    %cst_51 = arith.constant dense<0.000000e+00> : vector<8xf32>
    %123 = vector.multi_reduction <add>, %122, %cst_51 [1] : vector<8x32xf32> to vector<8xf32>
    %124 = vector.shape_cast %123 : vector<8xf32> to vector<8x1xf32>
    %cst_52 = arith.constant 3.200000e+01 : f32
    %125 = vector.broadcast %cst_52 : f32 to vector<8x1xf32>
    %126 = arith.divf %124, %125 : vector<8x1xf32>
    %127 = vector.broadcast %119 : vector<8x1xf32> to vector<8x32xf32>
    %128 = arith.subf %111, %127 : vector<8x32xf32>
    %cst_53 = arith.constant 9.99999974E-6 : f32
    %129 = vector.broadcast %cst_53 : f32 to vector<8x1xf32>
    %130 = arith.addf %126, %129 : vector<8x1xf32>
    %131 = math.rsqrt %130 : vector<8x1xf32>
    %132 = vector.broadcast %131 : vector<8x1xf32> to vector<8x32xf32>
    %133 = arith.mulf %128, %132 : vector<8x32xf32>
    %134 = vector.broadcast %113 : vector<1x32xf32> to vector<8x32xf32>
    %135 = arith.mulf %133, %134 : vector<8x32xf32>
    %136 = vector.broadcast %115 : vector<1x32xf32> to vector<8x32xf32>
    %137 = arith.addf %135, %136 : vector<8x32xf32>
    %c0_54 = arith.constant 0 : index
    %c0_55 = arith.constant 0 : index
    %c0_56 = arith.constant 0 : index
    %138 = vector.load %arg6[%c0_54, %c0_55, %c0_56] : memref<1x1x32xf32, #tpu.memory_space<vmem>>, vector<1x1x32xf32>
    %139 = vector.shape_cast %138 : vector<1x1x32xf32> to vector<1x32xf32>
    %140 = arith.truncf %139 : vector<1x32xf32> to vector<1x32xbf16>
    %c0_57 = arith.constant 0 : index
    %c0_58 = arith.constant 0 : index
    %c0_59 = arith.constant 0 : index
    %141 = vector.load %arg14[%c0_57, %c0_58, %c0_59] : memref<1x32x32xbf16, #tpu.memory_space<vmem>>, vector<1x32x32xbf16>
    %142 = vector.shape_cast %141 : vector<1x32x32xbf16> to vector<32x32xbf16>
    %cst_60 = arith.constant dense<0.000000e+00> : vector<1x32xf32>
    %143 = tpu.matmul %140, %142, %cst_60 {dimension_numbers = #tpu.dot_dimension_numbers<[1], [0], [0], [1], [0, 0, 1, 1], [], []>} : vector<1x32xbf16>, vector<32x32xbf16>, vector<1x32xf32> -> vector<1x32xf32>
    %c0_61 = arith.constant 0 : index
    %c0_62 = arith.constant 0 : index
    %c0_63 = arith.constant 0 : index
    %144 = vector.load %arg15[%c0_61, %c0_62, %c0_63] : memref<1x1x32xf32, #tpu.memory_space<vmem>>, vector<1x1x32xf32>
    %145 = vector.shape_cast %144 : vector<1x1x32xf32> to vector<1x32xf32>
    %146 = arith.addf %143, %145 : vector<1x32xf32>
    %147 = arith.truncf %146 : vector<1x32xf32> to vector<1x32xbf16>
    %c0_64 = arith.constant 0 : index
    %c0_65 = arith.constant 0 : index
    %c0_66 = arith.constant 0 : index
    %148 = vector.load %arg16[%c0_64, %c0_65, %c0_66] : memref<1x32x32xbf16, #tpu.memory_space<vmem>>, vector<1x32x32xbf16>
    %149 = vector.shape_cast %148 : vector<1x32x32xbf16> to vector<32x32xbf16>
    %cst_67 = arith.constant dense<0.000000e+00> : vector<1x32xf32>
    %150 = tpu.matmul %147, %149, %cst_67 {dimension_numbers = #tpu.dot_dimension_numbers<[1], [0], [0], [1], [0, 0, 1, 1], [], []>} : vector<1x32xbf16>, vector<32x32xbf16>, vector<1x32xf32> -> vector<1x32xf32>
    %c0_68 = arith.constant 0 : index
    %c0_69 = arith.constant 0 : index
    %c0_70 = arith.constant 0 : index
    %151 = vector.load %arg17[%c0_68, %c0_69, %c0_70] : memref<1x1x32xf32, #tpu.memory_space<vmem>>, vector<1x1x32xf32>
    %152 = vector.shape_cast %151 : vector<1x1x32xf32> to vector<1x32xf32>
    %153 = arith.addf %150, %152 : vector<1x32xf32>
    %154 = vector.shape_cast %153 : vector<1x32xf32> to vector<1x32xf32>
    %155 = vector.broadcast %154 : vector<1x32xf32> to vector<8x32xf32>
    %156 = arith.addf %137, %155 : vector<8x32xf32>
    %c0_71 = arith.constant 0 : index
    %c0_72 = arith.constant 0 : index
    %c0_73 = arith.constant 0 : index
    %157 = vector.load %arg18[%c0_71, %c0_72, %c0_73] : memref<1x1x32xf32, #tpu.memory_space<vmem>>, vector<1x1x32xf32>
    %158 = vector.shape_cast %157 : vector<1x1x32xf32> to vector<1x32xf32>
    %c0_74 = arith.constant 0 : index
    %c0_75 = arith.constant 0 : index
    %c0_76 = arith.constant 0 : index
    %159 = vector.load %arg19[%c0_74, %c0_75, %c0_76] : memref<1x1x32xf32, #tpu.memory_space<vmem>>, vector<1x1x32xf32>
    %160 = vector.shape_cast %159 : vector<1x1x32xf32> to vector<1x32xf32>
    %cst_77 = arith.constant dense<0.000000e+00> : vector<8xf32>
    %161 = vector.multi_reduction <add>, %156, %cst_77 [1] : vector<8x32xf32> to vector<8xf32>
    %162 = vector.shape_cast %161 : vector<8xf32> to vector<8x1xf32>
    %cst_78 = arith.constant 3.200000e+01 : f32
    %163 = vector.broadcast %cst_78 : f32 to vector<8x1xf32>
    %164 = arith.divf %162, %163 : vector<8x1xf32>
    %165 = vector.broadcast %164 : vector<8x1xf32> to vector<8x32xf32>
    %166 = arith.subf %156, %165 : vector<8x32xf32>
    %167 = arith.mulf %166, %166 : vector<8x32xf32>
    %cst_79 = arith.constant dense<0.000000e+00> : vector<8xf32>
    %168 = vector.multi_reduction <add>, %167, %cst_79 [1] : vector<8x32xf32> to vector<8xf32>
    %169 = vector.shape_cast %168 : vector<8xf32> to vector<8x1xf32>
    %cst_80 = arith.constant 3.200000e+01 : f32
    %170 = vector.broadcast %cst_80 : f32 to vector<8x1xf32>
    %171 = arith.divf %169, %170 : vector<8x1xf32>
    %172 = vector.broadcast %164 : vector<8x1xf32> to vector<8x32xf32>
    %173 = arith.subf %156, %172 : vector<8x32xf32>
    %cst_81 = arith.constant 9.99999974E-6 : f32
    %174 = vector.broadcast %cst_81 : f32 to vector<8x1xf32>
    %175 = arith.addf %171, %174 : vector<8x1xf32>
    %176 = math.rsqrt %175 : vector<8x1xf32>
    %177 = vector.broadcast %176 : vector<8x1xf32> to vector<8x32xf32>
    %178 = arith.mulf %173, %177 : vector<8x32xf32>
    %179 = vector.broadcast %158 : vector<1x32xf32> to vector<8x32xf32>
    %180 = arith.mulf %178, %179 : vector<8x32xf32>
    %181 = vector.broadcast %160 : vector<1x32xf32> to vector<8x32xf32>
    %182 = arith.addf %180, %181 : vector<8x32xf32>
    %c0_82 = arith.constant 0 : index
    %c0_83 = arith.constant 0 : index
    %c0_84 = arith.constant 0 : index
    %183 = vector.load %arg20[%c0_82, %c0_83, %c0_84] : memref<1x32x32xbf16, #tpu.memory_space<vmem>>, vector<1x32x32xbf16>
    %184 = vector.shape_cast %183 : vector<1x32x32xbf16> to vector<32x32xbf16>
    %c0_85 = arith.constant 0 : index
    %c0_86 = arith.constant 0 : index
    %c0_87 = arith.constant 0 : index
    %185 = vector.load %arg21[%c0_85, %c0_86, %c0_87] : memref<1x1x32xf32, #tpu.memory_space<vmem>>, vector<1x1x32xf32>
    %186 = vector.shape_cast %185 : vector<1x1x32xf32> to vector<1x32xf32>
    %c0_88 = arith.constant 0 : index
    %c0_89 = arith.constant 0 : index
    %c0_90 = arith.constant 0 : index
    %187 = vector.load %arg22[%c0_88, %c0_89, %c0_90] : memref<1x32x64xbf16, #tpu.memory_space<vmem>>, vector<1x32x64xbf16>
    %188 = vector.shape_cast %187 : vector<1x32x64xbf16> to vector<32x64xbf16>
    %c0_91 = arith.constant 0 : index
    %c0_92 = arith.constant 0 : index
    %c0_93 = arith.constant 0 : index
    %189 = vector.load %arg23[%c0_91, %c0_92, %c0_93] : memref<1x1x64xf32, #tpu.memory_space<vmem>>, vector<1x1x64xf32>
    %190 = vector.shape_cast %189 : vector<1x1x64xf32> to vector<1x64xf32>
    %c0_94 = arith.constant 0 : index
    %c0_95 = arith.constant 0 : index
    %c0_96 = arith.constant 0 : index
    %191 = vector.load %arg24[%c0_94, %c0_95, %c0_96] : memref<1x32x32xbf16, #tpu.memory_space<vmem>>, vector<1x32x32xbf16>
    %192 = vector.shape_cast %191 : vector<1x32x32xbf16> to vector<32x32xbf16>
    %c0_97 = arith.constant 0 : index
    %c0_98 = arith.constant 0 : index
    %c0_99 = arith.constant 0 : index
    %193 = vector.load %arg25[%c0_97, %c0_98, %c0_99] : memref<1x1x32xf32, #tpu.memory_space<vmem>>, vector<1x1x32xf32>
    %194 = vector.shape_cast %193 : vector<1x1x32xf32> to vector<1x32xf32>
    %195 = arith.truncf %182 : vector<8x32xf32> to vector<8x32xbf16>
    %cst_100 = arith.constant dense<0.000000e+00> : vector<8x32xf32>
    %196 = tpu.matmul %195, %184, %cst_100 {dimension_numbers = #tpu.dot_dimension_numbers<[1], [0], [0], [1], [0, 0, 1, 1], [], []>} : vector<8x32xbf16>, vector<32x32xbf16>, vector<8x32xf32> -> vector<8x32xf32>
    %197 = vector.broadcast %186 : vector<1x32xf32> to vector<8x32xf32>
    %198 = arith.addf %196, %197 : vector<8x32xf32>
    %199 = arith.truncf %5 : vector<8x32xf32> to vector<8x32xbf16>
    %cst_101 = arith.constant dense<0.000000e+00> : vector<8x64xf32>
    %200 = tpu.matmul %199, %188, %cst_101 {dimension_numbers = #tpu.dot_dimension_numbers<[1], [0], [0], [1], [0, 0, 1, 1], [], []>} : vector<8x32xbf16>, vector<32x64xbf16>, vector<8x64xf32> -> vector<8x64xf32>
    %201 = vector.broadcast %190 : vector<1x64xf32> to vector<8x64xf32>
    %202 = arith.addf %200, %201 : vector<8x64xf32>
    %203 = vector.extract_strided_slice %202 {offsets = [0, 0], sizes = [8, 32], strides = [1, 1]} : vector<8x64xf32> to vector<8x32xf32>
    %204 = vector.extract_strided_slice %202 {offsets = [0, 32], sizes = [8, 32], strides = [1, 1]} : vector<8x64xf32> to vector<8x32xf32>
    %205 = vector.extract_strided_slice %198 {offsets = [0, 0], sizes = [8, 8], strides = [1, 1]} : vector<8x32xf32> to vector<8x8xf32>
    %206 = vector.extract_strided_slice %203 {offsets = [0, 0], sizes = [8, 8], strides = [1, 1]} : vector<8x32xf32> to vector<8x8xf32>
    %207 = vector.extract_strided_slice %204 {offsets = [0, 0], sizes = [8, 8], strides = [1, 1]} : vector<8x32xf32> to vector<8x8xf32>
    %208 = tpu.transpose %206, [1, 0] : vector<8x8xf32> -> vector<8x8xf32>
    %cst_102 = arith.constant dense<0.000000e+00> : vector<8x8xf32>
    %209 = tpu.matmul %205, %208, %cst_102 {dimension_numbers = #tpu.dot_dimension_numbers<[1], [0], [0], [1], [0, 0, 1, 1], [], []>} : vector<8x8xf32>, vector<8x8xf32>, vector<8x8xf32> -> vector<8x8xf32>
    %cst_103 = arith.constant 0.353553385 : f32
    %210 = vector.broadcast %cst_103 : f32 to vector<8x8xf32>
    %211 = arith.mulf %209, %210 : vector<8x8xf32>
    %cst_104 = arith.constant dense<0xFF800000> : vector<8xf32>
    %212 = vector.multi_reduction <maximumf>, %211, %cst_104 [1] : vector<8x8xf32> to vector<8xf32>
    %213 = vector.shape_cast %212 : vector<8xf32> to vector<8x1xf32>
    %214 = vector.broadcast %213 : vector<8x1xf32> to vector<8x8xf32>
    %215 = arith.subf %211, %214 : vector<8x8xf32>
    %216 = math.exp %215 : vector<8x8xf32>
    %cst_105 = arith.constant dense<0.000000e+00> : vector<8xf32>
    %217 = vector.multi_reduction <add>, %216, %cst_105 [1] : vector<8x8xf32> to vector<8xf32>
    %218 = vector.shape_cast %217 : vector<8xf32> to vector<8x1xf32>
    %219 = vector.broadcast %218 : vector<8x1xf32> to vector<8x8xf32>
    %220 = arith.divf %216, %219 : vector<8x8xf32>
    %cst_106 = arith.constant dense<0.000000e+00> : vector<8x8xf32>
    %221 = tpu.matmul %220, %207, %cst_106 {dimension_numbers = #tpu.dot_dimension_numbers<[1], [0], [0], [1], [0, 0, 1, 1], [], []>} : vector<8x8xf32>, vector<8x8xf32>, vector<8x8xf32> -> vector<8x8xf32>
    %222 = arith.truncf %221 : vector<8x8xf32> to vector<8x8xbf16>
    %223 = vector.extract_strided_slice %192 {offsets = [0, 0], sizes = [8, 32], strides = [1, 1]} : vector<32x32xbf16> to vector<8x32xbf16>
    %cst_107 = arith.constant dense<0.000000e+00> : vector<8x32xf32>
    %224 = tpu.matmul %222, %223, %cst_107 {dimension_numbers = #tpu.dot_dimension_numbers<[1], [0], [0], [1], [0, 0, 1, 1], [], []>} : vector<8x8xbf16>, vector<8x32xbf16>, vector<8x32xf32> -> vector<8x32xf32>
    %225 = vector.extract_strided_slice %198 {offsets = [0, 8], sizes = [8, 8], strides = [1, 1]} : vector<8x32xf32> to vector<8x8xf32>
    %226 = vector.extract_strided_slice %203 {offsets = [0, 8], sizes = [8, 8], strides = [1, 1]} : vector<8x32xf32> to vector<8x8xf32>
    %227 = vector.extract_strided_slice %204 {offsets = [0, 8], sizes = [8, 8], strides = [1, 1]} : vector<8x32xf32> to vector<8x8xf32>
    %228 = tpu.transpose %226, [1, 0] : vector<8x8xf32> -> vector<8x8xf32>
    %cst_108 = arith.constant dense<0.000000e+00> : vector<8x8xf32>
    %229 = tpu.matmul %225, %228, %cst_108 {dimension_numbers = #tpu.dot_dimension_numbers<[1], [0], [0], [1], [0, 0, 1, 1], [], []>} : vector<8x8xf32>, vector<8x8xf32>, vector<8x8xf32> -> vector<8x8xf32>
    %cst_109 = arith.constant 0.353553385 : f32
    %230 = vector.broadcast %cst_109 : f32 to vector<8x8xf32>
    %231 = arith.mulf %229, %230 : vector<8x8xf32>
    %cst_110 = arith.constant dense<0xFF800000> : vector<8xf32>
    %232 = vector.multi_reduction <maximumf>, %231, %cst_110 [1] : vector<8x8xf32> to vector<8xf32>
    %233 = vector.shape_cast %232 : vector<8xf32> to vector<8x1xf32>
    %234 = vector.broadcast %233 : vector<8x1xf32> to vector<8x8xf32>
    %235 = arith.subf %231, %234 : vector<8x8xf32>
    %236 = math.exp %235 : vector<8x8xf32>
    %cst_111 = arith.constant dense<0.000000e+00> : vector<8xf32>
    %237 = vector.multi_reduction <add>, %236, %cst_111 [1] : vector<8x8xf32> to vector<8xf32>
    %238 = vector.shape_cast %237 : vector<8xf32> to vector<8x1xf32>
    %239 = vector.broadcast %238 : vector<8x1xf32> to vector<8x8xf32>
    %240 = arith.divf %236, %239 : vector<8x8xf32>
    %cst_112 = arith.constant dense<0.000000e+00> : vector<8x8xf32>
    %241 = tpu.matmul %240, %227, %cst_112 {dimension_numbers = #tpu.dot_dimension_numbers<[1], [0], [0], [1], [0, 0, 1, 1], [], []>} : vector<8x8xf32>, vector<8x8xf32>, vector<8x8xf32> -> vector<8x8xf32>
    %242 = arith.truncf %241 : vector<8x8xf32> to vector<8x8xbf16>
    %243 = vector.extract_strided_slice %192 {offsets = [8, 0], sizes = [8, 32], strides = [1, 1]} : vector<32x32xbf16> to vector<8x32xbf16>
    %cst_113 = arith.constant dense<0.000000e+00> : vector<8x32xf32>
    %244 = tpu.matmul %242, %243, %cst_113 {dimension_numbers = #tpu.dot_dimension_numbers<[1], [0], [0], [1], [0, 0, 1, 1], [], []>} : vector<8x8xbf16>, vector<8x32xbf16>, vector<8x32xf32> -> vector<8x32xf32>
    %245 = arith.addf %224, %244 : vector<8x32xf32>
    %246 = vector.extract_strided_slice %198 {offsets = [0, 16], sizes = [8, 8], strides = [1, 1]} : vector<8x32xf32> to vector<8x8xf32>
    %247 = vector.extract_strided_slice %203 {offsets = [0, 16], sizes = [8, 8], strides = [1, 1]} : vector<8x32xf32> to vector<8x8xf32>
    %248 = vector.extract_strided_slice %204 {offsets = [0, 16], sizes = [8, 8], strides = [1, 1]} : vector<8x32xf32> to vector<8x8xf32>
    %249 = tpu.transpose %247, [1, 0] : vector<8x8xf32> -> vector<8x8xf32>
    %cst_114 = arith.constant dense<0.000000e+00> : vector<8x8xf32>
    %250 = tpu.matmul %246, %249, %cst_114 {dimension_numbers = #tpu.dot_dimension_numbers<[1], [0], [0], [1], [0, 0, 1, 1], [], []>} : vector<8x8xf32>, vector<8x8xf32>, vector<8x8xf32> -> vector<8x8xf32>
    %cst_115 = arith.constant 0.353553385 : f32
    %251 = vector.broadcast %cst_115 : f32 to vector<8x8xf32>
    %252 = arith.mulf %250, %251 : vector<8x8xf32>
    %cst_116 = arith.constant dense<0xFF800000> : vector<8xf32>
    %253 = vector.multi_reduction <maximumf>, %252, %cst_116 [1] : vector<8x8xf32> to vector<8xf32>
    %254 = vector.shape_cast %253 : vector<8xf32> to vector<8x1xf32>
    %255 = vector.broadcast %254 : vector<8x1xf32> to vector<8x8xf32>
    %256 = arith.subf %252, %255 : vector<8x8xf32>
    %257 = math.exp %256 : vector<8x8xf32>
    %cst_117 = arith.constant dense<0.000000e+00> : vector<8xf32>
    %258 = vector.multi_reduction <add>, %257, %cst_117 [1] : vector<8x8xf32> to vector<8xf32>
    %259 = vector.shape_cast %258 : vector<8xf32> to vector<8x1xf32>
    %260 = vector.broadcast %259 : vector<8x1xf32> to vector<8x8xf32>
    %261 = arith.divf %257, %260 : vector<8x8xf32>
    %cst_118 = arith.constant dense<0.000000e+00> : vector<8x8xf32>
    %262 = tpu.matmul %261, %248, %cst_118 {dimension_numbers = #tpu.dot_dimension_numbers<[1], [0], [0], [1], [0, 0, 1, 1], [], []>} : vector<8x8xf32>, vector<8x8xf32>, vector<8x8xf32> -> vector<8x8xf32>
    %263 = arith.truncf %262 : vector<8x8xf32> to vector<8x8xbf16>
    %264 = vector.extract_strided_slice %192 {offsets = [16, 0], sizes = [8, 32], strides = [1, 1]} : vector<32x32xbf16> to vector<8x32xbf16>
    %cst_119 = arith.constant dense<0.000000e+00> : vector<8x32xf32>
    %265 = tpu.matmul %263, %264, %cst_119 {dimension_numbers = #tpu.dot_dimension_numbers<[1], [0], [0], [1], [0, 0, 1, 1], [], []>} : vector<8x8xbf16>, vector<8x32xbf16>, vector<8x32xf32> -> vector<8x32xf32>
    %266 = arith.addf %245, %265 : vector<8x32xf32>
    %267 = vector.extract_strided_slice %198 {offsets = [0, 24], sizes = [8, 8], strides = [1, 1]} : vector<8x32xf32> to vector<8x8xf32>
    %268 = vector.extract_strided_slice %203 {offsets = [0, 24], sizes = [8, 8], strides = [1, 1]} : vector<8x32xf32> to vector<8x8xf32>
    %269 = vector.extract_strided_slice %204 {offsets = [0, 24], sizes = [8, 8], strides = [1, 1]} : vector<8x32xf32> to vector<8x8xf32>
    %270 = tpu.transpose %268, [1, 0] : vector<8x8xf32> -> vector<8x8xf32>
    %cst_120 = arith.constant dense<0.000000e+00> : vector<8x8xf32>
    %271 = tpu.matmul %267, %270, %cst_120 {dimension_numbers = #tpu.dot_dimension_numbers<[1], [0], [0], [1], [0, 0, 1, 1], [], []>} : vector<8x8xf32>, vector<8x8xf32>, vector<8x8xf32> -> vector<8x8xf32>
    %cst_121 = arith.constant 0.353553385 : f32
    %272 = vector.broadcast %cst_121 : f32 to vector<8x8xf32>
    %273 = arith.mulf %271, %272 : vector<8x8xf32>
    %cst_122 = arith.constant dense<0xFF800000> : vector<8xf32>
    %274 = vector.multi_reduction <maximumf>, %273, %cst_122 [1] : vector<8x8xf32> to vector<8xf32>
    %275 = vector.shape_cast %274 : vector<8xf32> to vector<8x1xf32>
    %276 = vector.broadcast %275 : vector<8x1xf32> to vector<8x8xf32>
    %277 = arith.subf %273, %276 : vector<8x8xf32>
    %278 = math.exp %277 : vector<8x8xf32>
    %cst_123 = arith.constant dense<0.000000e+00> : vector<8xf32>
    %279 = vector.multi_reduction <add>, %278, %cst_123 [1] : vector<8x8xf32> to vector<8xf32>
    %280 = vector.shape_cast %279 : vector<8xf32> to vector<8x1xf32>
    %281 = vector.broadcast %280 : vector<8x1xf32> to vector<8x8xf32>
    %282 = arith.divf %278, %281 : vector<8x8xf32>
    %cst_124 = arith.constant dense<0.000000e+00> : vector<8x8xf32>
    %283 = tpu.matmul %282, %269, %cst_124 {dimension_numbers = #tpu.dot_dimension_numbers<[1], [0], [0], [1], [0, 0, 1, 1], [], []>} : vector<8x8xf32>, vector<8x8xf32>, vector<8x8xf32> -> vector<8x8xf32>
    %284 = arith.truncf %283 : vector<8x8xf32> to vector<8x8xbf16>
    %285 = vector.extract_strided_slice %192 {offsets = [24, 0], sizes = [8, 32], strides = [1, 1]} : vector<32x32xbf16> to vector<8x32xbf16>
    %cst_125 = arith.constant dense<0.000000e+00> : vector<8x32xf32>
    %286 = tpu.matmul %284, %285, %cst_125 {dimension_numbers = #tpu.dot_dimension_numbers<[1], [0], [0], [1], [0, 0, 1, 1], [], []>} : vector<8x8xbf16>, vector<8x32xbf16>, vector<8x32xf32> -> vector<8x32xf32>
    %287 = arith.addf %266, %286 : vector<8x32xf32>
    %288 = vector.broadcast %194 : vector<1x32xf32> to vector<8x32xf32>
    %289 = arith.addf %287, %288 : vector<8x32xf32>
    %290 = arith.addf %182, %289 : vector<8x32xf32>
    %c0_126 = arith.constant 0 : index
    %c0_127 = arith.constant 0 : index
    %c0_128 = arith.constant 0 : index
    %291 = vector.load %arg26[%c0_126, %c0_127, %c0_128] : memref<1x1x32xf32, #tpu.memory_space<vmem>>, vector<1x1x32xf32>
    %292 = vector.shape_cast %291 : vector<1x1x32xf32> to vector<1x32xf32>
    %c0_129 = arith.constant 0 : index
    %c0_130 = arith.constant 0 : index
    %c0_131 = arith.constant 0 : index
    %293 = vector.load %arg27[%c0_129, %c0_130, %c0_131] : memref<1x1x32xf32, #tpu.memory_space<vmem>>, vector<1x1x32xf32>
    %294 = vector.shape_cast %293 : vector<1x1x32xf32> to vector<1x32xf32>
    %cst_132 = arith.constant dense<0.000000e+00> : vector<8xf32>
    %295 = vector.multi_reduction <add>, %290, %cst_132 [1] : vector<8x32xf32> to vector<8xf32>
    %296 = vector.shape_cast %295 : vector<8xf32> to vector<8x1xf32>
    %cst_133 = arith.constant 3.200000e+01 : f32
    %297 = vector.broadcast %cst_133 : f32 to vector<8x1xf32>
    %298 = arith.divf %296, %297 : vector<8x1xf32>
    %299 = vector.broadcast %298 : vector<8x1xf32> to vector<8x32xf32>
    %300 = arith.subf %290, %299 : vector<8x32xf32>
    %301 = arith.mulf %300, %300 : vector<8x32xf32>
    %cst_134 = arith.constant dense<0.000000e+00> : vector<8xf32>
    %302 = vector.multi_reduction <add>, %301, %cst_134 [1] : vector<8x32xf32> to vector<8xf32>
    %303 = vector.shape_cast %302 : vector<8xf32> to vector<8x1xf32>
    %cst_135 = arith.constant 3.200000e+01 : f32
    %304 = vector.broadcast %cst_135 : f32 to vector<8x1xf32>
    %305 = arith.divf %303, %304 : vector<8x1xf32>
    %306 = vector.broadcast %298 : vector<8x1xf32> to vector<8x32xf32>
    %307 = arith.subf %290, %306 : vector<8x32xf32>
    %cst_136 = arith.constant 9.99999974E-6 : f32
    %308 = vector.broadcast %cst_136 : f32 to vector<8x1xf32>
    %309 = arith.addf %305, %308 : vector<8x1xf32>
    %310 = math.rsqrt %309 : vector<8x1xf32>
    %311 = vector.broadcast %310 : vector<8x1xf32> to vector<8x32xf32>
    %312 = arith.mulf %307, %311 : vector<8x32xf32>
    %313 = vector.broadcast %292 : vector<1x32xf32> to vector<8x32xf32>
    %314 = arith.mulf %312, %313 : vector<8x32xf32>
    %315 = vector.broadcast %294 : vector<1x32xf32> to vector<8x32xf32>
    %316 = arith.addf %314, %315 : vector<8x32xf32>
    %c0_137 = arith.constant 0 : index
    %c0_138 = arith.constant 0 : index
    %c0_139 = arith.constant 0 : index
    %317 = vector.load %arg28[%c0_137, %c0_138, %c0_139] : memref<1x32x2048xbf16, #tpu.memory_space<vmem>>, vector<1x32x2048xbf16>
    %318 = vector.shape_cast %317 : vector<1x32x2048xbf16> to vector<32x2048xbf16>
    %c0_140 = arith.constant 0 : index
    %c0_141 = arith.constant 0 : index
    %c0_142 = arith.constant 0 : index
    %319 = vector.load %arg29[%c0_140, %c0_141, %c0_142] : memref<1x1x2048xf32, #tpu.memory_space<vmem>>, vector<1x1x2048xf32>
    %320 = vector.shape_cast %319 : vector<1x1x2048xf32> to vector<1x2048xf32>
    %c0_143 = arith.constant 0 : index
    %c0_144 = arith.constant 0 : index
    %c0_145 = arith.constant 0 : index
    %321 = vector.load %arg30[%c0_143, %c0_144, %c0_145] : memref<1x2048x32xbf16, #tpu.memory_space<vmem>>, vector<1x2048x32xbf16>
    %322 = vector.shape_cast %321 : vector<1x2048x32xbf16> to vector<2048x32xbf16>
    %c0_146 = arith.constant 0 : index
    %c0_147 = arith.constant 0 : index
    %c0_148 = arith.constant 0 : index
    %323 = vector.load %arg31[%c0_146, %c0_147, %c0_148] : memref<1x1x32xf32, #tpu.memory_space<vmem>>, vector<1x1x32xf32>
    %324 = vector.shape_cast %323 : vector<1x1x32xf32> to vector<1x32xf32>
    %325 = arith.truncf %316 : vector<8x32xf32> to vector<8x32xbf16>
    %cst_149 = arith.constant dense<0.000000e+00> : vector<8x2048xf32>
    %326 = tpu.matmul %325, %318, %cst_149 {dimension_numbers = #tpu.dot_dimension_numbers<[1], [0], [0], [1], [0, 0, 1, 1], [], []>} : vector<8x32xbf16>, vector<32x2048xbf16>, vector<8x2048xf32> -> vector<8x2048xf32>
    %327 = vector.broadcast %320 : vector<1x2048xf32> to vector<8x2048xf32>
    %328 = arith.addf %326, %327 : vector<8x2048xf32>
    %cst_150 = arith.constant 0.000000e+00 : f32
    %329 = vector.broadcast %cst_150 : f32 to vector<8x2048xf32>
    %330 = arith.maximumf %328, %329 : vector<8x2048xf32>
    %331 = arith.truncf %330 : vector<8x2048xf32> to vector<8x2048xbf16>
    %cst_151 = arith.constant dense<0.000000e+00> : vector<8x32xf32>
    %332 = tpu.matmul %331, %322, %cst_151 {dimension_numbers = #tpu.dot_dimension_numbers<[1], [0], [0], [1], [0, 0, 1, 1], [], []>} : vector<8x2048xbf16>, vector<2048x32xbf16>, vector<8x32xf32> -> vector<8x32xf32>
    %333 = vector.broadcast %324 : vector<1x32xf32> to vector<8x32xf32>
    %334 = arith.addf %332, %333 : vector<8x32xf32>
    %335 = arith.addf %316, %334 : vector<8x32xf32>
    %c0_152 = arith.constant 0 : index
    %c0_153 = arith.constant 0 : index
    %c0_154 = arith.constant 0 : index
    %336 = vector.load %arg32[%c0_152, %c0_153, %c0_154] : memref<1x1x32xf32, #tpu.memory_space<vmem>>, vector<1x1x32xf32>
    %337 = vector.shape_cast %336 : vector<1x1x32xf32> to vector<1x32xf32>
    %c0_155 = arith.constant 0 : index
    %c0_156 = arith.constant 0 : index
    %c0_157 = arith.constant 0 : index
    %338 = vector.load %arg33[%c0_155, %c0_156, %c0_157] : memref<1x1x32xf32, #tpu.memory_space<vmem>>, vector<1x1x32xf32>
    %339 = vector.shape_cast %338 : vector<1x1x32xf32> to vector<1x32xf32>
    %cst_158 = arith.constant dense<0.000000e+00> : vector<8xf32>
    %340 = vector.multi_reduction <add>, %335, %cst_158 [1] : vector<8x32xf32> to vector<8xf32>
    %341 = vector.shape_cast %340 : vector<8xf32> to vector<8x1xf32>
    %cst_159 = arith.constant 3.200000e+01 : f32
    %342 = vector.broadcast %cst_159 : f32 to vector<8x1xf32>
    %343 = arith.divf %341, %342 : vector<8x1xf32>
    %344 = vector.broadcast %343 : vector<8x1xf32> to vector<8x32xf32>
    %345 = arith.subf %335, %344 : vector<8x32xf32>
    %346 = arith.mulf %345, %345 : vector<8x32xf32>
    %cst_160 = arith.constant dense<0.000000e+00> : vector<8xf32>
    %347 = vector.multi_reduction <add>, %346, %cst_160 [1] : vector<8x32xf32> to vector<8xf32>
    %348 = vector.shape_cast %347 : vector<8xf32> to vector<8x1xf32>
    %cst_161 = arith.constant 3.200000e+01 : f32
    %349 = vector.broadcast %cst_161 : f32 to vector<8x1xf32>
    %350 = arith.divf %348, %349 : vector<8x1xf32>
    %351 = vector.broadcast %343 : vector<8x1xf32> to vector<8x32xf32>
    %352 = arith.subf %335, %351 : vector<8x32xf32>
    %cst_162 = arith.constant 9.99999974E-6 : f32
    %353 = vector.broadcast %cst_162 : f32 to vector<8x1xf32>
    %354 = arith.addf %350, %353 : vector<8x1xf32>
    %355 = math.rsqrt %354 : vector<8x1xf32>
    %356 = vector.broadcast %355 : vector<8x1xf32> to vector<8x32xf32>
    %357 = arith.mulf %352, %356 : vector<8x32xf32>
    %358 = vector.broadcast %337 : vector<1x32xf32> to vector<8x32xf32>
    %359 = arith.mulf %357, %358 : vector<8x32xf32>
    %360 = vector.broadcast %339 : vector<1x32xf32> to vector<8x32xf32>
    %361 = arith.addf %359, %360 : vector<8x32xf32>
    %c0_163 = arith.constant 0 : index
    %c0_164 = arith.constant 0 : index
    %362 = vector.load %arg39[%c0_163, %c0_164] : memref<8x32xf32, #tpu.memory_space<vmem>>, vector<8x32xf32>
    tpu.vector_store %arg39[%c0_163, %c0_164], %361 {strides = array<i32>} : memref<8x32xf32, #tpu.memory_space<vmem>>, vector<8x32xf32>,
    %c1_i32 = arith.constant 1 : i32
    %363 = arith.cmpi eq, %arg1, %c1_i32 : i32
    %364 = arith.extui %363 : i1 to i32
    %c0_i32_165 = arith.constant 0 : i32
    %365 = arith.cmpi ne, %364, %c0_i32_165 : i32
    scf.if %365 {
      %c0_166 = arith.constant 0 : index
      %c0_167 = arith.constant 0 : index
      %366 = vector.load %arg34[%c0_166, %c0_167] : memref<1x32xf32, #tpu.memory_space<vmem>>, vector<1x32xf32>
      %c0_168 = arith.constant 0 : index
      %c0_169 = arith.constant 0 : index
      %367 = vector.load %arg35[%c0_168, %c0_169] : memref<1x32xf32, #tpu.memory_space<vmem>>, vector<1x32xf32>
      %cst_170 = arith.constant dense<0.000000e+00> : vector<8xf32>
      %368 = vector.multi_reduction <add>, %361, %cst_170 [1] : vector<8x32xf32> to vector<8xf32>
      %369 = vector.shape_cast %368 : vector<8xf32> to vector<8x1xf32>
      %cst_171 = arith.constant 3.200000e+01 : f32
      %370 = vector.broadcast %cst_171 : f32 to vector<8x1xf32>
      %371 = arith.divf %369, %370 : vector<8x1xf32>
      %372 = vector.broadcast %371 : vector<8x1xf32> to vector<8x32xf32>
      %373 = arith.subf %361, %372 : vector<8x32xf32>
      %374 = arith.mulf %373, %373 : vector<8x32xf32>
      %cst_172 = arith.constant dense<0.000000e+00> : vector<8xf32>
      %375 = vector.multi_reduction <add>, %374, %cst_172 [1] : vector<8x32xf32> to vector<8xf32>
      %376 = vector.shape_cast %375 : vector<8xf32> to vector<8x1xf32>
      %cst_173 = arith.constant 3.200000e+01 : f32
      %377 = vector.broadcast %cst_173 : f32 to vector<8x1xf32>
      %378 = arith.divf %376, %377 : vector<8x1xf32>
      %379 = vector.broadcast %371 : vector<8x1xf32> to vector<8x32xf32>
      %380 = arith.subf %361, %379 : vector<8x32xf32>
      %cst_174 = arith.constant 9.99999974E-6 : f32
      %381 = vector.broadcast %cst_174 : f32 to vector<8x1xf32>
      %382 = arith.addf %378, %381 : vector<8x1xf32>
      %383 = math.rsqrt %382 : vector<8x1xf32>
      %384 = vector.broadcast %383 : vector<8x1xf32> to vector<8x32xf32>
      %385 = arith.mulf %380, %384 : vector<8x32xf32>
      %386 = vector.broadcast %366 : vector<1x32xf32> to vector<8x32xf32>
      %387 = arith.mulf %385, %386 : vector<8x32xf32>
      %388 = vector.broadcast %367 : vector<1x32xf32> to vector<8x32xf32>
      %389 = arith.addf %387, %388 : vector<8x32xf32>
      %390 = arith.truncf %389 : vector<8x32xf32> to vector<8x32xbf16>
      %c0_175 = arith.constant 0 : index
      %c0_176 = arith.constant 0 : index
      %391 = vector.load %arg36[%c0_175, %c0_176] : memref<32x128xbf16, #tpu.memory_space<vmem>>, vector<32x128xbf16>
      %cst_177 = arith.constant dense<0.000000e+00> : vector<8x128xf32>
      %392 = tpu.matmul %390, %391, %cst_177 {dimension_numbers = #tpu.dot_dimension_numbers<[1], [0], [0], [1], [0, 0, 1, 1], [], []>} : vector<8x32xbf16>, vector<32x128xbf16>, vector<8x128xf32> -> vector<8x128xf32>
      %c0_178 = arith.constant 0 : index
      %c0_179 = arith.constant 0 : index
      %393 = vector.load %arg37[%c0_178, %c0_179] : memref<1x128xf32, #tpu.memory_space<vmem>>, vector<1x128xf32>
      %394 = vector.broadcast %393 : vector<1x128xf32> to vector<8x128xf32>
      %395 = arith.addf %392, %394 : vector<8x128xf32>
      %c0_180 = arith.constant 0 : index
      %c0_181 = arith.constant 0 : index
      %c0_182 = arith.constant 0 : index
      %396 = vector.load %arg38[%c0_180, %c0_181, %c0_182] : memref<1x8x128xf32, #tpu.memory_space<vmem>>, vector<1x8x128xf32>
      %397 = vector.shape_cast %396 : vector<1x8x128xf32> to vector<8x128xf32>
      %398 = vector.shape_cast %395 : vector<8x128xf32> to vector<1x8x128xf32>
      tpu.vector_store %arg38[%c0_180, %c0_181, %c0_182], %398 {strides = array<i32>} : memref<1x8x128xf32, #tpu.memory_space<vmem>>, vector<1x8x128xf32>,
    } else {
    }
    return
  }
  func.func @transform_0(%arg0: i32, %arg1: i32) -> (i32, i32, i32) {
    %c0_i32 = arith.constant 0 : i32
    %c0_i32_0 = arith.constant 0 : i32
    %c0_i32_1 = arith.constant 0 : i32
    return %arg0, %c0_i32, %c0_i32_0 : i32, i32, i32
  }
  func.func @transform_1(%arg0: i32, %arg1: i32) -> (i32, i32) {
    %c0_i32 = arith.constant 0 : i32
    %c0_i32_0 = arith.constant 0 : i32
    %c0_i32_1 = arith.constant 0 : i32
    return %c0_i32, %c0_i32_0 : i32, i32
  }
  func.func @transform_2(%arg0: i32, %arg1: i32) -> (i32, i32) {
    %c0_i32 = arith.constant 0 : i32
    %c0_i32_0 = arith.constant 0 : i32
    %c0_i32_1 = arith.constant 0 : i32
    return %c0_i32, %c0_i32_0 : i32, i32
  }
  func.func @transform_3(%arg0: i32, %arg1: i32) -> (i32, i32, i32) {
    %c0_i32 = arith.constant 0 : i32
    %c0_i32_0 = arith.constant 0 : i32
    %c0_i32_1 = arith.constant 0 : i32
    return %arg0, %c0_i32, %c0_i32_0 : i32, i32, i32
  }
  func.func @transform_4(%arg0: i32, %arg1: i32) -> (i32, i32, i32) {
    %c0_i32 = arith.constant 0 : i32
    %c0_i32_0 = arith.constant 0 : i32
    %c0_i32_1 = arith.constant 0 : i32
    return %arg0, %c0_i32, %c0_i32_0 : i32, i32, i32
  }
  func.func @transform_5(%arg0: i32, %arg1: i32) -> (i32, i32) {
    %c0_i32 = arith.constant 0 : i32
    %c0_i32_0 = arith.constant 0 : i32
    %c0_i32_1 = arith.constant 0 : i32
    return %c0_i32, %c0_i32_0 : i32, i32
  }
  func.func @transform_6(%arg0: i32, %arg1: i32) -> (i32, i32, i32) {
    %c0_i32 = arith.constant 0 : i32
    %c0_i32_0 = arith.constant 0 : i32
    %c0_i32_1 = arith.constant 0 : i32
    return %arg1, %c0_i32, %c0_i32_0 : i32, i32, i32
  }
  func.func @transform_7(%arg0: i32, %arg1: i32) -> (i32, i32, i32) {
    %c0_i32 = arith.constant 0 : i32
    %c0_i32_0 = arith.constant 0 : i32
    %c0_i32_1 = arith.constant 0 : i32
    return %arg1, %c0_i32, %c0_i32_0 : i32, i32, i32
  }
  func.func @transform_8(%arg0: i32, %arg1: i32) -> (i32, i32, i32) {
    %c0_i32 = arith.constant 0 : i32
    %c0_i32_0 = arith.constant 0 : i32
    %c0_i32_1 = arith.constant 0 : i32
    return %arg1, %c0_i32, %c0_i32_0 : i32, i32, i32
  }
  func.func @transform_9(%arg0: i32, %arg1: i32) -> (i32, i32, i32) {
    %c0_i32 = arith.constant 0 : i32
    %c0_i32_0 = arith.constant 0 : i32
    %c0_i32_1 = arith.constant 0 : i32
    return %arg1, %c0_i32, %c0_i32_0 : i32, i32, i32
  }
  func.func @transform_10(%arg0: i32, %arg1: i32) -> (i32, i32, i32) {
    %c0_i32 = arith.constant 0 : i32
    %c0_i32_0 = arith.constant 0 : i32
    %c0_i32_1 = arith.constant 0 : i32
    return %arg1, %c0_i32, %c0_i32_0 : i32, i32, i32
  }
  func.func @transform_11(%arg0: i32, %arg1: i32) -> (i32, i32, i32) {
    %c0_i32 = arith.constant 0 : i32
    %c0_i32_0 = arith.constant 0 : i32
    %c0_i32_1 = arith.constant 0 : i32
    return %arg1, %c0_i32, %c0_i32_0 : i32, i32, i32
  }
  func.func @transform_12(%arg0: i32, %arg1: i32) -> (i32, i32, i32) {
    %c0_i32 = arith.constant 0 : i32
    %c0_i32_0 = arith.constant 0 : i32
    %c0_i32_1 = arith.constant 0 : i32
    return %arg1, %c0_i32, %c0_i32_0 : i32, i32, i32
  }
  func.func @transform_13(%arg0: i32, %arg1: i32) -> (i32, i32, i32) {
    %c0_i32 = arith.constant 0 : i32
    %c0_i32_0 = arith.constant 0 : i32
    %c0_i32_1 = arith.constant 0 : i32
    return %arg1, %c0_i32, %c0_i32_0 : i32, i32, i32
  }
  func.func @transform_14(%arg0: i32, %arg1: i32) -> (i32, i32, i32) {
    %c0_i32 = arith.constant 0 : i32
    %c0_i32_0 = arith.constant 0 : i32
    %c0_i32_1 = arith.constant 0 : i32
    return %arg1, %c0_i32, %c0_i32_0 : i32, i32, i32
  }
  func.func @transform_15(%arg0: i32, %arg1: i32) -> (i32, i32, i32) {
    %c0_i32 = arith.constant 0 : i32
    %c0_i32_0 = arith.constant 0 : i32
    %c0_i32_1 = arith.constant 0 : i32
    return %arg1, %c0_i32, %c0_i32_0 : i32, i32, i32
  }
  func.func @transform_16(%arg0: i32, %arg1: i32) -> (i32, i32, i32) {
    %c0_i32 = arith.constant 0 : i32
    %c0_i32_0 = arith.constant 0 : i32
    %c0_i32_1 = arith.constant 0 : i32
    return %arg1, %c0_i32, %c0_i32_0 : i32, i32, i32
  }
  func.func @transform_17(%arg0: i32, %arg1: i32) -> (i32, i32, i32) {
    %c0_i32 = arith.constant 0 : i32
    %c0_i32_0 = arith.constant 0 : i32
    %c0_i32_1 = arith.constant 0 : i32
    return %arg1, %c0_i32, %c0_i32_0 : i32, i32, i32
  }
  func.func @transform_18(%arg0: i32, %arg1: i32) -> (i32, i32, i32) {
    %c0_i32 = arith.constant 0 : i32
    %c0_i32_0 = arith.constant 0 : i32
    %c0_i32_1 = arith.constant 0 : i32
    return %arg1, %c0_i32, %c0_i32_0 : i32, i32, i32
  }
  func.func @transform_19(%arg0: i32, %arg1: i32) -> (i32, i32, i32) {
    %c0_i32 = arith.constant 0 : i32
    %c0_i32_0 = arith.constant 0 : i32
    %c0_i32_1 = arith.constant 0 : i32
    return %arg1, %c0_i32, %c0_i32_0 : i32, i32, i32
  }
  func.func @transform_20(%arg0: i32, %arg1: i32) -> (i32, i32, i32) {
    %c0_i32 = arith.constant 0 : i32
    %c0_i32_0 = arith.constant 0 : i32
    %c0_i32_1 = arith.constant 0 : i32
    return %arg1, %c0_i32, %c0_i32_0 : i32, i32, i32
  }
  func.func @transform_21(%arg0: i32, %arg1: i32) -> (i32, i32, i32) {
    %c0_i32 = arith.constant 0 : i32
    %c0_i32_0 = arith.constant 0 : i32
    %c0_i32_1 = arith.constant 0 : i32
    return %arg1, %c0_i32, %c0_i32_0 : i32, i32, i32
  }
  func.func @transform_22(%arg0: i32, %arg1: i32) -> (i32, i32, i32) {
    %c0_i32 = arith.constant 0 : i32
    %c0_i32_0 = arith.constant 0 : i32
    %c0_i32_1 = arith.constant 0 : i32
    return %arg1, %c0_i32, %c0_i32_0 : i32, i32, i32
  }
  func.func @transform_23(%arg0: i32, %arg1: i32) -> (i32, i32, i32) {
    %c0_i32 = arith.constant 0 : i32
    %c0_i32_0 = arith.constant 0 : i32
    %c0_i32_1 = arith.constant 0 : i32
    return %arg1, %c0_i32, %c0_i32_0 : i32, i32, i32
  }
  func.func @transform_24(%arg0: i32, %arg1: i32) -> (i32, i32, i32) {
    %c0_i32 = arith.constant 0 : i32
    %c0_i32_0 = arith.constant 0 : i32
    %c0_i32_1 = arith.constant 0 : i32
    return %arg1, %c0_i32, %c0_i32_0 : i32, i32, i32
  }
  func.func @transform_25(%arg0: i32, %arg1: i32) -> (i32, i32, i32) {
    %c0_i32 = arith.constant 0 : i32
    %c0_i32_0 = arith.constant 0 : i32
    %c0_i32_1 = arith.constant 0 : i32
    return %arg1, %c0_i32, %c0_i32_0 : i32, i32, i32
  }
  func.func @transform_26(%arg0: i32, %arg1: i32) -> (i32, i32, i32) {
    %c0_i32 = arith.constant 0 : i32
    %c0_i32_0 = arith.constant 0 : i32
    %c0_i32_1 = arith.constant 0 : i32
    return %arg1, %c0_i32, %c0_i32_0 : i32, i32, i32
  }
  func.func @transform_27(%arg0: i32, %arg1: i32) -> (i32, i32, i32) {
    %c0_i32 = arith.constant 0 : i32
    %c0_i32_0 = arith.constant 0 : i32
    %c0_i32_1 = arith.constant 0 : i32
    return %arg1, %c0_i32, %c0_i32_0 : i32, i32, i32
  }
  func.func @transform_28(%arg0: i32, %arg1: i32) -> (i32, i32, i32) {
    %c0_i32 = arith.constant 0 : i32
    %c0_i32_0 = arith.constant 0 : i32
    %c0_i32_1 = arith.constant 0 : i32
    return %arg1, %c0_i32, %c0_i32_0 : i32, i32, i32
  }
  func.func @transform_29(%arg0: i32, %arg1: i32) -> (i32, i32, i32) {
    %c0_i32 = arith.constant 0 : i32
    %c0_i32_0 = arith.constant 0 : i32
    %c0_i32_1 = arith.constant 0 : i32
    return %arg1, %c0_i32, %c0_i32_0 : i32, i32, i32
  }
  func.func @transform_30(%arg0: i32, %arg1: i32) -> (i32, i32, i32) {
    %c0_i32 = arith.constant 0 : i32
    %c0_i32_0 = arith.constant 0 : i32
    %c0_i32_1 = arith.constant 0 : i32
    return %arg1, %c0_i32, %c0_i32_0 : i32, i32, i32
  }
  func.func @transform_31(%arg0: i32, %arg1: i32) -> (i32, i32, i32) {
    %c0_i32 = arith.constant 0 : i32
    %c0_i32_0 = arith.constant 0 : i32
    %c0_i32_1 = arith.constant 0 : i32
    return %arg1, %c0_i32, %c0_i32_0 : i32, i32, i32
  }
  func.func @transform_32(%arg0: i32, %arg1: i32) -> (i32, i32) {
    %c0_i32 = arith.constant 0 : i32
    %c0_i32_0 = arith.constant 0 : i32
    %c0_i32_1 = arith.constant 0 : i32
    return %c0_i32, %c0_i32_0 : i32, i32
  }
  func.func @transform_33(%arg0: i32, %arg1: i32) -> (i32, i32) {
    %c0_i32 = arith.constant 0 : i32
    %c0_i32_0 = arith.constant 0 : i32
    %c0_i32_1 = arith.constant 0 : i32
    return %c0_i32, %c0_i32_0 : i32, i32
  }
  func.func @transform_34(%arg0: i32, %arg1: i32) -> (i32, i32) {
    %c0_i32 = arith.constant 0 : i32
    %c0_i32_0 = arith.constant 0 : i32
    %c0_i32_1 = arith.constant 0 : i32
    return %c0_i32, %c0_i32_0 : i32, i32
  }
  func.func @transform_35(%arg0: i32, %arg1: i32) -> (i32, i32) {
    %c0_i32 = arith.constant 0 : i32
    %c0_i32_0 = arith.constant 0 : i32
    %c0_i32_1 = arith.constant 0 : i32
    return %c0_i32, %c0_i32_0 : i32, i32
  }
  func.func @transform_36(%arg0: i32, %arg1: i32) -> (i32, i32, i32) {
    %c0_i32 = arith.constant 0 : i32
    %c0_i32_0 = arith.constant 0 : i32
    %c0_i32_1 = arith.constant 0 : i32
    return %arg0, %c0_i32, %c0_i32_0 : i32, i32, i32
  }
}

</mosaic_0001>

<bundles_post_ra>
// kernel: forward.2
= control target key start
LH: loop header
LB: loop body
LE: loop exit
PB: predicated region body
PF: predicated region fallthrough
CT: control target
= control target key end

     0   :  { %s4907_s24 = smov 0   ;;  %s4909_s25 = smov 0   ;;  %s5447_s0 = inlined_call_operand.vmem [shape: f32[2,8,6], index: 0, kind: input, shape index: {}]   ;;  %s5448_s1 = inlined_call_operand.vmem [shape: f32[6,32], index: 1, kind: input, shape index: {}]   ;;  %s5449_s2 = inlined_call_operand.vmem [shape: f32[8,32], index: 2, kind: input, shape index: {}]   ;;  %s5450_s3 = inlined_call_operand.vmem [shape: bf16[2,32,96], index: 3, kind: input, shape index: {}]   ;;  %s5451_s4 = inlined_call_operand.vmem [shape: f32[2,1,96], index: 4, kind: input, shape index: {}]   ;;  %s5452_s5 = inlined_call_operand.vmem [shape: bf16[2,32,32], index: 5, kind: input, shape index: {}]   ;;  %s5453_s6 = inlined_call_operand.vmem [shape: f32[2,1,32], index: 6, kind: input, shape index: {}]   ;;  %s5454_s7 = inlined_call_operand.vmem [shape: f32[2,1,32], index: 7, kind: input, shape index: {}]   ;;  %s5455_s8 = inlined_call_operand.vmem [shape: f32[2,1,32], index: 8, kind: input, shape index: {}]   ;;  %s5456_s9 = inlined_call_operand.vmem [shape: bf16[2,32,2048], index: 9, kind: input, shape index: {}]   ;;  %s5457_s10 = inlined_call_operand.vmem [shape: f32[2,1,2048], index: 10, kind: input, shape index: {}]   ;;  %s5458_s11 = inlined_call_operand.vmem [shape: bf16[2,2048,32], index: 11, kind: input, shape index: {}]   ;;  %s5459_s12 = inlined_call_operand.vmem [shape: f32[2,1,32], index: 12, kind: input, shape index: {}]   ;;  %s5460_s13 = inlined_call_operand.vmem [shape: f32[2,1,32], index: 13, kind: input, shape index: {}]   ;;  %s5461_s14 = inlined_call_operand.vmem [shape: f32[2,1,32], index: 14, kind: input, shape index: {}]   ;;  %s5462_s15 = inlined_call_operand.vmem [shape: f32[1,32], index: 15, kind: input, shape index: {}]   ;;  %s5463_s16 = inlined_call_operand.vmem [shape: f32[1,32], index: 16, kind: input, shape index: {}]   ;;  %s5464_s17 = inlined_call_operand.vmem [shape: f32[2,8,32], index: 17, kind: output, shape index: {}]  }
   0x1   :  { %5470 = sst [smem:[#allocation10_spill]] %s5447_s0  ;;  %s4911_s26 = smov 0  }
   0x2   :  { %5471 = sst [smem:[#allocation11_spill]] %s5448_s1  ;;  %s4913_s27 = smov 0  }
   0x3   :  { %5472 = sst [smem:[#allocation12_spill]] %s5449_s2  ;;  %s4915_s28 = smov 0  }
   0x4   :  { %5473 = sst [smem:[#allocation13_spill]] %s5450_s3 }
   0x5   :  { %5474 = sst [smem:[#allocation14_spill]] %s5452_s5 }
   0x6   :  { %5475 = sst [smem:[#allocation15_spill]] %s5456_s9 }
   0x7   :  { %5476 = sst [smem:[#allocation16_spill]] %s5457_s10 }
   0x8   :  { %5477 = sst [smem:[#allocation17_spill]] %s5462_s15 }
   0x9   :  { %5478 = sst [smem:[#allocation18_spill]] %s5463_s16 }
   0xa   :  { %5479 = sst [smem:[#allocation19_spill]] %s5464_s17 }
   0xb LB: > { %5480 = sst [smem:[#allocation3_spill]] %s4783_s24  ;;  %s36_s29 = sadd.s32 1, %s4791_s26  ;;  %s4799_s28 = sphi %s4915_s28, %s27_s28   ;;  %s4795_s27 = sphi %s4913_s27, %s5508_s27   ;;  %s4791_s26 = sphi %s4911_s26, %s5507_s26   ;;  %s4787_s25 = sphi %s4909_s25, %s5506_s25   ;;  %s4783_s24 = sphi %s4907_s24, %s5505_s24  }
   0xc   : > { %5481 = sst [smem:[#allocation4_spill]] %s4791_s26  ;;  %s39_s0 = sadd.s32 1, %s4795_s27 }
   0xd   : > { %5482 = sst [smem:[#allocation5_spill]] %s4795_s27  ;;  %p37_p0 = scmp.ge.s32.totalorder %s36_s29, 2 }
   0xe   : > { %5483 = sst [smem:[#allocation6_spill]] %s4799_s28  ;;  %p4053_p1 = scmp.ge.s32.totalorder %s4799_s28, 1 }
   0xf   : > { %p603_p2 = scmp.lt.s32.totalorder %s4799_s28, 5  ;;  %s5510_s29 = smov (%p37_p0, %s36_s29), 0 }
  0x10   : > { %5484 = sst [smem:[#allocation7_spill]] %s5510_s29  ;;  %s5512_s0 = smov (!%p37_p0, %s39_s0), %s4795_s27 }
  0x11   : > { %p604_p3 = pnand %p4053_p1, %p603_p2  ;;  %p41_p4 = scmp.ge.s32.totalorder %s5512_s0, 2 }
  0x13   : > { %s5514_s0 = smov (%p41_p4, %s5512_s0), 0  ;;  %607 = sbr.rel (%p604_p3) target bundleno = 4867 (0x1303), region = 88 }
  0x14   : > { %5485 = sst [smem:[#allocation8_spill]] %s5514_s0 }
  0x1a   : > { %p698_p5 = scmp.lt.s32.totalorder %s4787_s25, 1  ;;  %p702_p6 = scmp.lt.s32.totalorder %s4783_s24, 1 }
  0x1b   : > { %s5486_s20 = sld [smem:[#allocation10_spill]]  ;;  %s5487_s3 = sld [smem:[#allocation13_spill]] }
  0x1c   : > { %s5516_s25 = smov (!%p698_p5, %s4787_s25), 1  ;;  %s5489_s5 = sld [smem:[#allocation14_spill]] }
  0x1d   : > { %s4941_s30 = scalar_select %p702_p6, %s4783_s24, 1 }
  0x1e   : > { %s4054_s18 = sshll.u32 %s5516_s25, 3  ;;  %s5490_s10 = sld [smem:[#allocation16_spill]] }
  0x1f   : > { %s4267_s22 = sshll.u32 %s4941_s30, 4  ;;  %s5491_s9 = sld [smem:[#allocation15_spill]] }
  0x20   : > { %s4270_s24 = sshll.u32 %s4941_s30, 10  ;;  %s740_s23 = scalar_lea.vmem %s5459_s12, %s4941_s30 }
  0x21   : > { %s701_s21 = scalar_lea.vmem %s5486_s20, %s4054_s18  ;;  %s4950_s29 = scalar_lea.vmem %s5487_s3, %s4267_s22 }
  0x22   : > { %5488 = sst [smem:[#allocation9_spill]] %s4950_s29  ;;  %s4959_s2 = scalar_lea.vmem %s5489_s5, %s4267_s22 }
  0x23   : > { %s4269_s29 = sshll.u32 %s4941_s30, 8  ;;  %s4988_s1 = scalar_lea.vmem %s5458_s11, %s4270_s24 }
  0x24   : > { %s4977_s28 = scalar_lea.vmem %s5490_s10, %s4267_s22  ;;  %s743_s22 = scalar_lea.vmem %s5460_s13, %s4941_s30 }
  0x25   : > { %s4982_s5 = scalar_lea.vmem %s5491_s9, %s4269_s29  ;;  %s746_s15 = scalar_lea.vmem %s5461_s14, %s4941_s30 }
  0x26   : > { %s5492_s9 = sld [smem:[#allocation19_spill]]  ;;  %s5493_s19 = sld [smem:[#allocation3_spill]] }
  0x2c   : > { %s5005_s10 = scalar_lea.vmem %s5492_s9, %s4054_s18  ;;  %p4065_p7 = scmp.ne.s32.totalorder %s5493_s19, 0 }
  0x2d   : > { %s5494_s20 = sld [smem:[#allocation11_spill]] (!%p4065_p7)  ;;  %vm763_vm0 = vcmask (!%p4065_p7), 1045504   ;;  %v756_v1 = vld [vmem:[%s701_s21] sm:$0xff] (!%p4065_p7)  ;;  %v4801_v2 = vmov (!%p4065_p7), 0.0   ;;  %vm4802_vm1 = vmmov (!%p4065_p7), 0   ;;  %vm759_vm2 = vcmask (!%p4065_p7), 48128  }
  0x2e   : > { %755 = sbr.rel (%p4065_p7) target bundleno = 268 (0x10c), region = 92  ;;  %4476 = vmatprep.subr.mxu0 (!%p4065_p7), %v4801_v2  ;;  %4478 = vmatprep.mubr.msk.f32.mxu0 (!%p4065_p7), %vm4802_vm1, %v4801_v2  ;;  %s5495_s9 = sld [smem:[#allocation12_spill]] (!%p4065_p7)  ;;  %vm837_vm3 = vcmask (!%p4065_p7), 261120  }
  0x33   : > { %v757_v0 = vld [vmem:[%s5494_s20] sm:$0x3f] (!%p4065_p7) }
  0x34   : > { %4477 = vmatpush3.msk.msra.mxu0 (!%p4065_p7), %vm763_vm0, %v757_v0  ;;  %v758_v3 = vld [vmem:[%s5495_s9] sm:$0xff] (!%p4065_p7) }
  0x35   : > { %4479 = vmatmul.mubr.msk.f32.vlgmr.msra.gmra.mrb[0].mxu0 %vm759_vm2, %v756_v1 }
 0x108   : > { %v833_v4 = vpop.f32.mrb[0].mxu0 }
 0x109   : > { %v834_v5 = vadd.f32 %v833_v4, %v758_v3  ;;  %v4480_v6 = vpop.f32.mrb[1].mxu0 }
 0x10b   : > { %838 = vst.msk [vmem:[#allocation2] sm:$0xff] %vm837_vm3, %v834_v5 }
 0x10c PF: > { %s5496_s18 = sld [smem:[#allocation9_spill]]  ;;  %v4803_v8 = vmov 0.0   ;;  %vm4804_vm4 = vmmov 0   ;;  %vm869_vm5 = vcmask 261120   ;;  %s5497_s26 = scalar_lea.vmem %s5451_s4, %s4941_s30  ;;  %vm916_vm6 = vcmask 64512  }
 0x10d   : > { %4481 = vmatprep.subr.bf16.mxu0 %v4803_v8  ;;  %4489 = vmatprep.subr.mxu1 %v4803_v8  ;;  %v4068_v12 = vld [vmem:[%s5497_s26] ss:$0 sm:$0xff]  ;;  %s4805_s27 = smov 64   ;;  %s4806_s29 = smov 96   ;;  %vm1250_vm7 = vcmask 1043456  }
 0x10e   : > { %4485 = vmatprep.mubr.msk.bf16.mxu0 %vm4804_vm4, %v4803_v8  ;;  %4491 = vmatprep.mubr.msk.f32.mxu1 %vm4804_vm4, %v4803_v8  ;;  %s4807_s16 = smov 88   ;;  %s4808_s19 = smov 120   ;;  %v846_v45 = vld [vmem:[%s4959_s2 + $0x4] sm:$0xf]  ;;  %v845_v49 = vld [vmem:[%s4959_s2] sm:$0xf] }
 0x10f   : > { %s4809_s24 = smov 56   ;;  %s4810_s25 = smov 80   ;;  %v1252_v46 = vsel %vm1250_vm7, %v846_v45, 0  ;;  %v1298_v52 = vsel %vm1250_vm7, %v845_v49, 0 }
 0x110   : > { %s4811_s20 = smov 112   ;;  %s4812_s3 = smov 48  }
 0x111   : > { %s4813_s17 = smov 72   ;;  %s4814_s9 = smov 104  }
 0x112   : > { %v4609_v7 = vld [vmem:[%s5496_s18] sm:$0xff]   ;;  %v4610_v9 = vld [vmem:[%s5496_s18 + $0x8] sm:$0xff]   ;;  %s4815_s18 = smov 40   ;;  %s5498_s0 = scalar_lea.vmem %s5453_s6, %s4941_s30 }
 0x113   : > { %4482 = vmatpush3.bf16.msra.mxu0 %v4609_v7  ;;  %v5020_v10 = vld [vmem:[#allocation2] sm:$0xff] }
 0x114   : > { %4483 = vmatprep.subr.bf16.mxu0 %v4803_v8  ;;  %v850_v11 = vpack.c.bf16 %v5020_v10, %v5020_v10 }
 0x117   : > { %4484 = vmatpush3.bf16.msra.mxu0 %v4610_v9 }
 0x118   : > { %4504 = vmatprep.subr.mxu0 %v4803_v8 }
 0x11a   : > { %4486 = vmatmul.mubr.msk.bf16.vlgmr.msra.gmra.mrb[0].mxu0 %vm869_vm5, %v850_v11 }
 0x11b   : > { %4506 = vmatprep.mubr.msk.f32.mxu0 %vm4804_vm4, %v4803_v8 }
 0x1ed   : > { %v907_v13 = vpop.f32.mrb[0].mxu0 }
 0x1ee   : > { %v5036_v14 = vadd.f32 %v4068_v12, %v907_v13  ;;  %v4487_v15 = vpop.f32.mrb[1].mxu0 }
 0x1ef   : > { %v910_v16 = vpop.f32.mrb[2].mxu0 }
 0x1f0   : > { %1003 = vrot.lane.b32.xlu1 %v5036_v14, %s4805_s27  ;;  %914 = vrot.lane.b32.xlu0 %v5036_v14, %s4806_s29  ;;  %v4488_v17 = vpop.f32.mrb[3].mxu0  ;;  %s5499_s29 = scalar_lea.vmem %s5454_s7, %s4941_s30 }
 0x1f4   : > { %1082 = vrot.lane.b32.xlu1 %v5036_v14, %s4807_s16 }
 0x262   : > { %v915_v18 = vpop.permute.xlu0 %914  ;;  %v1004_v19 = vpop.permute.xlu1 %1003 }
 0x263   : > { %4490 = vmatpush3.xpose.msk.msra.mxu1 %vm916_vm6, %v915_v18 }
 0x264   : > { %4494 = vmatprep.subr.mxu1 %v4803_v8 }
 0x266   : > { %4492 = vmatmul.mubr.msk.f32.vlgmr.msra.gmra.mrb[0].mxu1 %vm916_vm6, %v5036_v14  ;;  %v1083_v29 = vpop.permute.xlu1 %1082 }
 0x267   : > { %4495 = vmatpush3.msra.mxu1 %v1004_v19  ;;  %4496 = vmatprep.mubr.msk.f32.mxu1 %vm4804_vm4, %v4803_v8 }
 0x268   : > { %4499 = vmatprep.subr.mxu1 %v4803_v8 }
 0x339   : > { %v987_v20 = vpop.f32.mrb[0].mxu1 }
 0x33a   : > { %v991_v21 = vmul.f32 0.35355338, %v987_v20  ;;  %v4493_v22 = vpop.f32.mrb[1].mxu1 }
 0x33b   : > { %v847_v22 = vld [vmem:[%s4959_s2 + $0x8] sm:$0xf] }
 0x33c   : > { %v992_v23 = vsel %vm916_vm6, %v991_v21, -inf }
 0x33d   : > { %993 = vmax.xlane.f32.xlu0 %v992_v23  ;;  %v1511_v23 = vsel %vm1250_vm7, %v847_v22, 0 }
 0x3ca   : > { %v994_v24 = vpop.xlane.xlu0 %993 }
 0x3cb   : > { %v995_v25 = vsub.f32 %v991_v21, %v994_v24 }
 0x3cd   : > { %v996_v26 = vmul.f32 1.442695, %v995_v25 }
 0x3cf   : > { %4739 = vpow2.f32 %v996_v26 }
 0x3d9   : > { %v4740_v27 = vpop.eup %4739 }
 0x3da   : > { %v998_v28 = vsel %vm916_vm6, %v4740_v27, 0.0 }
 0x3db   : > { %999 = vadd.xlane.f32.xlu1 %v998_v28 }
 0x3ec   : > { %1080 = vrot.lane.b32.xlu1 %v5036_v14, %s4808_s19 }
 0x468   : > { %v1000_v30 = vpop.xlane.xlu1 %999 }
 0x469   : > { %4741 = vrcp.f32 %v1000_v30 }
 0x46c   : > { %v1081_v33 = vpop.permute.xlu1 %1080 }
 0x473   : > { %v4742_v31 = vpop.eup %4741 }
 0x474   : > { %v1002_v32 = vmul.f32 %v4742_v31, %v4740_v27 }
 0x476   : > { %4497 = vmatmul.mubr.msk.f32.vlgmr.msra.gmra.mrb[2].mxu1 %vm916_vm6, %v1002_v32 }
 0x477   : > { %4500 = vmatpush3.xpose.msk.msra.mxu1 %vm916_vm6, %v1083_v29  ;;  %4501 = vmatprep.mubr.msk.f32.mxu1 %vm4804_vm4, %v4803_v8 }
 0x478   : > { %4509 = vmatprep.subr.bf16.mxu1 %v4803_v8 }
 0x47a   : > { %4502 = vmatmul.mubr.msk.f32.vlgmr.msra.gmra.mrb[4].mxu1 %vm916_vm6, %v1081_v33 }
 0x47b   : > { %4511 = vmatprep.mubr.msk.bf16.mxu1 %vm4804_vm4, %v4803_v8  ;;  %4510 = vmatpush3.bf16.msra.mxu1 %v1252_v46 }
 0x47c   : > { %4521 = vmatprep.subr.mxu1 %v4803_v8 }
 0x549   : > { %v1075_v34 = vpop.f32.mrb[2].mxu1 }
 0x54a   : > { %v4498_v35 = vpop.f32.mrb[3].mxu1  ;;  %v1079_v53 = vpack.c.bf16 %v1075_v34, %v1075_v34 }
 0x54d   : > { %v1154_v36 = vpop.f32.mrb[4].mxu1 }
 0x54e   : > { %v1158_v37 = vmul.f32 0.35355338, %v1154_v36  ;;  %v4503_v38 = vpop.f32.mrb[5].mxu1  ;;  %v848_v36 = vld [vmem:[%s4959_s2 + $0xc] sm:$0xf] }
 0x550   : > { %v1159_v39 = vsel %vm916_vm6, %v1158_v37, -inf }
 0x551   : > { %1160 = vmax.xlane.f32.xlu1 %v1159_v39 }
 0x5de   : > { %v1161_v40 = vpop.xlane.xlu1 %1160 }
 0x5df   : > { %v1162_v41 = vsub.f32 %v1158_v37, %v1161_v40  ;;  %v1725_v37 = vsel %vm1250_vm7, %v848_v36, 0  ;;  %v1833_v36 = vld [vmem:[%s4982_s5 + $0xd8] sm:$0xff] }
 0x5e1   : > { %v1163_v42 = vmul.f32 1.442695, %v1162_v41 }
 0x5e3   : > { %4743 = vpow2.f32 %v1163_v42 }
 0x5ed   : > { %v4744_v43 = vpop.eup %4743 }
 0x5ee   : > { %v1165_v44 = vsel %vm916_vm6, %v4744_v43, 0.0 }
 0x5ef   : > { %1166 = vadd.xlane.f32.xlu0 %v1165_v44 }
 0x605   : > { %1170 = vrot.lane.b32.xlu0 %v5036_v14, %s4809_s24  ;;  %s5500_s24 = scalar_lea.vmem %s5455_s8, %s4941_s30 }
 0x609   : > { %1342 = vrot.lane.b32.xlu0 %v5036_v14, %s4810_s25 }
 0x60d   : > { %1340 = vrot.lane.b32.xlu0 %v5036_v14, %s4811_s20 }
 0x67c   : > { %v1167_v47 = vpop.xlane.xlu0 %1166 }
 0x67d   : > { %4745 = vrcp.f32 %v1167_v47 }
 0x680   : > { %v1171_v48 = vpop.permute.xlu0 %1170 }
 0x681   : > { %4505 = vmatpush3.msra.mxu0 %v1171_v48  ;;  %v4088_v48 = vld [vmem:[%s5498_s0] ss:$0 sm:$0xff] }
 0x682   : > { %4515 = vmatprep.subr.bf16.mxu0 %v4803_v8 }
 0x684   : > { %v1343_v57 = vpop.permute.xlu0 %1342 }
 0x687   : > { %v4746_v50 = vpop.eup %4745 }
 0x688   : > { %v1169_v51 = vmul.f32 %v4746_v50, %v4744_v43  ;;  %v1341_v62 = vpop.permute.xlu0 %1340 }
 0x68a   : > { %4507 = vmatmul.mubr.msk.f32.vlgmr.msra.gmra.mrb[4].mxu0 %vm916_vm6, %v1169_v51 }
 0x68b   : > { %4516 = vmatpush3.bf16.msra.mxu0 %v1298_v52  ;;  %4517 = vmatprep.mubr.msk.bf16.mxu0 %vm4804_vm4, %v4803_v8 }
 0x68c   : > { %4526 = vmatprep.subr.mxu0 %v4803_v8 }
 0x68e   : > { %4518 = vmatmul.mubr.msk.bf16.vlgmr.msra.gmra.mrb[8].mxu0 %vm916_vm6, %v1079_v53 }
 0x68f   : > { %4528 = vmatprep.mubr.msk.f32.mxu0 %vm4804_vm4, %v4803_v8 }
 0x75d   : > { %v1242_v54 = vpop.f32.mrb[4].mxu0 }
 0x75e   : > { %v1246_v55 = vpack.c.bf16 %v1242_v54, %v1242_v54  ;;  %v4508_v56 = vpop.f32.mrb[5].mxu0 }
 0x760   : > { %4512 = vmatmul.mubr.msk.bf16.vlgmr.msra.gmra.mrb[8].mxu1 %vm916_vm6, %v1246_v55 }
 0x761   : > { %4522 = vmatpush3.xpose.msk.msra.mxu1 %vm916_vm6, %v1343_v57  ;;  %v1334_v58 = vpop.f32.mrb[8].mxu0  ;;  %4523 = vmatprep.mubr.msk.f32.mxu1 %vm4804_vm4, %v4803_v8 }
 0x762   : > { %v4519_v59 = vpop.f32.mrb[9].mxu0  ;;  %4531 = vmatprep.subr.bf16.mxu1 %v4803_v8 }
 0x763   : > { %v1337_v60 = vpop.f32.mrb[10].mxu0 }
 0x764   : > { %v4520_v61 = vpop.f32.mrb[11].mxu0 }
 0x768   : > { %4524 = vmatmul.mubr.msk.f32.vlgmr.msra.gmra.mrb[6].mxu1 %vm916_vm6, %v1341_v62  ;;  %v1806_v62 = vld [vmem:[%s4982_s5] sm:$0xff] }
 0x769   : > { %4533 = vmatprep.mubr.msk.bf16.mxu1 %vm4804_vm4, %v4803_v8  ;;  %4532 = vmatpush3.bf16.msra.mxu1 %v1511_v23 }
 0x76a   : > { %4547 = vmatprep.subr.bf16.mxu1 %v4803_v8 }
 0x833   : > { %v1288_v63 = vpop.f32.mrb[8].mxu1 }
 0x834   : > { %v5085_v0 = vadd.f32 %v1334_v58, %v1288_v63  ;;  %v4513_v1 = vpop.f32.mrb[9].mxu1  ;;  %v1814_v63 = vld [vmem:[%s4982_s5 + $0x40] sm:$0xff] }
 0x835   : > { %v1291_v2 = vpop.f32.mrb[10].mxu1  ;;  %v4092_v1 = vcombine.high %v1806_v62, %v1814_v63 }
 0x836   : > { %v4514_v3 = vpop.f32.mrb[11].mxu1  ;;  %v1815_v2 = vld [vmem:[%s4982_s5 + $0x48] sm:$0xff] }
 0x83b   : > { %v1414_v4 = vpop.f32.mrb[6].mxu1 }
 0x83c   : > { %v1418_v5 = vmul.f32 0.35355338, %v1414_v4  ;;  %v4525_v6 = vpop.f32.mrb[7].mxu1 }
 0x83d   : > { %v1830_v6 = vld [vmem:[%s4982_s5 + $0xc0] sm:$0xff] }
 0x83e   : > { %v1419_v7 = vsel %vm916_vm6, %v1418_v5, -inf }
 0x83f   : > { %1420 = vmax.xlane.f32.xlu1 %v1419_v7  ;;  %v1823_v7 = vld [vmem:[%s4982_s5 + $0x88] sm:$0xff] }
 0x850   : > { %1430 = vrot.lane.b32.xlu1 %v5036_v14, %s4812_s3  ;;  %s5501_s3 = sld [smem:[#allocation3_spill]] }
 0x854   : > { %1556 = vrot.lane.b32.xlu1 %v5036_v14, %s4813_s17 }
 0x856   : > { %p4262_p8 = scmp.ne.s32.totalorder %s5501_s3, 1 }
 0x858   : > { %1554 = vrot.lane.b32.xlu1 %v5036_v14, %s4814_s9 }
 0x8cc   : > { %v1421_v9 = vpop.xlane.xlu1 %1420 }
 0x8cd   : > { %v1422_v11 = vsub.f32 %v1418_v5, %v1421_v9  ;;  %v1822_v5 = vld [vmem:[%s4982_s5 + $0x80] sm:$0xff] }
 0x8ce   : > { %v4108_v9 = vcombine.high %v1822_v5, %v1830_v6 }
 0x8cf   : > { %v1423_v12 = vmul.f32 1.442695, %v1422_v11  ;;  %v1831_v11 = vld [vmem:[%s4982_s5 + $0xc8] sm:$0xff] }
 0x8d0   : > { %v1431_v13 = vpop.permute.xlu1 %1430 }
 0x8d1   : > { %4747 = vpow2.f32 %v1423_v12  ;;  %4527 = vmatpush3.msra.mxu0 %v1431_v13  ;;  %v4107_v12 = vcombine.low %v1822_v5, %v1830_v6  ;;  %v4109_v13 = vcombine.low %v1823_v7, %v1831_v11 }
 0x8d2   : > { %4537 = vmatprep.subr.mxu0 %v4803_v8 }
 0x8d4   : > { %v1557_v19 = vpop.permute.xlu1 %1556 }
 0x8d8   : > { %v1555_v21 = vpop.permute.xlu1 %1554 }
 0x8db   : > { %v4748_v15 = vpop.eup %4747 }
 0x8dc   : > { %v1425_v16 = vsel %vm916_vm6, %v4748_v15, 0.0 }
 0x8dd   : > { %1426 = vadd.xlane.f32.xlu0 %v1425_v16  ;;  %v1808_v16 = vld [vmem:[%s4982_s5 + $0x10] sm:$0xff] }
 0x96a   : > { %v1427_v17 = vpop.xlane.xlu0 %1426 }
 0x96b   : > { %4749 = vrcp.f32 %v1427_v17  ;;  %v1816_v17 = vld [vmem:[%s4982_s5 + $0x50] sm:$0xff] }
 0x96c   : > { %v4095_v22 = vcombine.low %v1808_v16, %v1816_v17 }
 0x975   : > { %v4750_v18 = vpop.eup %4749 }
 0x976   : > { %v1429_v20 = vmul.f32 %v4750_v18, %v4748_v15  ;;  %v4110_v15 = vcombine.high %v1823_v7, %v1831_v11  ;;  %v1809_v18 = vld [vmem:[%s4982_s5 + $0x18] sm:$0xff]  ;;  %v4612_v11 = vld [vmem:[%s4988_s1 + $0xc0] sm:$0xff]  }
 0x978   : > { %4529 = vmatmul.mubr.msk.f32.vlgmr.msra.gmra.mrb[6].mxu0 %vm916_vm6, %v1429_v20  ;;  %v4096_v20 = vcombine.high %v1808_v16, %v1816_v17  ;;  %v4616_v16 = vld [vmem:[%s4988_s1 + $0xc8] sm:$0xff]  }
 0x979   : > { %4538 = vmatpush3.xpose.msk.msra.mxu0 %vm916_vm6, %v1557_v19  ;;  %4539 = vmatprep.mubr.msk.f32.mxu0 %vm4804_vm4, %v4803_v8  ;;  %v4816_v19 = vmov 0   ;;  %v4617_v17 = vld [vmem:[%s4988_s1 + $0x8] sm:$0xff]  }
 0x97a   : > { %4542 = vmatprep.subr.mxu0 %v4803_v8 }
 0x97c   : > { %4540 = vmatmul.mubr.msk.f32.vlgmr.msra.gmra.mrb[12].mxu0 %vm916_vm6, %v1555_v21  ;;  %v1817_v21 = vld [vmem:[%s4982_s5 + $0x58] sm:$0xff] }
 0x97d   : > { %4544 = vmatprep.mubr.msk.f32.mxu0 %vm4804_vm4, %v4803_v8  ;;  %v4097_v23 = vcombine.low %v1809_v18, %v1817_v21 }
 0xa4b   : > { %v1502_v24 = vpop.f32.mrb[6].mxu0 }
 0xa4c   : > { %v1506_v25 = vpack.c.bf16 %v1502_v24, %v1502_v24  ;;  %v4530_v26 = vpop.f32.mrb[7].mxu0  ;;  %v4098_v24 = vcombine.high %v1809_v18, %v1817_v21  ;;  %v4618_v18 = vld [vmem:[%s4988_s1 + $0x88] sm:$0xff]   ;;  %v4621_v21 = vld [vmem:[%s4988_s1 + $0x10] sm:$0xff]  }
 0xa4e   : > { %4534 = vmatmul.mubr.msk.bf16.vlgmr.msra.gmra.mrb[12].mxu1 %vm916_vm6, %v1506_v25 }
 0xa4f   : > { %v1628_v27 = vpop.f32.mrb[12].mxu0  ;;  %4549 = vmatprep.mubr.msk.bf16.mxu1 %vm4804_vm4, %v4803_v8  ;;  %4548 = vmatpush3.bf16.msra.mxu1 %v1725_v37 }
 0xa50   : > { %v1632_v28 = vmul.f32 0.35355338, %v1628_v27  ;;  %v4541_v29 = vpop.f32.mrb[13].mxu0 }
 0xa51   : > { %v4089_v29 = vld [vmem:[%s5499_s29] ss:$0 sm:$0xff] }
 0xa52   : > { %v1633_v30 = vsel %vm916_vm6, %v1632_v28, -inf }
 0xa53   : > { %1634 = vmax.xlane.f32.xlu1 %v1633_v30 }
 0xae0   : > { %v1635_v31 = vpop.xlane.xlu1 %1634 }
 0xae1   : > { %v1636_v32 = vsub.f32 %v1632_v28, %v1635_v31  ;;  %v4090_v31 = vld [vmem:[%s5500_s24] ss:$0 sm:$0xff] }
 0xae3   : > { %v1637_v33 = vmul.f32 1.442695, %v1636_v32 }
 0xae5   : > { %4751 = vpow2.f32 %v1637_v33  ;;  %v1824_v33 = vld [vmem:[%s4982_s5 + $0x90] sm:$0xff] }
 0xaef   : > { %v4752_v34 = vpop.eup %4751 }
 0xaf0   : > { %v1639_v35 = vsel %vm916_vm6, %v4752_v34, 0.0 }
 0xaf1   : > { %1640 = vadd.xlane.f32.xlu0 %v1639_v35  ;;  %v1825_v35 = vld [vmem:[%s4982_s5 + $0x98] sm:$0xff] }
 0xb07   : > { %1644 = vrot.lane.b32.xlu0 %v5036_v14, %s4815_s18  ;;  %s5503_s18 = sld [smem:[#allocation18_spill]] (!%p4262_p8) }
 0xb21   : > { %v1547_v8 = vpop.f32.mrb[12].mxu1 }
 0xb22   : > { %v1553_v38 = vadd.f32 %v1547_v8, %v5085_v0  ;;  %v4535_v39 = vpop.f32.mrb[13].mxu1  ;;  %v1807_v0 = vld [vmem:[%s4982_s5 + $0x8] sm:$0xff] }
 0xb23   : > { %v1550_v40 = vpop.f32.mrb[14].mxu1  ;;  %v4093_v3 = vcombine.low %v1807_v0, %v1815_v2  ;;  %v4094_v4 = vcombine.high %v1807_v0, %v1815_v2  ;;  %v4114_v39 = vcombine.high %v1825_v35, %v1833_v36  ;;  %v1836_v0 = vld [vmem:[%s4982_s5 + $0xf0] sm:$0xff]  ;;  %v1837_v2 = vld [vmem:[%s4982_s5 + $0xf8] sm:$0xff] }
 0xb24   : > { %v4536_v41 = vpop.f32.mrb[15].mxu1  ;;  %v1810_v40 = vld [vmem:[%s4982_s5 + $0x20] sm:$0xff] }
 0xb25   : > { %2384 = vmatprep.subr.bf16.mxu1 %v4094_v4  ;;  %v1818_v41 = vld [vmem:[%s4982_s5 + $0x60] sm:$0xff] }
 0xb7e   : > { %v1641_v42 = vpop.xlane.xlu0 %1640 }
 0xb7f   : > { %4753 = vrcp.f32 %v1641_v42  ;;  %v1811_v42 = vld [vmem:[%s4982_s5 + $0x28] sm:$0xff] }
 0xb82   : > { %v1645_v43 = vpop.permute.xlu0 %1644 }
 0xb83   : > { %4543 = vmatpush3.msra.mxu0 %v1645_v43  ;;  %v1819_v43 = vld [vmem:[%s4982_s5 + $0x68] sm:$0xff] }
 0xb84   : > { %2343 = vmatprep.subr.bf16.mxu0 %v4092_v1  ;;  %v1829_v1 = vld [vmem:[%s4982_s5 + $0xb8] sm:$0xff] }
 0xb85   : > { %v4122_v5 = vcombine.high %v1829_v1, %v1837_v2  ;;  %v4121_v7 = vcombine.low %v1829_v1, %v1837_v2 }
 0xb89   : > { %v4754_v44 = vpop.eup %4753 }
 0xb8a   : > { %v1643_v45 = vmul.f32 %v4754_v44, %v4752_v34  ;;  %v1832_v34 = vld [vmem:[%s4982_s5 + $0xd0] sm:$0xff] }
 0xb8b   : > { %v4111_v44 = vcombine.low %v1824_v33, %v1832_v34 }
 0xb8c   : > { %4545 = vmatmul.mubr.msk.f32.vlgmr.msra.gmra.mrb[14].mxu0 %vm916_vm6, %v1643_v45  ;;  %v4113_v45 = vcombine.low %v1825_v35, %v1833_v36  ;;  %v4635_v35 = vld [vmem:[%s4988_s1 + $0x70] sm:$0xff]  }
 0xb8d   : > { %2375 = vmatprep.mubr.bf16.mxu0 %v4816_v19  ;;  %v4636_v36 = vld [vmem:[%s4988_s1 + $0xf0] sm:$0xff]  }
 0xc5f   : > { %v1716_v14 = vpop.f32.mrb[14].mxu0 }
 0xc60   : > { %v1720_v46 = vpack.c.bf16 %v1716_v14, %v1716_v14  ;;  %v4546_v47 = vpop.f32.mrb[15].mxu0  ;;  %v4100_v14 = vcombine.high %v1810_v40, %v1818_v41 }
 0xc61   : > { %v1826_v47 = vld [vmem:[%s4982_s5 + $0xa0] sm:$0xff] }
 0xc62   : > { %4550 = vmatmul.mubr.msk.bf16.vlgmr.msra.gmra.mrb[16].mxu1 %vm916_vm6, %v1720_v46  ;;  %v4102_v46 = vcombine.high %v1811_v42, %v1819_v43 }
 0xc63   : > { %2385 = vmatpush1.bf16.msra.mxu1 %v4093_v3  ;;  %2416 = vmatprep.mubr.bf16.mxu1 %v4816_v19 }
 0xc64   : > { %2386 = vmatprep.subr.bf16.mxu1 %v4110_v15  ;;  %v4615_v15 = vld [vmem:[%s4988_s1 + $0x48] sm:$0xff]  }
 0xc67   : > { %2387 = vmatpush1.bf16.msra.mxu1 %v4109_v13  ;;  %v4614_v13 = vld [vmem:[%s4988_s1 + $0x80] sm:$0xff]  }
 0xc68   : > { %2466 = vmatprep.subr.bf16.mxu1 %v4098_v24  ;;  %v4624_v24 = vld [vmem:[%s4988_s1 + $0xd8] sm:$0xff]  }
 0xd35   : > { %v1761_v49 = vpop.f32.mrb[16].mxu1 }
 0xd36   : > { %v1767_v50 = vadd.f32 %v1761_v49, %v1553_v38  ;;  %v4551_v51 = vpop.f32.mrb[17].mxu1  ;;  %v4112_v38 = vcombine.high %v1824_v33, %v1832_v34  ;;  %v1827_v49 = vld [vmem:[%s4982_s5 + $0xa8] sm:$0xff] }
 0xd37   : > { %v1764_v52 = vpop.f32.mrb[18].mxu1  ;;  %v4099_v51 = vcombine.low %v1810_v40, %v1818_v41  ;;  %v4633_v33 = vld [vmem:[%s4988_s1 + $0x28] sm:$0xff]   ;;  %v4640_v40 = vld [vmem:[%s4988_s1 + $0xf8] sm:$0xff]  }
 0xd38   : > { %v1774_v53 = vadd.f32 %v4088_v48, %v1767_v50  ;;  %v4552_v54 = vpop.f32.mrb[19].mxu1  ;;  %v1834_v48 = vld [vmem:[%s4982_s5 + $0xe0] sm:$0xff]  ;;  %v1835_v50 = vld [vmem:[%s4982_s5 + $0xe8] sm:$0xff]  ;;  %v4101_v52 = vcombine.low %v1811_v42, %v1819_v43  ;;  %v4641_v41 = vld [vmem:[%s4988_s1 + $0x38] sm:$0xff]  }
 0xd39   : > { %v4118_v54 = vcombine.high %v1827_v49, %v1835_v50  ;;  %v4634_v34 = vld [vmem:[%s4988_s1 + $0xa8] sm:$0xff]   ;;  %v4642_v42 = vld [vmem:[%s4988_s1 + $0xb8] sm:$0xff]   ;;  %v4643_v43 = vld [vmem:[%s4988_s1 + $0x140] sm:$0xff]  }
 0xd3a   : > { %v1775_v55 = vadd.f32 %v1774_v53, %v5020_v10  ;;  %v4091_v10 = vcombine.low %v1806_v62, %v1814_v63  ;;  %v4116_v53 = vcombine.high %v1826_v47, %v1834_v48  ;;  %v1828_v63 = vld [vmem:[%s4982_s5 + $0xb0] sm:$0xff] }
 0xd3b   : > { %v4120_v4 = vcombine.high %v1828_v63, %v1836_v0  ;;  %v4119_v6 = vcombine.low %v1828_v63, %v1836_v0 }
 0xd3c   : > { %v1778_v56 = vsel %vm869_vm5, %v1775_v55, 0.0  ;;  %2344 = vmatpush1.bf16.msra.mxu0 %v4091_v10 }
 0xd3d   : > { %1779 = vadd.xlane.f32.xlu0 %v1778_v56  ;;  %2345 = vmatprep.subr.bf16.mxu0 %v4108_v9  ;;  %v1820_v56 = vld [vmem:[%s4982_s5 + $0x70] sm:$0xff]  ;;  %v4611_v9 = vld [vmem:[%s4988_s1 + $0x40] sm:$0xff]  }
 0xd40   : > { %2346 = vmatpush1.bf16.msra.mxu0 %v4107_v12  ;;  %v4613_v12 = vld [vmem:[%s4988_s1] sm:$0xff]  }
 0xd41   : > { %2425 = vmatprep.subr.bf16.mxu0 %v4096_v20  ;;  %v4620_v20 = vld [vmem:[%s4988_s1 + $0xd0] sm:$0xff]  }
 0xdca   : > { %v1780_v57 = vpop.xlane.xlu0 %1779 }
 0xdcb   : > { %v1782_v58 = vmul.f32 0.03125, %v1780_v57  ;;  %v1813_v57 = vld [vmem:[%s4982_s5 + $0x38] sm:$0xff] }
 0xdcd   : > { %v1783_v59 = vsub.f32 %v1775_v55, %v1782_v58  ;;  %v1812_v55 = vld [vmem:[%s4982_s5 + $0x30] sm:$0xff]  ;;  %v1821_v58 = vld [vmem:[%s4982_s5 + $0x78] sm:$0xff] }
 0xdce   : > { %v4106_v62 = vcombine.high %v1813_v57, %v1821_v58  ;;  %v4103_v10 = vcombine.low %v1812_v55, %v1820_v56  ;;  %v4105_v3 = vcombine.low %v1813_v57, %v1821_v58 }
 0xdcf   : > { %v1784_v60 = vmul.f32 %v1783_v59, %v1783_v59 }
 0xdd1   : > { %v1785_v61 = vsel %vm869_vm5, %v1784_v60, 0.0  ;;  %v4117_v60 = vcombine.low %v1827_v49, %v1835_v50 }
 0xdd2   : > { %1786 = vadd.xlane.f32.xlu1 %v1785_v61  ;;  %v4104_v61 = vcombine.high %v1812_v55, %v1820_v56 }
 0xe5f   : > { %v1787_v25 = vpop.xlane.xlu1 %1786 }
 0xe60   : > { %v1788_v26 = vmul.f32 0.03125, %v1787_v25  ;;  %v4625_v25 = vld [vmem:[%s4988_s1 + $0x18] sm:$0xff]  }
 0xe62   : > { %v1789_v27 = vadd.f32 1e-05, %v1788_v26  ;;  %v4626_v26 = vld [vmem:[%s4988_s1 + $0x98] sm:$0xff]  }
 0xe64   : > { %4755 = vrsqrt.f32 %v1789_v27  ;;  %v4627_v27 = vld [vmem:[%s4988_s1 + $0x60] sm:$0xff]  }
 0xe6e   : > { %v4756_v28 = vpop.eup %4755 }
 0xe6f   : > { %v1791_v30 = vmul.f32 %v4756_v28, %v1783_v59  ;;  %v4115_v59 = vcombine.low %v1826_v47, %v1834_v48  ;;  %v4628_v28 = vld [vmem:[%s4988_s1 + $0xe0] sm:$0xff]   ;;  %v5233_v47 = vld [vmem:[%s4977_s28 + $0x8] sm:$0xff] }
 0xe71   : > { %v1798_v32 = vmul.f32 %v4089_v29, %v1791_v30  ;;  %v4629_v29 = vld [vmem:[%s4988_s1 + $0x20] sm:$0xff]  }
 0xe72   : > { %v4630_v30 = vld [vmem:[%s4988_s1 + $0xa0] sm:$0xff]  }
 0xe73   : > { %v5151_v37 = vadd.f32 %v4090_v31, %v1798_v32  ;;  %v4631_v31 = vld [vmem:[%s4988_s1 + $0x68] sm:$0xff]  }
 0xe74   : > { %v4632_v32 = vld [vmem:[%s4988_s1 + $0xe8] sm:$0xff]  }
 0xe75   : > { %v5155_v8 = vpack.c.bf16 %v5151_v37, %v5151_v37 }
 0xe77   : > { %4123 = vmatmul.mubr.msk.bf16.vlgmr.msra.gmra.mrb[16].mxu0 %vm869_vm5, %v5155_v8  ;;  %4124 = vmatmul.mubr.msk.bf16.vlgmr.msra.gmra.mrb[20].mxu1 %vm869_vm5, %v5155_v8 }
 0xe78   : > { %2426 = vmatpush1.bf16.msra.mxu0 %v4095_v22  ;;  %2467 = vmatpush1.bf16.msra.mxu1 %v4097_v23  ;;  %v4622_v22 = vld [vmem:[%s4988_s1 + $0x90] sm:$0xff]   ;;  %v4623_v23 = vld [vmem:[%s4988_s1 + $0x58] sm:$0xff]  }
 0xe79   : > { %2427 = vmatprep.subr.bf16.mxu0 %v4112_v38  ;;  %2468 = vmatprep.subr.bf16.mxu1 %v4114_v39  ;;  %v4638_v38 = vld [vmem:[%s4988_s1 + $0xb0] sm:$0xff]   ;;  %v4639_v39 = vld [vmem:[%s4988_s1 + $0x78] sm:$0xff]  }
 0xe7a   : > { %2457 = vmatprep.mubr.bf16.mxu0 %v4816_v19  ;;  %2498 = vmatprep.mubr.bf16.mxu1 %v4816_v19 }
 0xe7c   : > { %2428 = vmatpush1.bf16.msra.mxu0 %v4111_v44  ;;  %2469 = vmatpush1.bf16.msra.mxu1 %v4113_v45  ;;  %v4644_v44 = vld [vmem:[%s4988_s1 + $0x1c0] sm:$0xff]   ;;  %v2100_v45 = vlaneseq }
 0xe7d   : > { %2507 = vmatprep.subr.bf16.mxu0 %v4100_v14  ;;  %2548 = vmatprep.subr.bf16.mxu1 %v4102_v46 }
 0xe7e   : > { %v5229_v14 = vshrl.u32 %v2100_v45, 7  ;;  %v4654_v45 = vld [vmem:[%s4988_s1 + $0x190] sm:$0xff]  }
 0xe7f   : > { %4125 = vmatmul.mubr.msk.bf16.vlgmr.msra.gmra.mrb[20].mxu0 %vm869_vm5, %v5155_v8  ;;  %4126 = vmatmul.mubr.msk.bf16.vlgmr.msra.gmra.mrb[24].mxu1 %vm869_vm5, %v5155_v8 }
 0xe80   : > { %2508 = vmatpush1.bf16.msra.mxu0 %v4099_v51  ;;  %2549 = vmatpush1.bf16.msra.mxu1 %v4101_v52  ;;  %v2126_v46 = vsub.s32 6, %v5229_v14  ;;  %v2102_v49 = vsub.s32 0, %v5229_v14  ;;  %v2110_v50 = vsub.s32 2, %v5229_v14  ;;  %v5243_v51 = vld [vmem:[%s4977_s28] sm:$0xff]  ;;  %v2106_v52 = vsub.s32 1, %v5229_v14 }
 0xe81   : > { %2509 = vmatprep.subr.bf16.mxu0 %v4116_v53  ;;  %2550 = vmatprep.subr.bf16.mxu1 %v4118_v54  ;;  %v2114_v53 = vsub.s32 3, %v5229_v14 }
 0xe82   : > { %2539 = vmatprep.mubr.bf16.mxu0 %v4816_v19  ;;  %2580 = vmatprep.mubr.bf16.mxu1 %v4816_v19  ;;  %v5238_v48 = vrot.slane %v5233_v47, %v2126_v46  ;;  %v2103_v54 = vrot.slane %v5243_v51, %v2102_v49  ;;  %v2111_v55 = vrot.slane %v5243_v51, %v2110_v50 }
 0xe83   : > { %v2107_v56 = vrot.slane %v5243_v51, %v2106_v52  ;;  %v2115_v57 = vrot.slane %v5243_v51, %v2114_v53 }
 0xe84   : > { %2510 = vmatpush1.bf16.msra.mxu0 %v4115_v59  ;;  %2551 = vmatpush1.bf16.msra.mxu1 %v4117_v60 }
 0xe85   : > { %2589 = vmatprep.subr.bf16.mxu0 %v4104_v61  ;;  %2630 = vmatprep.subr.bf16.mxu1 %v4106_v62 }
 0xe87   : > { %4127 = vmatmul.mubr.msk.bf16.vlgmr.msra.gmra.mrb[24].mxu0 %vm869_vm5, %v5155_v8  ;;  %4128 = vmatmul.mubr.msk.bf16.vlgmr.msra.gmra.mrb[28].mxu1 %vm869_vm5, %v5155_v8 }
 0xe88   : > { %2590 = vmatpush1.bf16.msra.mxu0 %v4103_v10  ;;  %2631 = vmatpush1.bf16.msra.mxu1 %v4105_v3  ;;  %v2122_v3 = vsub.s32 5, %v5229_v14 }
 0xe89   : > { %2591 = vmatprep.subr.bf16.mxu0 %v4120_v4  ;;  %2632 = vmatprep.subr.bf16.mxu1 %v4122_v5  ;;  %v2130_v4 = vsub.s32 7, %v5229_v14 }
 0xe8a   : > { %2621 = vmatprep.mubr.bf16.mxu0 %v4816_v19  ;;  %2662 = vmatprep.mubr.bf16.mxu1 %v4816_v19  ;;  %v4619_v19 = vld [vmem:[%s4988_s1 + $0x50] sm:$0xff]  }
 0xe8c   : > { %2592 = vmatpush1.bf16.msra.mxu0 %v4119_v6  ;;  %2633 = vmatpush1.bf16.msra.mxu1 %v4121_v7 }
 0xe8d   : > { %4300 = vmatprep.subr.bf16.mxu0 %v4611_v9  ;;  %4322 = vmatprep.subr.bf16.mxu1 %v4612_v11 }
 0xe8f   : > { %4129 = vmatmul.mubr.msk.bf16.vlgmr.msra.gmra.mrb[28].mxu0 %vm869_vm5, %v5155_v8  ;;  %4130 = vmatmul.mubr.msk.bf16.vlgmr.msra.gmra.mrb[32].mxu1 %vm869_vm5, %v5155_v8  ;;  %v4637_v8 = vld [vmem:[%s4988_s1 + $0x30] sm:$0xff]  }
 0xe90   : > { %4301 = vmatpush3.bf16.msra.mxu0 %v4613_v12  ;;  %4323 = vmatpush3.bf16.msra.mxu1 %v4614_v13 }
 0xe91   : > { %4302 = vmatprep.subr.bf16.mxu0 %v4615_v15  ;;  %4324 = vmatprep.subr.bf16.mxu1 %v4616_v16  ;;  %v2123_v16 = vrot.slane %v5243_v51, %v2122_v3 }
 0xe94   : > { %4303 = vmatpush3.bf16.msra.mxu0 %v4617_v17  ;;  %4325 = vmatpush3.bf16.msra.mxu1 %v4618_v18  ;;  %v2131_v17 = vrot.slane %v5243_v51, %v2130_v4  ;;  %v4645_v18 = vld [vmem:[%s4988_s1 + $0x100] sm:$0xff]  }
 0xe95   : > { %4304 = vmatprep.subr.bf16.mxu0 %v4619_v19  ;;  %4326 = vmatprep.subr.bf16.mxu1 %v4620_v20  ;;  %v4646_v19 = vld [vmem:[%s4988_s1 + $0x180] sm:$0xff]  }
 0xe98   : > { %4305 = vmatpush3.bf16.msra.mxu0 %v4621_v21  ;;  %4327 = vmatpush3.bf16.msra.mxu1 %v4622_v22  ;;  %v4647_v22 = vld [vmem:[%s4988_s1 + $0x148] sm:$0xff]  }
 0xe99   : > { %4306 = vmatprep.subr.bf16.mxu0 %v4623_v23  ;;  %4328 = vmatprep.subr.bf16.mxu1 %v4624_v24  ;;  %v4648_v23 = vld [vmem:[%s4988_s1 + $0x1c8] sm:$0xff]  }
 0xe9c   : > { %4307 = vmatpush3.bf16.msra.mxu0 %v4625_v25  ;;  %4329 = vmatpush3.bf16.msra.mxu1 %v4626_v26 }
 0xe9d   : > { %4308 = vmatprep.subr.bf16.mxu0 %v4627_v27  ;;  %4330 = vmatprep.subr.bf16.mxu1 %v4628_v28 }
 0xea0   : > { %4309 = vmatpush3.bf16.msra.mxu0 %v4629_v29  ;;  %4331 = vmatpush3.bf16.msra.mxu1 %v4630_v30 }
 0xea1   : > { %4310 = vmatprep.subr.bf16.mxu0 %v4631_v31  ;;  %4332 = vmatprep.subr.bf16.mxu1 %v4632_v32  ;;  %v4649_v32 = vld [vmem:[%s4988_s1 + $0x108] sm:$0xff]  }
 0xea4   : > { %4311 = vmatpush3.bf16.msra.mxu0 %v4633_v33  ;;  %4333 = vmatpush3.bf16.msra.mxu1 %v4634_v34  ;;  %v4650_v33 = vld [vmem:[%s4988_s1 + $0x188] sm:$0xff]  }
 0xea5   : > { %4312 = vmatprep.subr.bf16.mxu0 %v4635_v35  ;;  %4334 = vmatprep.subr.bf16.mxu1 %v4636_v36  ;;  %v4651_v36 = vld [vmem:[%s4988_s1 + $0x150] sm:$0xff]  }
 0xea8   : > { %4313 = vmatpush3.bf16.msra.mxu0 %v4637_v8  ;;  %4335 = vmatpush3.bf16.msra.mxu1 %v4638_v38  ;;  %v4652_v8 = vld [vmem:[%s4988_s1 + $0x1d0] sm:$0xff]  }
 0xea9   : > { %4314 = vmatprep.subr.bf16.mxu0 %v4639_v39  ;;  %4336 = vmatprep.subr.bf16.mxu1 %v4640_v40  ;;  %v2135_v40 = vrot.slane %v5233_v47, %v2102_v49 }
 0xeac   : > { %4315 = vmatpush3.bf16.msra.mxu0 %v4641_v41  ;;  %4337 = vmatpush3.bf16.msra.mxu1 %v4642_v42  ;;  %v2143_v41 = vrot.slane %v5233_v47, %v2110_v50 }
 0xead   : > { %4344 = vmatprep.subr.bf16.mxu0 %v4643_v43  ;;  %4366 = vmatprep.subr.bf16.mxu1 %v4644_v44  ;;  %v4653_v44 = vld [vmem:[%s4988_s1 + $0x110] sm:$0xff]  }
 0xf4a   : > { %v2377_v58 = vpop.f32.mrb[16].mxu0  ;;  %v2418_v59 = vpop.f32.mrb[20].mxu1 }
 0xf4b   : > { %v2378_v60 = vadd.f32 %v2377_v58, %v2103_v54  ;;  %v2419_v61 = vadd.f32 %v2418_v59, %v2111_v55  ;;  %v2379_v62 = vpop.f32.mrb[17].mxu0  ;;  %v2420_v63 = vpop.f32.mrb[21].mxu1  ;;  %v4655_v54 = vld [vmem:[%s4988_s1 + $0x158] sm:$0xff]  }
 0xf4c   : > { %v2380_v0 = vadd.f32 %v2379_v62, %v2107_v56  ;;  %v2421_v1 = vadd.f32 %v2420_v63, %v2115_v57  ;;  %v2381_v2 = vpop.f32.mrb[18].mxu0  ;;  %v2422_v10 = vpop.f32.mrb[22].mxu1  ;;  %v4656_v55 = vld [vmem:[%s4988_s1 + $0x1d8] sm:$0xff]  }
 0xf4d   : > { %v2671_v5 = vmax.f32 %v2378_v60, 0.0  ;;  %v2673_v6 = vmax.f32 %v2419_v61, 0.0  ;;  %v2382_v7 = vpop.f32.mrb[19].mxu0  ;;  %v2423_v9 = vpop.f32.mrb[23].mxu1  ;;  %v4657_v62 = vld [vmem:[%s4988_s1 + $0x118] sm:$0xff]   ;;  %v4659_v10 = vld [vmem:[%s4988_s1 + $0x160] sm:$0xff]  }
 0xf4e   : > { %v2672_v11 = vmax.f32 %v2380_v0, 0.0  ;;  %v2674_v12 = vmax.f32 %v2421_v1, 0.0  ;;  %v4658_v63 = vld [vmem:[%s4988_s1 + $0x198] sm:$0xff]   ;;  %v2118_v0 = vsub.s32 4, %v5229_v14  ;;  %v4661_v7 = vld [vmem:[%s4988_s1 + $0x120] sm:$0xff]  }
 0xf4f   : > { %v2687_v20 = vpack.c.bf16 %v2671_v5, %v2671_v5  ;;  %v2689_v21 = vpack.c.bf16 %v2673_v6, %v2673_v6  ;;  %v4660_v5 = vld [vmem:[%s4988_s1 + $0x1e0] sm:$0xff]   ;;  %v4705_v14 = vld [vmem:[%s4988_s1 + $0x238] sm:$0xff]  }
 0xf50   : > { %v2688_v13 = vpack.c.bf16 %v2672_v11, %v2672_v11  ;;  %v2690_v15 = vpack.c.bf16 %v2674_v12, %v2674_v12  ;;  %v2151_v6 = vrot.slane %v5233_v47, %v2118_v0  ;;  %v4662_v9 = vld [vmem:[%s4988_s1 + $0x1a0] sm:$0xff]   ;;  %v4663_v11 = vld [vmem:[%s4988_s1 + $0x168] sm:$0xff]  }
 0xf51   : > { %v4664_v12 = vld [vmem:[%s4988_s1 + $0x1e8] sm:$0xff]  }
 0xf52   : > { %v5267_v24 = vpop.f32.mrb[20].mxu0  ;;  %v5269_v25 = vpop.f32.mrb[24].mxu1  ;;  %3509 = vmatprep.mubr.bf16.mxu0 %v2688_v13  ;;  %3549 = vmatprep.mubr.bf16.mxu1 %v2690_v15 }
 0xf53   : > { %v2461_v26 = vpop.f32.mrb[21].mxu0  ;;  %v2502_v27 = vpop.f32.mrb[25].mxu1  ;;  %3510 = vmatmul.mubr.bf16.vlgmr.msra.gmra.mrb[32].mxu0 %v2687_v20  ;;  %3550 = vmatmul.mubr.bf16.vlgmr.msra.gmra.mrb[36].mxu1 %v2689_v21 }
 0xf54   : > { %v2462_v28 = vadd.f32 %v2461_v26, %v2123_v16  ;;  %v2503_v29 = vadd.f32 %v2502_v27, %v2131_v17  ;;  %4345 = vmatpush3.bf16.msra.mxu0 %v4645_v18  ;;  %4367 = vmatpush3.bf16.msra.mxu1 %v4646_v19  ;;  %v2463_v30 = vpop.f32.mrb[22].mxu0  ;;  %v2504_v31 = vpop.f32.mrb[26].mxu1  ;;  %v2119_v26 = vrot.slane %v5243_v51, %v2118_v0  ;;  %v4686_v0 = vld [vmem:[%s4988_s1 + $0x290] sm:$0xff]  }
 0xf55   : > { %v2464_v34 = vpop.f32.mrb[23].mxu0  ;;  %v2505_v35 = vpop.f32.mrb[27].mxu1  ;;  %4346 = vmatprep.subr.bf16.mxu0 %v4647_v22  ;;  %4368 = vmatprep.subr.bf16.mxu1 %v4648_v23  ;;  %v4665_v22 = vld [vmem:[%s4988_s1 + $0x128] sm:$0xff]   ;;  %v4668_v30 = vld [vmem:[%s4988_s1 + $0x1f0] sm:$0xff]   ;;  %v2139_v31 = vrot.slane %v5233_v47, %v2106_v52  ;;  %v4672_v52 = vld [vmem:[%s4988_s1 + $0x1f8] sm:$0xff]  }
 0xf56   : > { %v2676_v38 = vmax.f32 %v2462_v28, 0.0  ;;  %v2678_v39 = vmax.f32 %v2503_v29, 0.0  ;;  %v4666_v23 = vld [vmem:[%s4988_s1 + $0x1a8] sm:$0xff]   ;;  %v4667_v29 = vld [vmem:[%s4988_s1 + $0x170] sm:$0xff]   ;;  %v4671_v35 = vld [vmem:[%s4988_s1 + $0x178] sm:$0xff]  }
 0xf58   : > { %v2692_v42 = vpack.c.bf16 %v2676_v38, %v2676_v38  ;;  %v2694_v43 = vpack.c.bf16 %v2678_v39, %v2678_v39  ;;  %4347 = vmatpush3.bf16.msra.mxu0 %v4649_v32  ;;  %4369 = vmatpush3.bf16.msra.mxu1 %v4650_v33  ;;  %v2147_v32 = vrot.slane %v5233_v47, %v2114_v53  ;;  %v4673_v53 = vld [vmem:[%s4988_s1 + $0x138] sm:$0xff]  }
 0xf59   : > { %4348 = vmatprep.subr.bf16.mxu0 %v4651_v36  ;;  %4370 = vmatprep.subr.bf16.mxu1 %v4652_v8  ;;  %v2460_v33 = vadd.f32 %v5267_v24, %v2119_v26  ;;  %v4674_v38 = vld [vmem:[%s4988_s1 + $0x1b8] sm:$0xff]   ;;  %v4675_v24 = vld [vmem:[%s4988_s1 + $0x240] sm:$0xff]   ;;  %v2163_v26 = vrot.slane %v5233_v47, %v2130_v4 }
 0xf5a   : > { %v2541_v56 = vpop.f32.mrb[24].mxu0  ;;  %v2582_v57 = vpop.f32.mrb[28].mxu1  ;;  %3589 = vmatprep.mubr.bf16.mxu0 %v2692_v42  ;;  %3629 = vmatprep.mubr.bf16.mxu1 %v2694_v43  ;;  %v4677_v43 = vld [vmem:[%s4988_s1 + $0x200] sm:$0xff]   ;;  %v4706_v4 = vld [vmem:[%s4988_s1 + $0x2b8] sm:$0xff]  }
 0xf5b   : > { %v5281_v49 = vadd.f32 %v2541_v56, %v2135_v40  ;;  %v5283_v50 = vadd.f32 %v2582_v57, %v2143_v41  ;;  %v2543_v58 = vpop.f32.mrb[25].mxu0  ;;  %v2584_v59 = vpop.f32.mrb[29].mxu1  ;;  %v2675_v39 = vmax.f32 %v2460_v33, 0.0  ;;  %v4679_v56 = vld [vmem:[%s4988_s1 + $0x248] sm:$0xff]  }
 0xf5c   : > { %4349 = vmatpush3.bf16.msra.mxu0 %v4653_v44  ;;  %4371 = vmatpush3.bf16.msra.mxu1 %v4654_v45  ;;  %v2545_v60 = vpop.f32.mrb[26].mxu0  ;;  %v2586_v61 = vpop.f32.mrb[30].mxu1  ;;  %v2544_v36 = vadd.f32 %v2543_v58, %v2139_v31  ;;  %v2585_v8 = vadd.f32 %v2584_v59, %v2147_v32  ;;  %v4680_v57 = vld [vmem:[%s4988_s1 + $0x2c8] sm:$0xff]   ;;  %v4707_v31 = vld [vmem:[%s4988_s1 + $0x340] sm:$0xff]  }
 0xf5d   : > { %v2546_v1 = vpop.f32.mrb[27].mxu0  ;;  %v2587_v2 = vpop.f32.mrb[31].mxu1  ;;  %4350 = vmatprep.subr.bf16.mxu0 %v4655_v54  ;;  %4372 = vmatprep.subr.bf16.mxu1 %v4656_v55  ;;  %v2691_v44 = vpack.c.bf16 %v2675_v39, %v2675_v39  ;;  %v4678_v54 = vld [vmem:[%s4988_s1 + $0x280] sm:$0xff]   ;;  %v4681_v59 = vld [vmem:[%s4988_s1 + $0x208] sm:$0xff]   ;;  %v4683_v61 = vld [vmem:[%s4988_s1 + $0x250] sm:$0xff]   ;;  %v2681_v32 = vmax.f32 %v5283_v50, 0.0 }
 0xf5e   : > { %v2680_v41 = vmax.f32 %v2544_v36, 0.0  ;;  %v2682_v42 = vmax.f32 %v2585_v8, 0.0  ;;  %v4682_v60 = vld [vmem:[%s4988_s1 + $0x288] sm:$0xff]   ;;  %v4687_v1 = vld [vmem:[%s4988_s1 + $0x258] sm:$0xff]   ;;  %v4716_v39 = vld [vmem:[%s4988_s1 + $0x3d0] sm:$0xff]  }
 0xf5f   : > { %v4688_v2 = vld [vmem:[%s4988_s1 + $0x2d8] sm:$0xff]   ;;  %v4712_v50 = vld [vmem:[%s4988_s1 + $0x3c8] sm:$0xff]  }
 0xf60   : > { %4351 = vmatpush3.bf16.msra.mxu0 %v4657_v62  ;;  %4373 = vmatpush3.bf16.msra.mxu1 %v4658_v63  ;;  %v2696_v55 = vpack.c.bf16 %v2680_v41, %v2680_v41  ;;  %v2698_v58 = vpack.c.bf16 %v2682_v42, %v2682_v42  ;;  %v4684_v62 = vld [vmem:[%s4988_s1 + $0x2d0] sm:$0xff]   ;;  %v4713_v8 = vld [vmem:[%s4988_s1 + $0x308] sm:$0xff]   ;;  %v4720_v41 = vld [vmem:[%s4988_s1 + $0x3d8] sm:$0xff]  }
 0xf61   : > { %4352 = vmatprep.subr.bf16.mxu0 %v4659_v10  ;;  %4374 = vmatprep.subr.bf16.mxu1 %v4660_v5  ;;  %v4685_v63 = vld [vmem:[%s4988_s1 + $0x210] sm:$0xff]   ;;  %v4689_v10 = vld [vmem:[%s4988_s1 + $0x218] sm:$0xff]  }
 0xf62   : > { %v2623_v13 = vpop.f32.mrb[28].mxu0  ;;  %v2664_v15 = vpop.f32.mrb[32].mxu1  ;;  %v4690_v5 = vld [vmem:[%s4988_s1 + $0x298] sm:$0xff]  }
 0xf63   : > { %v5295_v16 = vadd.f32 %v2623_v13, %v2151_v6  ;;  %v5298_v17 = vadd.f32 %v2664_v15, %v5238_v48  ;;  %v5300_v18 = vpop.f32.mrb[29].mxu0  ;;  %v5302_v19 = vpop.f32.mrb[33].mxu1  ;;  %v2127_v48 = vrot.slane %v5243_v51, %v2126_v46  ;;  %v4669_v46 = vld [vmem:[%s4988_s1 + $0x130] sm:$0xff]   ;;  %v4691_v6 = vld [vmem:[%s4988_s1 + $0x260] sm:$0xff]   ;;  %v4696_v13 = vld [vmem:[%s4988_s1 + $0x2e8] sm:$0xff]  }
 0xf64   : > { %4353 = vmatpush3.bf16.msra.mxu0 %v4661_v7  ;;  %4375 = vmatpush3.bf16.msra.mxu1 %v4662_v9  ;;  %v2627_v20 = vpop.f32.mrb[30].mxu0  ;;  %v2668_v21 = vpop.f32.mrb[34].mxu1  ;;  %v4670_v51 = vld [vmem:[%s4988_s1 + $0x1b0] sm:$0xff]   ;;  %v4692_v7 = vld [vmem:[%s4988_s1 + $0x2e0] sm:$0xff]   ;;  %v4697_v15 = vld [vmem:[%s4988_s1 + $0x228] sm:$0xff]  }
 0xf65   : > { %v2628_v27 = vpop.f32.mrb[31].mxu0  ;;  %v2669_v28 = vpop.f32.mrb[35].mxu1  ;;  %4354 = vmatprep.subr.bf16.mxu0 %v4663_v11  ;;  %4376 = vmatprep.subr.bf16.mxu1 %v4664_v12  ;;  %v2501_v34 = vadd.f32 %v5269_v25, %v2127_v48  ;;  %v4676_v25 = vld [vmem:[%s4988_s1 + $0x2c0] sm:$0xff]   ;;  %v4695_v12 = vld [vmem:[%s4988_s1 + $0x268] sm:$0xff]   ;;  %v4699_v21 = vld [vmem:[%s4988_s1 + $0x270] sm:$0xff]  }
 0xf66   : > { %v4693_v9 = vld [vmem:[%s4988_s1 + $0x220] sm:$0xff]   ;;  %v4698_v20 = vld [vmem:[%s4988_s1 + $0x2a8] sm:$0xff]   ;;  %v4701_v48 = vld [vmem:[%s4988_s1 + $0x230] sm:$0xff]  }
 0xf67   : > { %v2677_v40 = vmax.f32 %v2501_v34, 0.0  ;;  %v4694_v11 = vld [vmem:[%s4988_s1 + $0x2a0] sm:$0xff]   ;;  %v4702_v27 = vld [vmem:[%s4988_s1 + $0x2b0] sm:$0xff]   ;;  %v4703_v28 = vld [vmem:[%s4988_s1 + $0x278] sm:$0xff]   ;;  %v2697_v34 = vpack.c.bf16 %v2681_v32, %v2681_v32 }
 0xf68   : > { %4355 = vmatpush3.bf16.msra.mxu0 %v4665_v22  ;;  %4377 = vmatpush3.bf16.msra.mxu1 %v4666_v23  ;;  %v4700_v22 = vld [vmem:[%s4988_s1 + $0x2f0] sm:$0xff]   ;;  %v2155_v23 = vrot.slane %v5233_v47, %v2122_v3  ;;  %v2667_v3 = vadd.f32 %v5302_v19, %v2163_v26  ;;  %v2679_v47 = vmax.f32 %v5281_v49, 0.0  ;;  %v4710_v49 = vld [vmem:[%s4988_s1 + $0x380] sm:$0xff]   ;;  %v4721_v42 = vld [vmem:[%s4988_s1 + $0x318] sm:$0xff]  }
 0xf69   : > { %4356 = vmatprep.subr.bf16.mxu0 %v4667_v29  ;;  %4378 = vmatprep.subr.bf16.mxu1 %v4668_v30  ;;  %v2693_v45 = vpack.c.bf16 %v2677_v40, %v2677_v40  ;;  %v4704_v29 = vld [vmem:[%s4988_s1 + $0x2f8] sm:$0xff]   ;;  %v4717_v40 = vld [vmem:[%s4988_s1 + $0x310] sm:$0xff]  }
 0xf6a   : > { %v2626_v30 = vadd.f32 %v5300_v18, %v2155_v23  ;;  %v2686_v33 = vmax.f32 %v2667_v3, 0.0  ;;  %v4709_v18 = vld [vmem:[%s4988_s1 + $0x300] sm:$0xff]   ;;  %v2695_v19 = vpack.c.bf16 %v2679_v47, %v2679_v47 }
 0xf6c   : > { %4357 = vmatpush3.bf16.msra.mxu0 %v4669_v46  ;;  %4379 = vmatpush3.bf16.msra.mxu1 %v4670_v51  ;;  %v4708_v46 = vld [vmem:[%s4988_s1 + $0x3c0] sm:$0xff]   ;;  %v2684_v51 = vmax.f32 %v2626_v30, 0.0  ;;  %v2702_v36 = vpack.c.bf16 %v2686_v33, %v2686_v33 }
 0xf6d   : > { %4358 = vmatprep.subr.bf16.mxu0 %v4671_v35  ;;  %4380 = vmatprep.subr.bf16.mxu1 %v4672_v52  ;;  %v4711_v35 = vld [vmem:[%s4988_s1 + $0x348] sm:$0xff]  }
 0xf6e   : > { %v2700_v52 = vpack.c.bf16 %v2684_v51, %v2684_v51 }
 0xf70   : > { %4359 = vmatpush3.bf16.msra.mxu0 %v4673_v53  ;;  %4381 = vmatpush3.bf16.msra.mxu1 %v4674_v38  ;;  %v4714_v53 = vld [vmem:[%s4988_s1 + $0x388] sm:$0xff]   ;;  %v4715_v38 = vld [vmem:[%s4988_s1 + $0x350] sm:$0xff]  }
 0xf71   : > { %4388 = vmatprep.subr.bf16.mxu0 %v4675_v24  ;;  %4410 = vmatprep.subr.bf16.mxu1 %v4676_v25  ;;  %v4718_v24 = vld [vmem:[%s4988_s1 + $0x390] sm:$0xff]   ;;  %v4719_v25 = vld [vmem:[%s4988_s1 + $0x358] sm:$0xff]  }
 0xf73   : > { %3590 = vmatmul.mubr.bf16.vlgmr.msra.gmra.mrb[36].mxu0 %v2691_v44  ;;  %3630 = vmatmul.mubr.bf16.vlgmr.msra.gmra.mrb[40].mxu1 %v2693_v45  ;;  %v4723_v44 = vld [vmem:[%s4988_s1 + $0x360] sm:$0xff]  }
 0xf74   : > { %4389 = vmatpush3.bf16.msra.mxu0 %v4677_v43  ;;  %3669 = vmatprep.mubr.bf16.mxu0 %v2696_v55  ;;  %v4722_v43 = vld [vmem:[%s4988_s1 + $0x398] sm:$0xff]   ;;  %v4724_v45 = vld [vmem:[%s4988_s1 + $0x3e0] sm:$0xff]  }
 0xf75   : > { %4411 = vmatpush3.bf16.msra.mxu1 %v4678_v54  ;;  %3709 = vmatprep.mubr.bf16.mxu1 %v2698_v58  ;;  %v4725_v54 = vld [vmem:[%s4988_s1 + $0x320] sm:$0xff]   ;;  %v4729_v58 = vld [vmem:[%s4988_s1 + $0x328] sm:$0xff]  }
 0xf76   : > { %4390 = vmatprep.subr.bf16.mxu0 %v4679_v56  ;;  %4412 = vmatprep.subr.bf16.mxu1 %v4680_v57  ;;  %v4726_v55 = vld [vmem:[%s4988_s1 + $0x3a0] sm:$0xff]   ;;  %v4727_v56 = vld [vmem:[%s4988_s1 + $0x368] sm:$0xff]  }
 0xf77   : > { %v4728_v57 = vld [vmem:[%s4988_s1 + $0x3e8] sm:$0xff]  }
 0xf78   : > { %4391 = vmatpush3.bf16.msra.mxu0 %v4681_v59  ;;  %v4730_v59 = vld [vmem:[%s4988_s1 + $0x3a8] sm:$0xff]  }
 0xf79   : > { %4413 = vmatpush3.bf16.msra.mxu1 %v4682_v60  ;;  %4392 = vmatprep.subr.bf16.mxu0 %v4683_v61  ;;  %v4731_v60 = vld [vmem:[%s4988_s1 + $0x370] sm:$0xff]  }
 0xf7a   : > { %4414 = vmatprep.subr.bf16.mxu1 %v4684_v62  ;;  %v4732_v61 = vld [vmem:[%s4988_s1 + $0x3f0] sm:$0xff]  }
 0xf7b   : > { %v4733_v62 = vld [vmem:[%s4988_s1 + $0x330] sm:$0xff]  }
 0xf7c   : > { %4393 = vmatpush3.bf16.msra.mxu0 %v4685_v63  ;;  %v4734_v63 = vld [vmem:[%s4988_s1 + $0x3b0] sm:$0xff]  }
 0xf7d   : > { %4415 = vmatpush3.bf16.msra.mxu1 %v4686_v0  ;;  %4394 = vmatprep.subr.bf16.mxu0 %v4687_v1  ;;  %v4735_v0 = vld [vmem:[%s4988_s1 + $0x378] sm:$0xff]  }
 0xf7e   : > { %4416 = vmatprep.subr.bf16.mxu1 %v4688_v2  ;;  %v4736_v1 = vld [vmem:[%s4988_s1 + $0x3f8] sm:$0xff]  }
 0xf7f   : > { %v4737_v2 = vld [vmem:[%s4988_s1 + $0x338] sm:$0xff]  }
 0xf80   : > { %4395 = vmatpush3.bf16.msra.mxu0 %v4689_v10  ;;  %v2683_v10 = vmax.f32 %v5295_v16, 0.0 }
 0xf81   : > { %4417 = vmatpush3.bf16.msra.mxu1 %v4690_v5  ;;  %4396 = vmatprep.subr.bf16.mxu0 %v4691_v6  ;;  %v4738_v5 = vld [vmem:[%s4988_s1 + $0x3b8] sm:$0xff]   ;;  %v2685_v6 = vmax.f32 %v5298_v17, 0.0 }
 0xf82   : > { %4418 = vmatprep.subr.bf16.mxu1 %v4692_v7  ;;  %v2699_v7 = vpack.c.bf16 %v2683_v10, %v2683_v10 }
 0xf84   : > { %4397 = vmatpush3.bf16.msra.mxu0 %v4693_v9  ;;  %v2701_v9 = vpack.c.bf16 %v2685_v6, %v2685_v6 }
 0xf85   : > { %4419 = vmatpush3.bf16.msra.mxu1 %v4694_v11  ;;  %4398 = vmatprep.subr.bf16.mxu0 %v4695_v12 }
 0xf86   : > { %4420 = vmatprep.subr.bf16.mxu1 %v4696_v13  ;;  %v4131_v13 = vld [vmem:[%s740_s23] ss:$0 sm:$0xff] }
 0xf88   : > { %4399 = vmatpush3.bf16.msra.mxu0 %v4697_v15 }
 0xf89   : > { %4421 = vmatpush3.bf16.msra.mxu1 %v4698_v20  ;;  %4400 = vmatprep.subr.bf16.mxu0 %v4699_v21 }
 0xf8a   : > { %4422 = vmatprep.subr.bf16.mxu1 %v4700_v22 }
 0xf8c   : > { %4401 = vmatpush3.bf16.msra.mxu0 %v4701_v48 }
 0xf8d   : > { %4423 = vmatpush3.bf16.msra.mxu1 %v4702_v27  ;;  %4402 = vmatprep.subr.bf16.mxu0 %v4703_v28 }
 0xf8e   : > { %4424 = vmatprep.subr.bf16.mxu1 %v4704_v29 }
 0xf90   : > { %4403 = vmatpush3.bf16.msra.mxu0 %v4705_v14 }
 0xf91   : > { %4425 = vmatpush3.bf16.msra.mxu1 %v4706_v4  ;;  %4432 = vmatprep.subr.bf16.mxu0 %v4707_v31 }
 0xf92   : > { %4454 = vmatprep.subr.bf16.mxu1 %v4708_v46 }
 0xf93   : > { %3670 = vmatmul.mubr.bf16.vlgmr.msra.gmra.mrb[40].mxu0 %v2695_v19 }
 0xf94   : > { %3710 = vmatmul.mubr.bf16.vlgmr.msra.gmra.mrb[44].mxu1 %v2697_v34  ;;  %4433 = vmatpush3.bf16.msra.mxu0 %v4709_v18 }
 0xf95   : > { %3749 = vmatprep.mubr.bf16.mxu0 %v2700_v52  ;;  %4455 = vmatpush3.bf16.msra.mxu1 %v4710_v49 }
 0xf96   : > { %3789 = vmatprep.mubr.bf16.mxu1 %v2702_v36  ;;  %4434 = vmatprep.subr.bf16.mxu0 %v4711_v35 }
 0xf97   : > { %4456 = vmatprep.subr.bf16.mxu1 %v4712_v50 }
 0xf98   : > { %4435 = vmatpush3.bf16.msra.mxu0 %v4713_v8 }
 0xf99   : > { %4457 = vmatpush3.bf16.msra.mxu1 %v4714_v53  ;;  %4436 = vmatprep.subr.bf16.mxu0 %v4715_v38 }
 0xf9a   : > { %4458 = vmatprep.subr.bf16.mxu1 %v4716_v39 }
 0xf9c   : > { %4437 = vmatpush3.bf16.msra.mxu0 %v4717_v40 }
 0xf9d   : > { %4459 = vmatpush3.bf16.msra.mxu1 %v4718_v24  ;;  %4438 = vmatprep.subr.bf16.mxu0 %v4719_v25 }
 0xf9e   : > { %4460 = vmatprep.subr.bf16.mxu1 %v4720_v41 }
 0xfa0   : > { %4439 = vmatpush3.bf16.msra.mxu0 %v4721_v42 }
 0xfa1   : > { %4461 = vmatpush3.bf16.msra.mxu1 %v4722_v43  ;;  %4440 = vmatprep.subr.bf16.mxu0 %v4723_v44 }
 0xfa2   : > { %4462 = vmatprep.subr.bf16.mxu1 %v4724_v45 }
 0xfa4   : > { %4441 = vmatpush3.bf16.msra.mxu0 %v4725_v54 }
 0xfa5   : > { %4463 = vmatpush3.bf16.msra.mxu1 %v4726_v55  ;;  %4442 = vmatprep.subr.bf16.mxu0 %v4727_v56 }
 0xfa6   : > { %4464 = vmatprep.subr.bf16.mxu1 %v4728_v57 }
 0xfa8   : > { %4443 = vmatpush3.bf16.msra.mxu0 %v4729_v58 }
 0xfa9   : > { %4465 = vmatpush3.bf16.msra.mxu1 %v4730_v59  ;;  %4444 = vmatprep.subr.bf16.mxu0 %v4731_v60 }
 0xfaa   : > { %4466 = vmatprep.subr.bf16.mxu1 %v4732_v61 }
 0xfac   : > { %4445 = vmatpush3.bf16.msra.mxu0 %v4733_v62 }
 0xfad   : > { %4467 = vmatpush3.bf16.msra.mxu1 %v4734_v63  ;;  %4446 = vmatprep.subr.bf16.mxu0 %v4735_v0 }
 0xfae   : > { %4468 = vmatprep.subr.bf16.mxu1 %v4736_v1 }
 0xfb0   : > { %4447 = vmatpush3.bf16.msra.mxu0 %v4737_v2 }
 0xfb1   : > { %4469 = vmatpush3.bf16.msra.mxu1 %v4738_v5 }
 0xfb3   : > { %3750 = vmatmul.mubr.bf16.vlgmr.msra.gmra.mrb[44].mxu0 %v2699_v7  ;;  %v4261_v7 = vld [vmem:[%s746_s15] ss:$0 sm:$0xff]  ;;  %s5502_s15 = sld [smem:[#allocation17_spill]] (!%p4262_p8) }
 0xfb4   : > { %3790 = vmatmul.mubr.bf16.vlgmr.msra.gmra.mrb[48].mxu1 %v2701_v9 }
0x1026   : > { %v4316_v11 = vpop.f32.mrb[32].mxu0  ;;  %v4338_v12 = vpop.f32.mrb[36].mxu1 }
0x1027   : > { %v4317_v16 = vpop.f32.mrb[33].mxu0  ;;  %v4339_v15 = vpop.f32.mrb[37].mxu1 }
0x1028   : > { %v4318_v20 = vadd.f32 %v4317_v16, %v4316_v11  ;;  %v4340_v21 = vadd.f32 %v4339_v15, %v4338_v12  ;;  %v4319_v22 = vpop.f32.mrb[34].mxu0  ;;  %v4341_v17 = vpop.f32.mrb[38].mxu1 }
0x1029   : > { %v4320_v23 = vpop.f32.mrb[35].mxu0  ;;  %v4342_v26 = vpop.f32.mrb[39].mxu1 }
0x102a   : > { %v3512_v48 = vadd.f32 %v4318_v20, %v4131_v13 }
0x102c   : > { %v3552_v27 = vadd.f32 %v4340_v21, %v3512_v48  ;;  %v4263_v48 = vld [vmem:[%s5502_s15] ss:$0 sm:$0xff] (!%p4262_p8) }
0x1046   : > { %v4360_v28 = vpop.f32.mrb[36].mxu0  ;;  %v4382_v29 = vpop.f32.mrb[40].mxu1 }
0x1047   : > { %v4361_v30 = vpop.f32.mrb[37].mxu0  ;;  %v4383_v3 = vpop.f32.mrb[41].mxu1 }
0x1048   : > { %v4362_v14 = vadd.f32 %v4361_v30, %v4360_v28  ;;  %v4384_v47 = vadd.f32 %v4383_v3, %v4382_v29  ;;  %v4363_v4 = vpop.f32.mrb[38].mxu0  ;;  %v4385_v31 = vpop.f32.mrb[42].mxu1  ;;  %v4264_v28 = vld [vmem:[%s5503_s18] ss:$0 sm:$0xff] (!%p4262_p8) }
0x1049   : > { %v4364_v32 = vpop.f32.mrb[39].mxu0  ;;  %v4386_v46 = vpop.f32.mrb[43].mxu1 }
0x104a   : > { %v3592_v51 = vadd.f32 %v4362_v14, %v3552_v27 }
0x104c   : > { %v3632_v33 = vadd.f32 %v4384_v47, %v3592_v51 }
0x1066   : > { %v4404_v18 = vpop.f32.mrb[40].mxu0 }
0x1067   : > { %v4426_v19 = vpop.f32.mrb[44].mxu1  ;;  %v4405_v49 = vpop.f32.mrb[41].mxu0 }
0x1068   : > { %v4406_v34 = vadd.f32 %v4405_v49, %v4404_v18  ;;  %v4427_v35 = vpop.f32.mrb[45].mxu1  ;;  %v4407_v52 = vpop.f32.mrb[42].mxu0 }
0x1069   : > { %v4428_v50 = vadd.f32 %v4427_v35, %v4426_v19  ;;  %v4429_v36 = vpop.f32.mrb[46].mxu1  ;;  %v4408_v8 = vpop.f32.mrb[43].mxu0 }
0x106a   : > { %v3672_v53 = vadd.f32 %v4406_v34, %v3632_v33  ;;  %v4430_v38 = vpop.f32.mrb[47].mxu1 }
0x106c   : > { %v3712_v39 = vadd.f32 %v4428_v50, %v3672_v53 }
0x1086   : > { %v4448_v40 = vpop.f32.mrb[44].mxu0 }
0x1087   : > { %v4470_v24 = vpop.f32.mrb[48].mxu1  ;;  %v4449_v25 = vpop.f32.mrb[45].mxu0 }
0x1088   : > { %v4450_v41 = vadd.f32 %v4449_v25, %v4448_v40  ;;  %v4471_v42 = vpop.f32.mrb[49].mxu1  ;;  %v4451_v43 = vpop.f32.mrb[46].mxu0 }
0x1089   : > { %v4472_v44 = vadd.f32 %v4471_v42, %v4470_v24  ;;  %v4473_v45 = vpop.f32.mrb[50].mxu1  ;;  %v4452_v54 = vpop.f32.mrb[47].mxu0 }
0x108a   : > { %v3752_v55 = vadd.f32 %v4450_v41, %v3712_v39  ;;  %v4474_v56 = vpop.f32.mrb[51].mxu1 }
0x108c   : > { %v3792_v57 = vadd.f32 %v4472_v44, %v3752_v55 }
0x108e   : > { %v3797_v58 = vadd.f32 %v3792_v57, %v5151_v37  ;;  %v4260_v37 = vld [vmem:[%s743_s22] ss:$0 sm:$0xff] }
0x1090   : > { %v3800_v59 = vsel %vm869_vm5, %v3797_v58, 0.0 }
0x1091   : > { %3801 = vadd.xlane.f32.xlu1 %v3800_v59 }
0x111e   : > { %v3802_v60 = vpop.xlane.xlu1 %3801 }
0x111f   : > { %v3803_v61 = vmul.f32 0.03125, %v3802_v60 }
0x1121   : > { %v3804_v62 = vsub.f32 %v3797_v58, %v3803_v61 }
0x1123   : > { %v3805_v63 = vmul.f32 %v3804_v62, %v3804_v62 }
0x1125   : > { %v3806_v0 = vsel %vm869_vm5, %v3805_v63, 0.0 }
0x1126   : > { %3807 = vadd.xlane.f32.xlu1 %v3806_v0 }
0x11b3   : > { %v3808_v1 = vpop.xlane.xlu1 %3807 }
0x11b4   : > { %v3809_v2 = vmul.f32 0.03125, %v3808_v1 }
0x11b6   : > { %v3810_v10 = vadd.f32 1e-05, %v3809_v2 }
0x11b8   : > { %4757 = vrsqrt.f32 %v3810_v10 }
0x11c2   : > { %v4758_v5 = vpop.eup %4757 }
0x11c3   : > { %v3812_v6 = vmul.f32 %v4758_v5, %v3804_v62  ;;  %3831 = sbr.rel (%p4262_p8) target bundleno = 4867 (0x1303), region = 96 }
0x11c5   : > { %v3819_v9 = vmul.f32 %v4260_v37, %v3812_v6 }
0x11c7   : > { %v3826_v11 = vadd.f32 %v4261_v7, %v3819_v9 }
0x11c9   : > { %3827 = vst.msk [vmem:[#allocation2] sm:$0xff] %vm869_vm5, %v3826_v11  ;;  %v3834_v12 = vsel (!%p4262_p8), %vm869_vm5, %v3826_v11, 0.0 }
0x11ca   : > { %3835 = vadd.xlane.f32.xlu0 %v3834_v12 }
0x1257   : > { %v3836_v13 = vpop.xlane.xlu0 %3835 }
0x1258   : > { %v3837_v16 = vmul.f32 0.03125, %v3836_v13 }
0x125a   : > { %v3838_v15 = vsub.f32 %v3826_v11, %v3837_v16 }
0x125c   : > { %v3839_v20 = vmul.f32 %v3838_v15, %v3838_v15 }
0x125e   : > { %v3840_v21 = vsel %vm869_vm5, %v3839_v20, 0.0 }
0x125f   : > { %3841 = vadd.xlane.f32.xlu0 %v3840_v21 }
0x12ec   : > { %v3842_v22 = vpop.xlane.xlu0 %3841 }
0x12ed   : > { %v3843_v17 = vmul.f32 0.03125, %v3842_v22 }
0x12ef   : > { %v3844_v23 = vadd.f32 1e-05, %v3843_v17 }
0x12f1   : > { %4759 = vrsqrt.f32 %v3844_v23 }
0x12fb   : > { %v4760_v26 = vpop.eup %4759 }
0x12fc   : > { %v3846_v27 = vmul.f32 %v4760_v26, %v3838_v15 }
0x12fe   : > { %v3853_v29 = vmul.f32 %v4263_v48, %v3846_v27 }
0x1300   : > { %v3860_v30 = vadd.f32 %v4264_v28, %v3853_v29 }
0x1302   : > { %3861 = vst.msk [vmem:[%s5005_s10] sm:$0xff] %vm869_vm5, %v3860_v30 }
0x1303 PF: > { %s5504_s2 = sld [smem:[#allocation6_spill]]  ;;  %s5505_s24 = sld [smem:[#allocation4_spill]] }
0x1304   : > { %s5506_s25 = sld [smem:[#allocation5_spill]]  ;;  %s5507_s26 = sld [smem:[#allocation7_spill]] }
0x1305   : > { %s5508_s27 = sld [smem:[#allocation8_spill]] }
0x1309   : > { %s27_s28 = sadd.s32 1, %s5504_s2  }
0x130a   : > { %p24_p9 = scmp.ge.s32.totalorder %s27_s28, 6  }
0x130c   :  { %26 = sbr.rel (!%p24_p9) target bundleno = 11 (0xb), region = 162 }

// kernel: forward.3
= control target key start
LH: loop header
LB: loop body
LE: loop exit
PB: predicated region body
PF: predicated region fallthrough
CT: control target
= control target key end

     0   :  { %s7330_s6 = smov 1   ;;  %s7331_s10 = smov 2   ;;  %s8297_s0 = inlined_call_operand.smem [shape: u32[37], index: -1, kind: input, shape index: {}] }
   0x1   :  { %s7392_s5 = sld [smem:[%s8297_s0]]   ;;  %s7332_s14 = smov 3  }
   0x2   :  { %s7397_s9 = sld [smem:[%s8297_s0 + %s7330_s6]]   ;;  %s7333_s18 = smov 4  }
   0x3   :  { %s7402_s13 = sld [smem:[%s8297_s0 + %s7331_s10]]   ;;  %s7334_s22 = smov 5  }
   0x4   :  { %s7407_s17 = sld [smem:[%s8297_s0 + %s7332_s14]]   ;;  %s7335_s26 = smov 6  }
   0x5   :  { %s7412_s21 = sld [smem:[%s8297_s0 + %s7333_s18]]   ;;  %s7336_s30 = smov 7  }
   0x6   :  { %s7417_s25 = sld [smem:[%s8297_s0 + %s7334_s22]]   ;;  %s7337_s4 = smov 8  }
   0x7   :  { %8310 = sst [smem:[#allocation3_spill]] %s7392_s5  ;;  %s7338_s10 = smov 9  }
   0x8   :  { %8311 = sst [smem:[#allocation4_spill]] %s7397_s9  ;;  %s7339_s15 = smov 10  }
   0x9   :  { %8312 = sst [smem:[#allocation5_spill]] %s7402_s13  ;;  %s7340_s20 = smov 11  }
   0xa   :  { %8313 = sst [smem:[#allocation6_spill]] %s7407_s17  ;;  %s7342_s1 = smov 13  }
   0xb   :  { %8314 = sst [smem:[#allocation7_spill]] %s7412_s21  ;;  %s7343_s7 = smov 14  }
   0xc   :  { %8315 = sst [smem:[#allocation8_spill]] %s7417_s25  ;;  %s7345_s22 = smov 16  }
   0xd   :  { %s7422_s29 = sld [smem:[%s8297_s0 + %s7335_s26]]   ;;  %s7341_s26 = smov 12  }
   0xe   :  { %s7427_s3 = sld [smem:[%s8297_s0 + %s7336_s30]]   ;;  %s7346_s28 = smov 17  }
   0xf   :  { %s7432_s8 = sld [smem:[%s8297_s0 + %s7337_s4]]   ;;  %s7578_s2 = smov 0  }
  0x10   :  { %s7437_s14 = sld [smem:[%s8297_s0 + %s7338_s10]]   ;;  %s7582_s10 = smov 0  }
  0x11   :  { %s7442_s19 = sld [smem:[%s8297_s0 + %s7339_s15]]   ;;  %s7344_s15 = smov 15  }
  0x12   :  { %s7447_s24 = sld [smem:[%s8297_s0 + %s7340_s20]]  }
  0x13   :  { %8316 = sst [smem:[#allocation9_spill]] %s7422_s29 }
  0x14   :  { %8317 = sst [smem:[#allocation10_spill]] %s7427_s3 }
  0x15   :  { %8318 = sst [smem:[#allocation11_spill]] %s7432_s8 }
  0x16   :  { %8319 = sst [smem:[#allocation12_spill]] %s7437_s14 }
  0x17   :  { %8320 = sst [smem:[#allocation13_spill]] %s7442_s19 }
  0x18   :  { %8321 = sst [smem:[#allocation14_spill]] %s7447_s24 }
  0x19   :  { %s7452_s30 = sld [smem:[%s8297_s0 + %s7341_s26]]  }
  0x1a   :  { %s7457_s6 = sld [smem:[%s8297_s0 + %s7342_s1]]   ;;  %s7576_s1 = smov 0  }
  0x1b   :  { %s7462_s12 = sld [smem:[%s8297_s0 + %s7343_s7]]   ;;  %s7347_s7 = smov 18  }
  0x1c   :  { %s7467_s20 = sld [smem:[%s8297_s0 + %s7344_s15]]   ;;  %s7348_s15 = smov 19  }
  0x1d   :  { %s7472_s27 = sld [smem:[%s8297_s0 + %s7345_s22]]   ;;  %s7349_s22 = smov 20  }
  0x1e   :  { %s7477_s4 = sld [smem:[%s8297_s0 + %s7346_s28]]   ;;  %s7350_s28 = smov 21  }
  0x1f   :  { %8322 = sst [smem:[#allocation15_spill]] %s7452_s30 }
  0x20   :  { %8323 = sst [smem:[#allocation16_spill]] %s7457_s6 }
  0x21   :  { %8324 = sst [smem:[#allocation17_spill]] %s7462_s12 }
  0x22   :  { %8325 = sst [smem:[#allocation18_spill]] %s7467_s20 }
  0x23   :  { %8326 = sst [smem:[#allocation19_spill]] %s7472_s27 }
  0x24   :  { %8327 = sst [smem:[#allocation20_spill]] %s7477_s4 }
  0x25   :  { %s7482_s25 = sld [smem:[%s8297_s0 + %s7347_s7]]   ;;  %s7351_s7 = smov 22  }
  0x26   :  { %s7487_s13 = sld [smem:[%s8297_s0 + %s7348_s15]]   ;;  %s7352_s15 = smov 23  }
  0x27   :  { %s7492_s9 = sld [smem:[%s8297_s0 + %s7349_s22]]   ;;  %s7353_s22 = smov 24  }
  0x28   :  { %s7497_s4 = sld [smem:[%s8297_s0 + %s7350_s28]]   ;;  %s7354_s28 = smov 25  }
  0x2b   :  { %8328 = sst [smem:[#allocation21_spill]] %s7482_s25 }
  0x2c   :  { %8329 = sst [smem:[#allocation22_spill]] %s7487_s13 }
  0x2d   :  { %8330 = sst [smem:[#allocation23_spill]] %s7492_s9 }
  0x2e   :  { %8331 = sst [smem:[#allocation24_spill]] %s7497_s4 }
  0x2f   :  { %s7502_s25 = sld [smem:[%s8297_s0 + %s7351_s7]]   ;;  %s7355_s7 = smov 26  }
  0x30   :  { %s7507_s13 = sld [smem:[%s8297_s0 + %s7352_s15]]   ;;  %s7356_s15 = smov 27  }
  0x31   :  { %s7512_s9 = sld [smem:[%s8297_s0 + %s7353_s22]]   ;;  %s7357_s22 = smov 28  }
  0x32   :  { %s7517_s4 = sld [smem:[%s8297_s0 + %s7354_s28]]   ;;  %s7358_s28 = smov 29  }
  0x35   :  { %8332 = sst [smem:[#allocation25_spill]] %s7502_s25 }
  0x36   :  { %8333 = sst [smem:[#allocation26_spill]] %s7507_s13 }
  0x37   :  { %8334 = sst [smem:[#allocation27_spill]] %s7512_s9 }
  0x38   :  { %8335 = sst [smem:[#allocation28_spill]] %s7517_s4 }
  0x39   :  { %s7522_s25 = sld [smem:[%s8297_s0 + %s7355_s7]]   ;;  %s7359_s7 = smov 30  }
  0x3a   :  { %s7527_s13 = sld [smem:[%s8297_s0 + %s7356_s15]]   ;;  %s7360_s15 = smov 31  }
  0x3b   :  { %s7532_s9 = sld [smem:[%s8297_s0 + %s7357_s22]]   ;;  %s7361_s22 = smov 32  }
  0x3c   :  { %s7537_s4 = sld [smem:[%s8297_s0 + %s7358_s28]]   ;;  %s7362_s28 = smov 33  }
  0x3f   :  { %8336 = sst [smem:[#allocation29_spill]] %s7522_s25 }
  0x40   :  { %8337 = sst [smem:[#allocation30_spill]] %s7527_s13 }
  0x41   :  { %8338 = sst [smem:[#allocation31_spill]] %s7532_s9 }
  0x42   :  { %8339 = sst [smem:[#allocation32_spill]] %s7537_s4 }
  0x43   :  { %s7542_s25 = sld [smem:[%s8297_s0 + %s7359_s7]]   ;;  %s7363_s7 = smov 34  }
  0x44   :  { %s7547_s13 = sld [smem:[%s8297_s0 + %s7360_s15]]   ;;  %s7364_s15 = smov 35  }
  0x45   :  { %s7552_s9 = sld [smem:[%s8297_s0 + %s7361_s22]]   ;;  %s7365_s22 = smov 36  }
  0x46   :  { %s7557_s4 = sld [smem:[%s8297_s0 + %s7362_s28]]   ;;  %s7574_s28 = smov 0  }
  0x49   :  { %8340 = sst [smem:[#allocation33_spill]] %s7542_s25 }
  0x4a   :  { %8341 = sst [smem:[#allocation34_spill]] %s7547_s13 }
  0x4b   :  { %8342 = sst [smem:[#allocation35_spill]] %s7552_s9 }
  0x4c   :  { %8343 = sst [smem:[#allocation36_spill]] %s7557_s4 }
  0x4d   :  { %s7562_s25 = sld [smem:[%s8297_s0 + %s7363_s7]]   ;;  %s7580_s7 = smov 0  }
  0x4e   :  { %s7567_s13 = sld [smem:[%s8297_s0 + %s7364_s15]]  }
  0x4f   :  { %s7572_s9 = sld [smem:[%s8297_s0 + %s7365_s22]]  }
  0x53   :  { %8344 = sst [smem:[#allocation37_spill]] %s7562_s25 }
  0x54   :  { %8345 = sst [smem:[#allocation38_spill]] %s7567_s13 }
  0x55   :  { %8346 = sst [smem:[#allocation39_spill]] %s7572_s9 }
  0x56 LB: > { %8347 = sst [smem:[#allocation40_spill]] %s7312_s28  ;;  %s92_s0 = sadd.s32 1, %s7320_s2  ;;  %s7328_s10 = sphi %s7582_s10, %s83_s10   ;;  %s7324_s7 = sphi %s7580_s7, %s8445_s7   ;;  %s7320_s2 = sphi %s7578_s2, %s8444_s2   ;;  %s7316_s1 = sphi %s7576_s1, %s8443_s1   ;;  %s7312_s28 = sphi %s7574_s28, %s8442_s28  }
  0x57   : > { %8348 = sst [smem:[#allocation41_spill]] %s7320_s2  ;;  %s95_s11 = sadd.s32 1, %s7324_s7 }
  0x58   : > { %8349 = sst [smem:[#allocation42_spill]] %s7324_s7  ;;  %p93_p0 = scmp.ge.s32.totalorder %s92_s0, 2 }
  0x59   : > { %8350 = sst [smem:[#allocation43_spill]] %s7328_s10  ;;  %p6316_p1 = scmp.ge.s32.totalorder %s7328_s10, 1 }
  0x5a   : > { %p1254_p2 = scmp.lt.s32.totalorder %s7328_s10, 5  ;;  %s8447_s0 = smov (%p93_p0, %s92_s0), 0 }
  0x5b   : > { %8351 = sst [smem:[#allocation44_spill]] %s8447_s0  ;;  %s8449_s11 = smov (!%p93_p0, %s95_s11), %s7324_s7 }
  0x5c   : > { %p1255_p3 = pnand %p6316_p1, %p1254_p2  ;;  %p97_p4 = scmp.ge.s32.totalorder %s8449_s11, 2 }
  0x5e   : > { %s8451_s11 = smov (%p97_p4, %s8449_s11), 0  ;;  %1258 = sbr.rel (%p1255_p3) target bundleno = 8382 (0x20be), region = 164 }
  0x5f   : > { %8352 = sst [smem:[#allocation45_spill]] %s8451_s11 }
  0x65   : > { %p1446_p5 = scmp.lt.s32.totalorder %s7316_s1, 1  ;;  %s8357_s29 = sld [smem:[#allocation9_spill]] }
  0x66   : > { %s8358_s8 = sld [smem:[#allocation11_spill]]  ;;  %s8362_s30 = sld [smem:[#allocation15_spill]] }
  0x67   : > { %p1457_p6 = scmp.lt.s32.totalorder %s7312_s28, 1  ;;  %s8364_s12 = sld [smem:[#allocation17_spill]] }
  0x68   : > { %s8453_s1 = smov (!%p1446_p5, %s7316_s1), 1  ;;  %s8370_s23 = sld [smem:[#allocation21_spill]] }
  0x69   : > { %8365 = sst [smem:[#allocation46_spill]] %s8453_s1  ;;  %s7613_s16 = sshll.u32 %s8453_s1, 3 }
  0x6a   : > { %s7610_s15 = scalar_select %p1457_p6, %s7312_s28, 1 }
  0x6b   : > { %8368 = sst [smem:[#allocation47_spill]] %s7613_s16  ;;  %s8373_s10 = sld [smem:[#allocation24_spill]] }
  0x6c   : > { %s8372_s7 = sld [smem:[#allocation23_spill]]  ;;  %s6580_s2 = sshll.u32 %s7610_s15, 4 }
  0x6d   : > { %s8374_s4 = sld [smem:[#allocation25_spill]]  ;;  %s7625_s25 = scalar_lea.vmem %s8357_s29, %s6580_s2 }
  0x6e   : > { %8375 = sst [smem:[#allocation48_spill]] %s7625_s25  ;;  %s8376_s28 = sld [smem:[#allocation26_spill]] }
  0x6f   : > { %s7628_s9 = scalar_lea.vmem %s8358_s8, %s6580_s2  ;;  %s8378_s1 = sld [smem:[#allocation27_spill]] }
  0x70   : > { %8377 = sst [smem:[#allocation49_spill]] %s7628_s9  ;;  %s8379_s26 = sld [smem:[#allocation28_spill]] }
  0x71   : > { %s8380_s17 = sld [smem:[#allocation29_spill]]  ;;  %s7637_s5 = scalar_lea.vmem %s8362_s30, %s6580_s2 }
  0x72   : > { %8381 = sst [smem:[#allocation50_spill]] %s7637_s5  ;;  %s8382_s16 = sld [smem:[#allocation30_spill]] }
  0x73   : > { %s7642_s29 = scalar_lea.vmem %s8364_s12, %s6580_s2  ;;  %s8384_s3 = sld [smem:[#allocation32_spill]] }
  0x74   : > { %8383 = sst [smem:[#allocation51_spill]] %s7642_s29  ;;  %s8385_s9 = sld [smem:[#allocation31_spill]] }
  0x75   : > { %s8386_s22 = sld [smem:[#allocation33_spill]]  ;;  %s8387_s21 = sld [smem:[#allocation34_spill]] }
  0x76   : > { %s7651_s19 = scalar_lea.vmem %s8370_s23, %s6580_s2  ;;  %s8389_s0 = sld [smem:[#allocation47_spill]] }
  0x77   : > { %8388 = sst [smem:[#allocation52_spill]] %s7651_s19  ;;  %s8390_s30 = sld [smem:[#allocation39_spill]] }
  0x78   : > { %s7656_s5 = scalar_lea.vmem %s8372_s7, %s6580_s2  ;;  %s1516_s13 = scalar_lea.vmem %s8373_s10, %s7610_s15 }
  0x79   : > { %s7661_s12 = scalar_lea.vmem %s8374_s4, %s6580_s2  ;;  %s1524_s6 = scalar_lea.vmem %s8376_s28, %s7610_s15 }
  0x7a   : > { %s1527_s29 = scalar_lea.vmem %s8378_s1, %s7610_s15  ;;  %s1530_s8 = scalar_lea.vmem %s8379_s26, %s7610_s15 }
  0x7b   : > { %s6587_s20 = sshll.u32 %s7610_s15, 8  ;;  %s7674_s27 = scalar_lea.vmem %s8382_s16, %s6580_s2 }
  0x7c   : > { %s7671_s25 = scalar_lea.vmem %s8380_s17, %s6587_s20  ;;  %s6588_s18 = sshll.u32 %s7610_s15, 10 }
  0x7d   : > { %s1547_s14 = scalar_lea.vmem %s8384_s3, %s7610_s15  ;;  %s7680_s23 = scalar_lea.vmem %s8385_s9, %s6588_s18 }
  0x7e   : > { %s1550_s19 = scalar_lea.vmem %s8386_s22, %s7610_s15  ;;  %s1553_s11 = scalar_lea.vmem %s8387_s21, %s7610_s15 }
  0x7f   : > { %s1557_s24 = scalar_lea.vmem %s8390_s30, %s8389_s0  ;;  %s8391_s7 = sld [smem:[#allocation40_spill]] }
  0x85   : > { %p6339_p7 = scmp.ne.s32.totalorder %s8391_s7, 0 }
  0x86   : > { %s8392_s4 = sld [smem:[#allocation4_spill]] (!%p6339_p7)  ;;  %s8393_s10 = sld [smem:[#allocation3_spill]] (!%p6339_p7)  ;;  %vm1570_vm0 = vcmask (!%p6339_p7), 1042432   ;;  %v7366_v2 = vmov (!%p6339_p7), 0.0   ;;  %vm7367_vm1 = vmmov (!%p6339_p7), 0   ;;  %vm1566_vm2 = vcmask (!%p6339_p7), 23552  }
  0x87   : > { %1562 = sbr.rel (%p6339_p7) target bundleno = 358 (0x166), region = 168  ;;  %s8394_s28 = sld [smem:[#allocation47_spill]] (!%p6339_p7)  ;;  %6833 = vmatprep.subr.mxu0 (!%p6339_p7), %v7366_v2  ;;  %6835 = vmatprep.mubr.msk.f32.mxu0 (!%p6339_p7), %vm7367_vm1, %v7366_v2  ;;  %vm1644_vm3 = vcmask (!%p6339_p7), 261120  }
  0x88   : > { %s8395_s1 = sld [smem:[#allocation5_spill]] (!%p6339_p7) }
  0x8c   : > { %v1564_v0 = vld [vmem:[%s8392_s4] sm:$0x7] (!%p6339_p7) }
  0x8d   : > { %s8396_s17 = scalar_lea.vmem (!%p6339_p7), %s8393_s10, %s8394_s28  ;;  %6834 = vmatpush3.msk.msra.mxu0 (!%p6339_p7), %vm1570_vm0, %v1564_v0 }
  0x8e   : > { %v1563_v1 = vld [vmem:[%s8396_s17] sm:$0xff] }
  0x8f   : > { %6836 = vmatmul.mubr.msk.f32.vlgmr.msra.gmra.mrb[0].mxu0 %vm1566_vm2, %v1563_v1  ;;  %v1565_v3 = vld [vmem:[%s8395_s1] sm:$0xff] }
 0x162   : > { %v1640_v4 = vpop.f32.mrb[0].mxu0 }
 0x163   : > { %v1641_v5 = vadd.f32 %v1640_v4, %v1565_v3  ;;  %v6837_v6 = vpop.f32.mrb[1].mxu0 }
 0x165   : > { %1645 = vst.msk [vmem:[#allocation2] sm:$0xff] %vm1644_vm3, %v1641_v5 }
 0x166 PF: > { %s8397_s9 = sld [smem:[#allocation48_spill]]  ;;  %v7368_v8 = vmov 0.0   ;;  %s8398_s21 = sld [smem:[#allocation10_spill]]  ;;  %vm7369_vm4 = vmmov 0   ;;  %vm1678_vm5 = vcmask 261120   ;;  %vm1725_vm6 = vcmask 64512  }
 0x167   : > { %6838 = vmatprep.subr.bf16.mxu0 %v7368_v8  ;;  %6846 = vmatprep.subr.mxu1 %v7368_v8  ;;  %s7370_s30 = smov 64   ;;  %s8400_s20 = sld [smem:[#allocation8_spill]]  ;;  %vm2061_vm7 = vcmask 1043456  }
 0x168   : > { %6842 = vmatprep.mubr.msk.bf16.mxu0 %vm7369_vm4, %v7368_v8  ;;  %6848 = vmatprep.mubr.msk.f32.mxu1 %vm7369_vm4, %v7368_v8  ;;  %s7371_s2 = smov 96   ;;  %s7372_s0 = smov 88  }
 0x169   : > { %s7373_s16 = smov 120   ;;  %s8401_s22 = sld [smem:[#allocation49_spill]] }
 0x16a   : > { %s7374_s26 = smov 56   ;;  %s7375_s18 = smov 80  }
 0x16b   : > { %s7376_s7 = smov 112   ;;  %s7377_s4 = smov 48  }
 0x16c   : > { %v7108_v7 = vld [vmem:[%s8397_s9] sm:$0xff]   ;;  %v7109_v9 = vld [vmem:[%s8397_s9 + $0x8] sm:$0xff]   ;;  %s8399_s3 = scalar_lea.vmem %s8398_s21, %s7610_s15  ;;  %s7378_s10 = smov 72  }
 0x16d   : > { %6839 = vmatpush3.bf16.msra.mxu0 %v7108_v7  ;;  %v7700_v10 = vld [vmem:[#allocation2] sm:$0xff]  ;;  %s7379_s28 = smov 104   ;;  %s7380_s1 = smov 40  }
 0x16e   : > { %6840 = vmatprep.subr.bf16.mxu0 %v7368_v8  ;;  %v1659_v11 = vpack.c.bf16 %v7700_v10, %v7700_v10  ;;  %v6342_v12 = vld [vmem:[%s8399_s3] ss:$0 sm:$0xff]  ;;  %s8402_s17 = sld [smem:[#allocation50_spill]]  ;;  %s8403_s9 = sld [smem:[#allocation7_spill]] }
 0x16f   : > { %v7729_v21 = vld [vmem:[%s8400_s20] sm:$0xff]  ;;  %s8404_s21 = sld [smem:[#allocation46_spill]]  ;;  %s8405_s3 = sld [smem:[#allocation51_spill]] }
 0x170   : > { %v1654_v48 = vld [vmem:[%s8401_s22 + $0x4] sm:$0xf]  ;;  %v1653_v52 = vld [vmem:[%s8401_s22] sm:$0xf] }
 0x171   : > { %6841 = vmatpush3.bf16.msra.mxu0 %v7109_v9  ;;  %v2063_v49 = vsel %vm2061_vm7, %v1654_v48, 0  ;;  %v2109_v55 = vsel %vm2061_vm7, %v1653_v52, 0 }
 0x172   : > { %6861 = vmatprep.subr.mxu0 %v7368_v8 }
 0x174   : > { %6843 = vmatmul.mubr.msk.bf16.vlgmr.msra.gmra.mrb[0].mxu0 %vm1678_vm5, %v1659_v11  ;;  %v7111_v52 = vld [vmem:[%s8402_s17 + $0x8] sm:$0xff]  }
 0x175   : > { %6863 = vmatprep.mubr.msk.f32.mxu0 %vm7369_vm4, %v7368_v8  ;;  %s8407_s20 = scalar_lea.vmem %s8403_s9, %s8404_s21  ;;  %s8413_s9 = sld [smem:[#allocation14_spill]] }
 0x247   : > { %v1716_v13 = vpop.f32.mrb[0].mxu0 }
 0x248   : > { %v7714_v14 = vadd.f32 %v6342_v12, %v1716_v13  ;;  %v6844_v15 = vpop.f32.mrb[1].mxu0 }
 0x249   : > { %v1719_v16 = vpop.f32.mrb[2].mxu0 }
 0x24a   : > { %1813 = vrot.lane.b32.xlu1 %v7714_v14, %s7370_s30  ;;  %1723 = vrot.lane.b32.xlu0 %v7714_v14, %s7371_s2  ;;  %v6845_v17 = vpop.f32.mrb[3].mxu0  ;;  %s8406_s30 = sld [smem:[#allocation16_spill]] }
 0x24e   : > { %1892 = vrot.lane.b32.xlu1 %v7714_v14, %s7372_s0 }
 0x2bc   : > { %v1724_v18 = vpop.permute.xlu0 %1723  ;;  %v1814_v19 = vpop.permute.xlu1 %1813 }
 0x2bd   : > { %6847 = vmatpush3.xpose.msk.msra.mxu1 %vm1725_vm6, %v1724_v18 }
 0x2be   : > { %6851 = vmatprep.subr.mxu1 %v7368_v8 }
 0x2c0   : > { %6849 = vmatmul.mubr.msk.f32.vlgmr.msra.gmra.mrb[0].mxu1 %vm1725_vm6, %v7714_v14  ;;  %v1893_v31 = vpop.permute.xlu1 %1892 }
 0x2c1   : > { %6852 = vmatpush3.msra.mxu1 %v1814_v19  ;;  %6853 = vmatprep.mubr.msk.f32.mxu1 %vm7369_vm4, %v7368_v8 }
 0x2c2   : > { %6856 = vmatprep.subr.mxu1 %v7368_v8 }
 0x393   : > { %v1796_v20 = vpop.f32.mrb[0].mxu1 }
 0x394   : > { %v1800_v22 = vmul.f32 0.35355338, %v1796_v20  ;;  %v6850_v23 = vpop.f32.mrb[1].mxu1 }
 0x396   : > { %v1801_v24 = vadd.f32 %v1800_v22, %v7729_v21 }
 0x398   : > { %v1802_v25 = vsel %vm1725_vm6, %v1801_v24, -inf }
 0x399   : > { %1803 = vmax.xlane.f32.xlu0 %v1802_v25 }
 0x426   : > { %v1804_v26 = vpop.xlane.xlu0 %1803 }
 0x427   : > { %v1805_v27 = vsub.f32 %v1801_v24, %v1804_v26 }
 0x429   : > { %v1806_v28 = vmul.f32 1.442695, %v1805_v27  ;;  %v1655_v27 = vld [vmem:[%s8401_s22 + $0x8] sm:$0xf] }
 0x42b   : > { %7246 = vpow2.f32 %v1806_v28  ;;  %v2323_v28 = vsel %vm2061_vm7, %v1655_v27, 0  ;;  %v2742_v27 = vlaneseq }
 0x435   : > { %v7247_v29 = vpop.eup %7246 }
 0x436   : > { %v1808_v30 = vsel %vm1725_vm6, %v7247_v29, 0.0 }
 0x437   : > { %1809 = vadd.xlane.f32.xlu1 %v1808_v30 }
 0x448   : > { %1890 = vrot.lane.b32.xlu1 %v7714_v14, %s7373_s16 }
 0x4c4   : > { %v1810_v32 = vpop.xlane.xlu1 %1809 }
 0x4c5   : > { %7248 = vrcp.f32 %v1810_v32 }
 0x4c8   : > { %v1891_v35 = vpop.permute.xlu1 %1890 }
 0x4cf   : > { %v7249_v33 = vpop.eup %7248 }
 0x4d0   : > { %v1812_v34 = vmul.f32 %v7249_v33, %v7247_v29 }
 0x4d2   : > { %6854 = vmatmul.mubr.msk.f32.vlgmr.msra.gmra.mrb[2].mxu1 %vm1725_vm6, %v1812_v34 }
 0x4d3   : > { %6857 = vmatpush3.xpose.msk.msra.mxu1 %vm1725_vm6, %v1893_v31  ;;  %6858 = vmatprep.mubr.msk.f32.mxu1 %vm7369_vm4, %v7368_v8 }
 0x4d4   : > { %6866 = vmatprep.subr.bf16.mxu1 %v7368_v8 }
 0x4d6   : > { %6859 = vmatmul.mubr.msk.f32.vlgmr.msra.gmra.mrb[4].mxu1 %vm1725_vm6, %v1891_v35 }
 0x4d7   : > { %6868 = vmatprep.mubr.msk.bf16.mxu1 %vm7369_vm4, %v7368_v8  ;;  %6867 = vmatpush3.bf16.msra.mxu1 %v2063_v49 }
 0x4d8   : > { %6878 = vmatprep.subr.mxu1 %v7368_v8 }
 0x5a5   : > { %v1885_v36 = vpop.f32.mrb[2].mxu1 }
 0x5a6   : > { %v6855_v37 = vpop.f32.mrb[3].mxu1  ;;  %v1889_v56 = vpack.c.bf16 %v1885_v36, %v1885_v36 }
 0x5a9   : > { %v1964_v38 = vpop.f32.mrb[4].mxu1 }
 0x5aa   : > { %v1968_v39 = vmul.f32 0.35355338, %v1964_v38  ;;  %v6860_v40 = vpop.f32.mrb[5].mxu1 }
 0x5ac   : > { %v1969_v41 = vadd.f32 %v1968_v39, %v7729_v21 }
 0x5ae   : > { %v1970_v42 = vsel %vm1725_vm6, %v1969_v41, -inf }
 0x5af   : > { %1971 = vmax.xlane.f32.xlu1 %v1970_v42  ;;  %v1656_v42 = vld [vmem:[%s8401_s22 + $0xc] sm:$0xf]  ;;  %s8408_s22 = sld [smem:[#allocation12_spill]] }
 0x63c   : > { %v1972_v43 = vpop.xlane.xlu1 %1971 }
 0x63d   : > { %v1973_v44 = vsub.f32 %v1969_v41, %v1972_v43  ;;  %v2538_v43 = vsel %vm2061_vm7, %v1656_v42, 0 }
 0x63f   : > { %v1974_v45 = vmul.f32 1.442695, %v1973_v44 }
 0x641   : > { %7250 = vpow2.f32 %v1974_v45 }
 0x64b   : > { %v7251_v46 = vpop.eup %7250 }
 0x64c   : > { %v1976_v47 = vsel %vm1725_vm6, %v7251_v46, 0.0 }
 0x64d   : > { %1977 = vadd.xlane.f32.xlu0 %v1976_v47 }
 0x663   : > { %1981 = vrot.lane.b32.xlu0 %v7714_v14, %s7374_s26  ;;  %s8409_s26 = scalar_lea.vmem %s8406_s30, %s7610_s15  ;;  %s8416_s30 = scalar_lea.vmem %s8413_s9, %s7610_s15 }
 0x667   : > { %2153 = vrot.lane.b32.xlu0 %v7714_v14, %s7375_s18 }
 0x66b   : > { %2151 = vrot.lane.b32.xlu0 %v7714_v14, %s7376_s7 }
 0x6da   : > { %v1978_v50 = vpop.xlane.xlu0 %1977 }
 0x6db   : > { %7252 = vrcp.f32 %v1978_v50 }
 0x6de   : > { %v1982_v51 = vpop.permute.xlu0 %1981 }
 0x6df   : > { %6862 = vmatpush3.msra.mxu0 %v1982_v51  ;;  %v7110_v51 = vld [vmem:[%s8402_s17] sm:$0xff]   ;;  %s8412_s17 = sld [smem:[#allocation13_spill]] }
 0x6e0   : > { %6872 = vmatprep.subr.bf16.mxu0 %v7368_v8 }
 0x6e2   : > { %v2154_v60 = vpop.permute.xlu0 %2153 }
 0x6e5   : > { %v7253_v53 = vpop.eup %7252 }
 0x6e6   : > { %v1980_v54 = vmul.f32 %v7253_v53, %v7251_v46  ;;  %v2152_v1 = vpop.permute.xlu0 %2151  ;;  %v2619_v53 = vld [vmem:[%s8407_s20] sm:$0x1]  ;;  %s8417_s20 = sld [smem:[#allocation52_spill]] }
 0x6e8   : > { %6864 = vmatmul.mubr.msk.f32.vlgmr.msra.gmra.mrb[4].mxu0 %vm1725_vm6, %v1980_v54  ;;  %v2620_v54 = vpack.c.bf16 %v2619_v53, %v2619_v53 }
 0x6e9   : > { %6873 = vmatpush3.bf16.msra.mxu0 %v2109_v55  ;;  %6874 = vmatprep.mubr.msk.bf16.mxu0 %vm7369_vm4, %v7368_v8 }
 0x6ea   : > { %6883 = vmatprep.subr.mxu0 %v7368_v8 }
 0x6ec   : > { %6875 = vmatmul.mubr.msk.bf16.vlgmr.msra.gmra.mrb[8].mxu0 %vm1725_vm6, %v1889_v56 }
 0x6ed   : > { %6885 = vmatprep.mubr.msk.f32.mxu0 %vm7369_vm4, %v7368_v8 }
 0x7bb   : > { %v2053_v57 = vpop.f32.mrb[4].mxu0 }
 0x7bc   : > { %v2057_v58 = vpack.c.bf16 %v2053_v57, %v2053_v57  ;;  %v6865_v59 = vpop.f32.mrb[5].mxu0 }
 0x7bd   : > { %v2625_v59 = vld [vmem:[%s8409_s26] sm:$0x1]  ;;  %s8419_s26 = sld [smem:[#allocation47_spill]] }
 0x7be   : > { %6869 = vmatmul.mubr.msk.bf16.vlgmr.msra.gmra.mrb[8].mxu1 %vm1725_vm6, %v2057_v58  ;;  %v7112_v58 = vld [vmem:[%s8405_s3] sm:$0xff]  }
 0x7bf   : > { %6879 = vmatpush3.xpose.msk.msra.mxu1 %vm1725_vm6, %v2154_v60  ;;  %v2145_v61 = vpop.f32.mrb[8].mxu0  ;;  %6880 = vmatprep.mubr.msk.f32.mxu1 %vm7369_vm4, %v7368_v8 }
 0x7c0   : > { %v6876_v62 = vpop.f32.mrb[9].mxu0  ;;  %6888 = vmatprep.subr.bf16.mxu1 %v7368_v8 }
 0x7c1   : > { %v2148_v63 = vpop.f32.mrb[10].mxu0 }
 0x7c2   : > { %v6877_v0 = vpop.f32.mrb[11].mxu0  ;;  %v7113_v63 = vld [vmem:[%s8405_s3 + $0x8] sm:$0xff]   ;;  %s8415_s3 = scalar_lea.vmem %s8412_s17, %s7610_s15  ;;  %s8422_s17 = sld [smem:[#allocation20_spill]] }
 0x7c6   : > { %6881 = vmatmul.mubr.msk.f32.vlgmr.msra.gmra.mrb[6].mxu1 %vm1725_vm6, %v2152_v1 }
 0x7c7   : > { %6890 = vmatprep.mubr.msk.bf16.mxu1 %vm7369_vm4, %v7368_v8  ;;  %6889 = vmatpush3.bf16.msra.mxu1 %v2323_v28  ;;  %v7839_v28 = vshrl.u32 %v2742_v27, 7 }
 0x7c8   : > { %6904 = vmatprep.subr.bf16.mxu1 %v7368_v8 }
 0x891   : > { %v2099_v2 = vpop.f32.mrb[8].mxu1 }
 0x892   : > { %v7773_v3 = vadd.f32 %v2145_v61, %v2099_v2  ;;  %v6870_v4 = vpop.f32.mrb[9].mxu1 }
 0x893   : > { %v2102_v5 = vpop.f32.mrb[10].mxu1 }
 0x894   : > { %v6871_v6 = vpop.f32.mrb[11].mxu1 }
 0x899   : > { %v2225_v7 = vpop.f32.mrb[6].mxu1 }
 0x89a   : > { %v2229_v9 = vmul.f32 0.35355338, %v2225_v7  ;;  %v6882_v11 = vpop.f32.mrb[7].mxu1 }
 0x89c   : > { %v2230_v12 = vadd.f32 %v2229_v9, %v7729_v21 }
 0x89e   : > { %v2231_v13 = vsel %vm1725_vm6, %v2230_v12, -inf }
 0x89f   : > { %2232 = vmax.xlane.f32.xlu1 %v2231_v13 }
 0x8b0   : > { %2242 = vrot.lane.b32.xlu1 %v7714_v14, %s7377_s4  ;;  %s8410_s4 = scalar_lea.vmem %s8408_s22, %s7610_s15  ;;  %s8418_s22 = sld [smem:[#allocation6_spill]] }
 0x8b4   : > { %2368 = vrot.lane.b32.xlu1 %v7714_v14, %s7378_s10 }
 0x8b8   : > { %2366 = vrot.lane.b32.xlu1 %v7714_v14, %s7379_s28 }
 0x92c   : > { %v2233_v15 = vpop.xlane.xlu1 %2232 }
 0x92d   : > { %v2234_v16 = vsub.f32 %v2230_v12, %v2233_v15 }
 0x92f   : > { %v2235_v17 = vmul.f32 1.442695, %v2234_v16 }
 0x930   : > { %v2243_v18 = vpop.permute.xlu1 %2242 }
 0x931   : > { %7254 = vpow2.f32 %v2235_v17  ;;  %6884 = vmatpush3.msra.mxu0 %v2243_v18 }
 0x932   : > { %6894 = vmatprep.subr.mxu0 %v7368_v8 }
 0x934   : > { %v2369_v24 = vpop.permute.xlu1 %2368 }
 0x938   : > { %v2367_v26 = vpop.permute.xlu1 %2366 }
 0x93b   : > { %v7255_v19 = vpop.eup %7254 }
 0x93c   : > { %v2237_v20 = vsel %vm1725_vm6, %v7255_v19, 0.0 }
 0x93d   : > { %2238 = vadd.xlane.f32.xlu0 %v2237_v20 }
 0x9ca   : > { %v2239_v22 = vpop.xlane.xlu0 %2238 }
 0x9cb   : > { %7256 = vrcp.f32 %v2239_v22 }
 0x9d5   : > { %v7257_v23 = vpop.eup %7256 }
 0x9d6   : > { %v2241_v25 = vmul.f32 %v7257_v23, %v7255_v19 }
 0x9d8   : > { %6886 = vmatmul.mubr.msk.f32.vlgmr.msra.gmra.mrb[6].mxu0 %vm1725_vm6, %v2241_v25 }
 0x9d9   : > { %6895 = vmatpush3.xpose.msk.msra.mxu0 %vm1725_vm6, %v2369_v24  ;;  %6896 = vmatprep.mubr.msk.f32.mxu0 %vm7369_vm4, %v7368_v8 }
 0x9da   : > { %6899 = vmatprep.subr.mxu0 %v7368_v8 }
 0x9dc   : > { %6897 = vmatmul.mubr.msk.f32.vlgmr.msra.gmra.mrb[12].mxu0 %vm1725_vm6, %v2367_v26 }
 0x9dd   : > { %6901 = vmatprep.mubr.msk.f32.mxu0 %vm7369_vm4, %v7368_v8 }
 0xaab   : > { %v2314_v29 = vpop.f32.mrb[6].mxu0 }
 0xaac   : > { %v2318_v30 = vpack.c.bf16 %v2314_v29, %v2314_v29  ;;  %v6887_v31 = vpop.f32.mrb[7].mxu0 }
 0xaad   : > { %v7845_v31 = vsub.s32 0, %v7839_v28 }
 0xaae   : > { %6891 = vmatmul.mubr.msk.bf16.vlgmr.msra.gmra.mrb[12].mxu1 %vm1725_vm6, %v2318_v30 }
 0xaaf   : > { %v2440_v32 = vpop.f32.mrb[12].mxu0  ;;  %6906 = vmatprep.mubr.msk.bf16.mxu1 %vm7369_vm4, %v7368_v8  ;;  %6905 = vmatpush3.bf16.msra.mxu1 %v2538_v43 }
 0xab0   : > { %v2444_v33 = vmul.f32 0.35355338, %v2440_v32  ;;  %v6898_v34 = vpop.f32.mrb[13].mxu0  ;;  %6918 = vmatprep.subr.bf16.mxu1 %v7368_v8 }
 0xab2   : > { %v2445_v35 = vadd.f32 %v2444_v33, %v7729_v21  ;;  %v6363_v33 = vld [vmem:[%s8415_s3] ss:$0 sm:$0xff]  ;;  %s8426_s3 = sld [smem:[#allocation22_spill]] }
 0xab4   : > { %v2446_v36 = vsel %vm1725_vm6, %v2445_v35, -inf }
 0xab5   : > { %2447 = vmax.xlane.f32.xlu1 %v2446_v36 }
 0xb42   : > { %v2448_v37 = vpop.xlane.xlu1 %2447 }
 0xb43   : > { %v2449_v38 = vsub.f32 %v2445_v35, %v2448_v37  ;;  %v6364_v35 = vld [vmem:[%s8416_s30] ss:$0 sm:$0xff]  ;;  %s8427_s30 = scalar_lea.vmem %s8426_s3, %s7610_s15 }
 0xb45   : > { %v2450_v39 = vmul.f32 1.442695, %v2449_v38 }
 0xb47   : > { %7258 = vpow2.f32 %v2450_v39 }
 0xb51   : > { %v7259_v40 = vpop.eup %7258 }
 0xb52   : > { %v2452_v41 = vsel %vm1725_vm6, %v7259_v40, 0.0 }
 0xb53   : > { %2453 = vadd.xlane.f32.xlu0 %v2452_v41 }
 0xb69   : > { %2457 = vrot.lane.b32.xlu0 %v7714_v14, %s7380_s1  ;;  %s8411_s1 = sld [smem:[#allocation18_spill]] }
 0xb6f   : > { %s8414_s21 = scalar_lea.vmem %s8411_s1, %s7610_s15  ;;  %s8421_s1 = sld [smem:[#allocation19_spill]] }
 0xb70   : > { %v2686_v29 = vld [vmem:[%s8414_s21] sm:$0x1]  ;;  %s8425_s21 = scalar_lea.vmem %s8422_s17, %s7610_s15 }
 0xb75   : > { %s8424_s9 = scalar_lea.vmem %s8421_s1, %s7610_s15 }
 0xb81   : > { %v2359_v21 = vpop.f32.mrb[12].mxu1 }
 0xb82   : > { %v2365_v44 = vadd.f32 %v2359_v21, %v7773_v3  ;;  %v6892_v45 = vpop.f32.mrb[13].mxu1  ;;  %v6362_v3 = vld [vmem:[%s8410_s4] ss:$0 sm:$0xff]  ;;  %s8420_s4 = scalar_lea.vmem %s8418_s22, %s8419_s26 }
 0xb83   : > { %v2362_v46 = vpop.f32.mrb[14].mxu1  ;;  %v7114_v45 = vld [vmem:[%s7656_s5] sm:$0xff]  }
 0xb84   : > { %v6893_v47 = vpop.f32.mrb[15].mxu1  ;;  %v7115_v46 = vld [vmem:[%s7656_s5 + $0x8] sm:$0xff]  }
 0xb85   : > { %v7116_v47 = vld [vmem:[%s8417_s20] sm:$0xff]  }
 0xbe0   : > { %v2454_v48 = vpop.xlane.xlu0 %2453 }
 0xbe1   : > { %7260 = vrcp.f32 %v2454_v48  ;;  %v1647_v48 = vld [vmem:[%s8420_s4] sm:$0xff] }
 0xbe4   : > { %v2458_v49 = vpop.permute.xlu0 %2457 }
 0xbe5   : > { %6900 = vmatpush3.msra.mxu0 %v2458_v49  ;;  %v2853_v49 = vpack.c.bf16 %v1647_v48, %v1647_v48 }
 0xbe6   : > { %6910 = vmatprep.subr.bf16.mxu0 %v7368_v8 }
 0xbeb   : > { %v7261_v14 = vpop.eup %7260 }
 0xbec   : > { %v2456_v50 = vmul.f32 %v7261_v14, %v7259_v40  ;;  %v7117_v14 = vld [vmem:[%s8417_s20 + $0x8] sm:$0xff]  }
 0xbee   : > { %6902 = vmatmul.mubr.msk.f32.vlgmr.msra.gmra.mrb[14].mxu0 %vm1725_vm6, %v2456_v50 }
 0xbef   : > { %6914 = vmatprep.mubr.msk.bf16.mxu0 %vm7369_vm4, %v7368_v8  ;;  %6911 = vmatpush3.bf16.msra.mxu0 %v7110_v51 }
 0xbf0   : > { %6912 = vmatprep.subr.bf16.mxu0 %v7368_v8 }
 0xbf3   : > { %6913 = vmatpush3.bf16.msra.mxu0 %v7111_v52 }
 0xbf4   : > { %6926 = vmatprep.subr.bf16.mxu0 %v7368_v8 }
 0xbf6   : > { %6915 = vmatmul.mubr.msk.bf16.vlgmr.msra.gmra.mrb[16].mxu0 %vm1678_vm5, %v2620_v54  ;;  %v6371_v54 = vld [vmem:[%s8424_s9] ss:$0 sm:$0xff] }
 0xbf7   : > { %6930 = vmatprep.mubr.msk.bf16.mxu0 %vm7369_vm4, %v7368_v8  ;;  %6927 = vmatpush3.bf16.msra.mxu0 %v7116_v47 }
 0xbf8   : > { %6928 = vmatprep.subr.bf16.mxu0 %v7368_v8 }
 0xbfb   : > { %6929 = vmatpush3.bf16.msra.mxu0 %v7117_v14 }
 0xbfc   : > { %6942 = vmatprep.subr.mxu0 %v7368_v8 }
 0xcc1   : > { %v2529_v55 = vpop.f32.mrb[14].mxu0 }
 0xcc2   : > { %v2533_v56 = vpack.c.bf16 %v2529_v55, %v2529_v55  ;;  %v6903_v57 = vpop.f32.mrb[15].mxu0 }
 0xcc4   : > { %6907 = vmatmul.mubr.msk.bf16.vlgmr.msra.gmra.mrb[16].mxu1 %vm1725_vm6, %v2533_v56  ;;  %v6372_v56 = vld [vmem:[%s8425_s21] ss:$0 sm:$0xff] }
 0xcc5   : > { %6922 = vmatprep.mubr.msk.bf16.mxu1 %vm7369_vm4, %v7368_v8  ;;  %6919 = vmatpush3.bf16.msra.mxu1 %v7112_v58 }
 0xcc6   : > { %6920 = vmatprep.subr.bf16.mxu1 %v7368_v8 }
 0xcc9   : > { %v2675_v60 = vpop.f32.mrb[16].mxu0  ;;  %6921 = vmatpush3.bf16.msra.mxu1 %v7113_v63 }
 0xcca   : > { %v2676_v61 = vadd.f32 %v2675_v60, %v2625_v59  ;;  %v6916_v62 = vpop.f32.mrb[17].mxu0  ;;  %6934 = vmatprep.subr.bf16.mxu1 %v7368_v8  ;;  %v6377_v60 = vld [vmem:[%s1516_s13] ss:$0 sm:$0xff] }
 0xccb   : > { %v2678_v0 = vpop.f32.mrb[18].mxu0 }
 0xccc   : > { %v6917_v1 = vpop.f32.mrb[19].mxu0  ;;  %v2681_v2 = vpack.c.bf16 %v2676_v61, %v2676_v61 }
 0xcce   : > { %6923 = vmatmul.mubr.msk.bf16.vlgmr.msra.gmra.mrb[20].mxu1 %vm1678_vm5, %v2681_v2  ;;  %v6373_v2 = vld [vmem:[%s8427_s30] ss:$0 sm:$0xff] }
 0xccf   : > { %6938 = vmatprep.mubr.msk.bf16.mxu1 %vm7369_vm4, %v7368_v8  ;;  %6935 = vmatpush3.bf16.msra.mxu1 %v7114_v45 }
 0xcd0   : > { %6936 = vmatprep.subr.bf16.mxu1 %v7368_v8 }
 0xcd3   : > { %6937 = vmatpush3.bf16.msra.mxu1 %v7115_v46 }
 0xcd4   : > { %6947 = vmatprep.subr.mxu1 %v7368_v8 }
 0xcd6   : > { %6939 = vmatmul.mubr.msk.bf16.vlgmr.msra.gmra.mrb[24].mxu1 %vm1678_vm5, %v2853_v49 }
 0xcd7   : > { %6949 = vmatprep.mubr.msk.f32.mxu1 %vm7369_vm4, %v7368_v8 }
 0xd97   : > { %v2574_v4 = vpop.f32.mrb[16].mxu1 }
 0xd98   : > { %v2580_v5 = vadd.f32 %v2574_v4, %v2365_v44  ;;  %v6908_v6 = vpop.f32.mrb[17].mxu1 }
 0xd99   : > { %v2577_v7 = vpop.f32.mrb[18].mxu1 }
 0xd9a   : > { %v2587_v9 = vadd.f32 %v6362_v3, %v2580_v5  ;;  %v6909_v11 = vpop.f32.mrb[19].mxu1 }
 0xd9c   : > { %v2588_v12 = vadd.f32 %v2587_v9, %v7700_v10 }
 0xd9e   : > { %v2591_v13 = vsel %vm1678_vm5, %v2588_v12, 0.0 }
 0xd9f   : > { %2592 = vadd.xlane.f32.xlu0 %v2591_v13 }
 0xda1   : > { %v2736_v20 = vpop.f32.mrb[20].mxu1 }
 0xda2   : > { %v6924_v22 = vpop.f32.mrb[21].mxu1  ;;  %v2737_v30 = vadd.f32 %v2736_v20, %v2686_v29 }
 0xda3   : > { %v2739_v23 = vpop.f32.mrb[22].mxu1 }
 0xda4   : > { %v6925_v10 = vpop.f32.mrb[23].mxu1  ;;  %v2745_v36 = vrot.slane %v2737_v30, %v7845_v31 }
 0xda9   : > { %v2909_v61 = vpop.f32.mrb[24].mxu1 }
 0xdaa   : > { %v7886_v62 = vadd.f32 %v6377_v60, %v2909_v61  ;;  %v6940_v63 = vpop.f32.mrb[25].mxu1 }
 0xdab   : > { %v2912_v0 = vpop.f32.mrb[26].mxu1 }
 0xdac   : > { %v6941_v1 = vpop.f32.mrb[27].mxu1 }
 0xe2c   : > { %v2593_v15 = vpop.xlane.xlu0 %2592 }
 0xe2d   : > { %v2595_v16 = vmul.f32 0.03125, %v2593_v15 }
 0xe2f   : > { %v2596_v17 = vsub.f32 %v2588_v12, %v2595_v16 }
 0xe31   : > { %v2597_v18 = vmul.f32 %v2596_v17, %v2596_v17 }
 0xe33   : > { %v2598_v19 = vsel %vm1678_vm5, %v2597_v18, 0.0 }
 0xe34   : > { %2599 = vadd.xlane.f32.xlu1 %v2598_v19 }
 0xec1   : > { %v2600_v24 = vpop.xlane.xlu1 %2599 }
 0xec2   : > { %v2601_v25 = vmul.f32 0.03125, %v2600_v24 }
 0xec4   : > { %v2602_v26 = vadd.f32 1e-05, %v2601_v25 }
 0xec6   : > { %7262 = vrsqrt.f32 %v2602_v26 }
 0xed0   : > { %v7263_v32 = vpop.eup %7262 }
 0xed1   : > { %v2604_v34 = vmul.f32 %v7263_v32, %v2596_v17 }
 0xed3   : > { %v2611_v37 = vmul.f32 %v6363_v33, %v2604_v34 }
 0xed5   : > { %v2618_v38 = vadd.f32 %v6364_v35, %v2611_v37 }
 0xed7   : > { %v2746_v39 = vadd.f32 %v2745_v36, %v2618_v38 }
 0xed9   : > { %v2749_v40 = vsel %vm1678_vm5, %v2746_v39, 0.0 }
 0xeda   : > { %2750 = vadd.xlane.f32.xlu1 %v2749_v40 }
 0xf67   : > { %v2751_v41 = vpop.xlane.xlu1 %2750 }
 0xf68   : > { %v2752_v42 = vmul.f32 0.03125, %v2751_v41  ;;  %v2786_v41 = vld [vmem:[%s7661_s12] sm:$0xf] }
 0xf6a   : > { %v2753_v43 = vsub.f32 %v2746_v39, %v2752_v42  ;;  %v3297_v42 = vsel %vm2061_vm7, %v2786_v41, 0 }
 0xf6c   : > { %v2754_v21 = vmul.f32 %v2753_v43, %v2753_v43 }
 0xf6e   : > { %v2755_v44 = vsel %vm1678_vm5, %v2754_v21, 0.0 }
 0xf6f   : > { %2756 = vadd.xlane.f32.xlu1 %v2755_v44 }
 0xf80   : > { %3082 = vrot.lane.b32.xlu1 %v7886_v62, %s7373_s16 }
 0xffc   : > { %v2757_v50 = vpop.xlane.xlu1 %2756 }
 0xffd   : > { %v2758_v51 = vmul.f32 0.03125, %v2757_v50 }
 0xfff   : > { %v2759_v52 = vadd.f32 1e-05, %v2758_v51 }
0x1000   : > { %v3083_v6 = vpop.permute.xlu1 %3082 }
0x1001   : > { %7264 = vrsqrt.f32 %v2759_v52 }
0x100b   : > { %v7265_v53 = vpop.eup %7264 }
0x100c   : > { %v2761_v55 = vmul.f32 %v7265_v53, %v2753_v43  ;;  %v2787_v43 = vld [vmem:[%s7661_s12 + $0x4] sm:$0xf] }
0x100d   : > { %v3251_v21 = vsel %vm2061_vm7, %v2787_v43, 0 }
0x100e   : > { %v2768_v57 = vmul.f32 %v6371_v54, %v2761_v55 }
0x1010   : > { %v7876_v58 = vadd.f32 %v6372_v56, %v2768_v57 }
0x1012   : > { %v2791_v59 = vpack.c.bf16 %v7876_v58, %v7876_v58 }
0x1014   : > { %6931 = vmatmul.mubr.msk.bf16.vlgmr.msra.gmra.mrb[20].mxu0 %vm1678_vm5, %v2791_v59 }
0x1015   : > { %6944 = vmatprep.mubr.msk.f32.mxu0 %vm7369_vm4, %v7368_v8  ;;  %6943 = vmatpush3.xpose.msk.msra.mxu0 %vm1725_vm6, %v7886_v62 }
0x1016   : > { %6952 = vmatprep.subr.mxu0 %v7368_v8 }
0x10e7   : > { %v2847_v3 = vpop.f32.mrb[20].mxu0 }
0x10e8   : > { %v7896_v4 = vadd.f32 %v6373_v2, %v2847_v3  ;;  %v6932_v5 = vpop.f32.mrb[21].mxu0 }
0x10e9   : > { %v2850_v7 = vpop.f32.mrb[22].mxu0 }
0x10ea   : > { %3080 = vrot.lane.b32.xlu0 %v7896_v4, %s7373_s16  ;;  %v6933_v9 = vpop.f32.mrb[23].mxu0  ;;  %6945 = vmatmul.mubr.msk.f32.vlgmr.msra.gmra.mrb[24].mxu0 %vm1725_vm6, %v7896_v4 }
0x10eb   : > { %6953 = vmatpush3.xpose.msk.msra.mxu0 %vm1725_vm6, %v3083_v6  ;;  %6954 = vmatprep.mubr.msk.f32.mxu0 %vm7369_vm4, %v7368_v8 }
0x10ec   : > { %6962 = vmatprep.subr.bf16.mxu0 %v7368_v8 }
0x115c   : > { %v3081_v11 = vpop.permute.xlu0 %3080 }
0x115d   : > { %6955 = vmatmul.mubr.msk.f32.vlgmr.msra.gmra.mrb[26].mxu0 %vm1725_vm6, %v3081_v11 }
0x115e   : > { %6964 = vmatprep.mubr.msk.bf16.mxu0 %vm7369_vm4, %v7368_v8  ;;  %6963 = vmatpush3.bf16.msra.mxu0 %v3251_v21  ;;  %v6397_v21 = vld [vmem:[%s1524_s6] ss:$0 sm:$0xff] }
0x115f   : > { %6974 = vmatprep.subr.mxu0 %v7368_v8 }
0x11bd   : > { %v2987_v12 = vpop.f32.mrb[24].mxu0 }
0x11be   : > { %v2991_v13 = vmul.f32 0.35355338, %v2987_v12  ;;  %v6946_v15 = vpop.f32.mrb[25].mxu0 }
0x11c0   : > { %v2992_v16 = vsel %vm1725_vm6, %v2991_v13, -inf }
0x11c1   : > { %2993 = vmax.xlane.f32.xlu1 %v2992_v16  ;;  %v2788_v16 = vld [vmem:[%s7661_s12 + $0x8] sm:$0xf] }
0x1230   : > { %v3154_v17 = vpop.f32.mrb[26].mxu0 }
0x1231   : > { %v3158_v18 = vmul.f32 0.35355338, %v3154_v17  ;;  %v6956_v19 = vpop.f32.mrb[27].mxu0  ;;  %v3510_v17 = vsel %vm2061_vm7, %v2788_v16, 0 }
0x1233   : > { %v3159_v20 = vsel %vm1725_vm6, %v3158_v18, -inf }
0x1234   : > { %3160 = vmax.xlane.f32.xlu0 %v3159_v20 }
0x124a   : > { %3170 = vrot.lane.b32.xlu0 %v7886_v62, %s7372_s0 }
0x124e   : > { %v2994_v22 = vpop.xlane.xlu1 %2993 }
0x124f   : > { %v2995_v23 = vsub.f32 %v2991_v13, %v2994_v22 }
0x1251   : > { %v2996_v10 = vmul.f32 1.442695, %v2995_v23 }
0x1253   : > { %7266 = vpow2.f32 %v2996_v10 }
0x125d   : > { %v7267_v24 = vpop.eup %7266 }
0x125e   : > { %v2998_v25 = vsel %vm1725_vm6, %v7267_v24, 0.0 }
0x125f   : > { %2999 = vadd.xlane.f32.xlu1 %v2998_v25 }
0x12c1   : > { %v3161_v26 = vpop.xlane.xlu0 %3160 }
0x12c2   : > { %v3162_v27 = vsub.f32 %v3158_v18, %v3161_v26 }
0x12c4   : > { %v3163_v29 = vmul.f32 1.442695, %v3162_v27 }
0x12c5   : > { %v3171_v38 = vpop.permute.xlu0 %3170 }
0x12c6   : > { %7268 = vpow2.f32 %v3163_v29 }
0x12d0   : > { %v7269_v30 = vpop.eup %7268 }
0x12d1   : > { %v3165_v32 = vsel %vm1725_vm6, %v7269_v30, 0.0 }
0x12d2   : > { %3166 = vadd.xlane.f32.xlu1 %v3165_v32 }
0x12e3   : > { %3003 = vrot.lane.b32.xlu1 %v7886_v62, %s7371_s2 }
0x12e7   : > { %3341 = vrot.lane.b32.xlu1 %v7886_v62, %s7376_s7 }
0x12eb   : > { %3339 = vrot.lane.b32.xlu1 %v7896_v4, %s7376_s7 }
0x12ec   : > { %v3000_v33 = vpop.xlane.xlu1 %2999 }
0x12ed   : > { %7270 = vrcp.f32 %v3000_v33  ;;  %v2789_v33 = vld [vmem:[%s7661_s12 + $0xc] sm:$0xf] }
0x12f7   : > { %v7271_v35 = vpop.eup %7270 }
0x12f8   : > { %v3002_v36 = vmul.f32 %v7271_v35, %v7267_v24 }
0x135f   : > { %v3167_v34 = vpop.xlane.xlu1 %3166 }
0x1360   : > { %7272 = vrcp.f32 %v3167_v34 }
0x1363   : > { %v3004_v37 = vpop.permute.xlu1 %3003 }
0x1364   : > { %6948 = vmatpush3.msra.mxu1 %v3004_v37 }
0x1365   : > { %6950 = vmatmul.mubr.msk.f32.vlgmr.msra.gmra.mrb[28].mxu1 %vm1725_vm6, %v3002_v36  ;;  %6957 = vmatprep.subr.mxu1 %v7368_v8 }
0x1366   : > { %6958 = vmatpush3.msra.mxu1 %v3171_v38  ;;  %6959 = vmatprep.mubr.msk.f32.mxu1 %vm7369_vm4, %v7368_v8 }
0x1367   : > { %6968 = vmatprep.subr.bf16.mxu1 %v7368_v8  ;;  %v3342_v14 = vpop.permute.xlu1 %3341 }
0x136a   : > { %v7273_v39 = vpop.eup %7272 }
0x136b   : > { %v3169_v40 = vmul.f32 %v7273_v39, %v7269_v30  ;;  %v3340_v50 = vpop.permute.xlu1 %3339 }
0x136d   : > { %6960 = vmatmul.mubr.msk.f32.vlgmr.msra.gmra.mrb[30].mxu1 %vm1725_vm6, %v3169_v40 }
0x136e   : > { %6970 = vmatprep.mubr.msk.bf16.mxu1 %vm7369_vm4, %v7368_v8  ;;  %6969 = vmatpush3.bf16.msra.mxu1 %v3297_v42 }
0x136f   : > { %6979 = vmatprep.subr.mxu1 %v7368_v8 }
0x1438   : > { %v3075_v44 = vpop.f32.mrb[28].mxu1 }
0x1439   : > { %v3079_v45 = vpack.c.bf16 %v3075_v44, %v3075_v44  ;;  %v6951_v46 = vpop.f32.mrb[29].mxu1 }
0x143b   : > { %6971 = vmatmul.mubr.msk.bf16.vlgmr.msra.gmra.mrb[32].mxu1 %vm1725_vm6, %v3079_v45 }
0x143c   : > { %6981 = vmatprep.mubr.msk.f32.mxu1 %vm7369_vm4, %v7368_v8 }
0x1440   : > { %v3242_v47 = vpop.f32.mrb[30].mxu1 }
0x1441   : > { %v3246_v48 = vpack.c.bf16 %v3242_v47, %v3242_v47  ;;  %v6961_v49 = vpop.f32.mrb[31].mxu1 }
0x1443   : > { %6965 = vmatmul.mubr.msk.bf16.vlgmr.msra.gmra.mrb[28].mxu0 %vm1725_vm6, %v3246_v48 }
0x1444   : > { %6975 = vmatpush3.xpose.msk.msra.mxu0 %vm1725_vm6, %v3342_v14  ;;  %6976 = vmatprep.mubr.msk.f32.mxu0 %vm7369_vm4, %v7368_v8 }
0x1445   : > { %6984 = vmatprep.subr.bf16.mxu0 %v7368_v8 }
0x144b   : > { %6977 = vmatmul.mubr.msk.f32.vlgmr.msra.gmra.mrb[32].mxu0 %vm1725_vm6, %v3340_v50 }
0x144c   : > { %6986 = vmatprep.mubr.msk.bf16.mxu0 %vm7369_vm4, %v7368_v8  ;;  %6985 = vmatpush3.bf16.msra.mxu0 %v3510_v17  ;;  %v3815_v17 = vld [vmem:[%s7671_s25 + $0x58] sm:$0xff] }
0x144d   : > { %7000 = vmatprep.subr.bf16.mxu0 %v7368_v8 }
0x150e   : > { %v3333_v51 = vpop.f32.mrb[32].mxu1 }
0x150f   : > { %v6972_v52 = vpop.f32.mrb[33].mxu1 }
0x1510   : > { %v3336_v53 = vpop.f32.mrb[34].mxu1 }
0x1511   : > { %v6973_v54 = vpop.f32.mrb[35].mxu1 }
0x1516   : > { %v3287_v55 = vpop.f32.mrb[28].mxu0 }
0x1517   : > { %v3334_v56 = vadd.f32 %v3333_v51, %v3287_v55  ;;  %v6966_v57 = vpop.f32.mrb[29].mxu0 }
0x1518   : > { %v3290_v59 = vpop.f32.mrb[30].mxu0  ;;  %v3812_v57 = vld [vmem:[%s7671_s25 + $0x40] sm:$0xff] }
0x1519   : > { %v6967_v60 = vpop.f32.mrb[31].mxu0  ;;  %v3805_v59 = vld [vmem:[%s7671_s25 + $0x8] sm:$0xff] }
0x151e   : > { %v3413_v61 = vpop.f32.mrb[32].mxu0 }
0x151f   : > { %v3417_v63 = vmul.f32 0.35355338, %v3413_v61  ;;  %v6978_v0 = vpop.f32.mrb[33].mxu0  ;;  %v3813_v61 = vld [vmem:[%s7671_s25 + $0x48] sm:$0xff] }
0x1520   : > { %v6403_v0 = vcombine.high %v3805_v59, %v3813_v61 }
0x1521   : > { %v3418_v1 = vsel %vm1725_vm6, %v3417_v63, -inf }
0x1522   : > { %3419 = vmax.xlane.f32.xlu1 %v3418_v1  ;;  %v3820_v1 = vld [vmem:[%s7671_s25 + $0x80] sm:$0xff] }
0x1533   : > { %3555 = vrot.lane.b32.xlu1 %v7886_v62, %s7379_s28 }
0x1537   : > { %3553 = vrot.lane.b32.xlu1 %v7896_v4, %s7379_s28 }
0x15af   : > { %v3420_v2 = vpop.xlane.xlu1 %3419 }
0x15b0   : > { %v3421_v3 = vsub.f32 %v3417_v63, %v3420_v2  ;;  %v6402_v63 = vcombine.low %v3805_v59, %v3813_v61  ;;  %v3828_v2 = vld [vmem:[%s7671_s25 + $0xc0] sm:$0xff]  ;;  %v3834_v61 = vld [vmem:[%s7671_s25 + $0xf0] sm:$0xff] }
0x15b2   : > { %v3422_v5 = vmul.f32 1.442695, %v3421_v3  ;;  %v3821_v3 = vld [vmem:[%s7671_s25 + $0x88] sm:$0xff] }
0x15b3   : > { %v3556_v4 = vpop.permute.xlu1 %3555 }
0x15b4   : > { %7274 = vpow2.f32 %v3422_v5  ;;  %v6417_v5 = vcombine.high %v3820_v1, %v3828_v2 }
0x15b7   : > { %v3554_v15 = vpop.permute.xlu1 %3553 }
0x15be   : > { %v7275_v6 = vpop.eup %7274 }
0x15bf   : > { %v3424_v7 = vsel %vm1725_vm6, %v7275_v6, 0.0 }
0x15c0   : > { %3425 = vadd.xlane.f32.xlu0 %v3424_v7  ;;  %v6416_v7 = vcombine.low %v3820_v1, %v3828_v2 }
0x15d6   : > { %3429 = vrot.lane.b32.xlu0 %v7886_v62, %s7375_s18 }
0x164d   : > { %v3426_v9 = vpop.xlane.xlu0 %3425 }
0x164e   : > { %7276 = vrcp.f32 %v3426_v9 }
0x1651   : > { %v3430_v11 = vpop.permute.xlu0 %3429 }
0x1652   : > { %6980 = vmatpush3.msra.mxu1 %v3430_v11 }
0x1653   : > { %6990 = vmatprep.subr.mxu1 %v7368_v8 }
0x1658   : > { %v7277_v12 = vpop.eup %7276 }
0x1659   : > { %v3428_v13 = vmul.f32 %v7277_v12, %v7275_v6  ;;  %v3829_v6 = vld [vmem:[%s7671_s25 + $0xc8] sm:$0xff]  ;;  %v3806_v12 = vld [vmem:[%s7671_s25 + $0x10] sm:$0xff] }
0x165a   : > { %v6418_v9 = vcombine.low %v3821_v3, %v3829_v6  ;;  %v6419_v11 = vcombine.high %v3821_v3, %v3829_v6 }
0x165b   : > { %6982 = vmatmul.mubr.msk.f32.vlgmr.msra.gmra.mrb[36].mxu1 %vm1725_vm6, %v3428_v13  ;;  %v3807_v13 = vld [vmem:[%s7671_s25 + $0x18] sm:$0xff] }
0x165c   : > { %6991 = vmatpush3.xpose.msk.msra.mxu1 %vm1725_vm6, %v3556_v4  ;;  %6992 = vmatprep.mubr.msk.f32.mxu1 %vm7369_vm4, %v7368_v8  ;;  %v3814_v4 = vld [vmem:[%s7671_s25 + $0x50] sm:$0xff] }
0x165d   : > { %6995 = vmatprep.subr.mxu1 %v7368_v8  ;;  %v6405_v16 = vcombine.high %v3806_v12, %v3814_v4 }
0x165f   : > { %6993 = vmatmul.mubr.msk.f32.vlgmr.msra.gmra.mrb[38].mxu1 %vm1725_vm6, %v3554_v15  ;;  %v7381_v15 = vmov 0  }
0x1660   : > { %6997 = vmatprep.mubr.msk.f32.mxu1 %vm7369_vm4, %v7368_v8 }
0x172e   : > { %v3501_v18 = vpop.f32.mrb[36].mxu1 }
0x172f   : > { %v3505_v19 = vpack.c.bf16 %v3501_v18, %v3501_v18  ;;  %v6983_v20 = vpop.f32.mrb[37].mxu1  ;;  %v6404_v18 = vcombine.low %v3806_v12, %v3814_v4  ;;  %v7121_v12 = vld [vmem:[%s7680_s23 + $0x80] sm:$0xff]   ;;  %v7122_v4 = vld [vmem:[%s7680_s23 + $0x48] sm:$0xff]  }
0x1730   : > { %v6407_v20 = vcombine.high %v3807_v13, %v3815_v17 }
0x1731   : > { %6987 = vmatmul.mubr.msk.bf16.vlgmr.msra.gmra.mrb[36].mxu0 %vm1725_vm6, %v3505_v19  ;;  %v6406_v19 = vcombine.low %v3807_v13, %v3815_v17  ;;  %v7123_v13 = vld [vmem:[%s7680_s23 + $0xc8] sm:$0xff]   ;;  %v7126_v17 = vld [vmem:[%s7680_s23 + $0x50] sm:$0xff]  }
0x1732   : > { %v3627_v22 = vpop.f32.mrb[38].mxu1  ;;  %7002 = vmatprep.mubr.msk.bf16.mxu0 %vm7369_vm4, %v7368_v8  ;;  %v3724_v8 = vsel %vm2061_vm7, %v2789_v33, 0  ;;  %v3823_v33 = vld [vmem:[%s7671_s25 + $0x98] sm:$0xff] }
0x1733   : > { %v3631_v23 = vmul.f32 0.35355338, %v3627_v22  ;;  %v6994_v10 = vpop.f32.mrb[39].mxu1  ;;  %7001 = vmatpush3.bf16.msra.mxu0 %v3724_v8  ;;  %v3831_v8 = vld [vmem:[%s7671_s25 + $0xd8] sm:$0xff] }
0x1734   : > { %4382 = vmatprep.subr.bf16.mxu0 %v6403_v0 }
0x1735   : > { %v3632_v24 = vsel %vm1725_vm6, %v3631_v23, -inf }
0x1736   : > { %3633 = vmax.xlane.f32.xlu0 %v3632_v24 }
0x174c   : > { %3643 = vrot.lane.b32.xlu0 %v7886_v62, %s7378_s10 }
0x17c3   : > { %v3634_v25 = vpop.xlane.xlu0 %3633 }
0x17c4   : > { %v3635_v26 = vsub.f32 %v3631_v23, %v3634_v25  ;;  %v6398_v25 = vld [vmem:[%s1527_s29] ss:$0 sm:$0xff] }
0x17c6   : > { %v3636_v27 = vmul.f32 1.442695, %v3635_v26 }
0x17c7   : > { %v3644_v29 = vpop.permute.xlu0 %3643 }
0x17c8   : > { %7278 = vpow2.f32 %v3636_v27  ;;  %6996 = vmatpush3.msra.mxu1 %v3644_v29  ;;  %v6399_v27 = vld [vmem:[%s1530_s8] ss:$0 sm:$0xff] }
0x17d2   : > { %v7279_v30 = vpop.eup %7278 }
0x17d3   : > { %v3638_v32 = vsel %vm1725_vm6, %v7279_v30, 0.0 }
0x17d4   : > { %3639 = vadd.xlane.f32.xlu1 %v3638_v32  ;;  %v3830_v32 = vld [vmem:[%s7671_s25 + $0xd0] sm:$0xff] }
0x1804   : > { %v3546_v34 = vpop.f32.mrb[36].mxu0 }
0x1805   : > { %v3552_v35 = vadd.f32 %v3546_v34, %v3334_v56  ;;  %v6988_v36 = vpop.f32.mrb[37].mxu0  ;;  %v3804_v56 = vld [vmem:[%s7671_s25] sm:$0xff] }
0x1806   : > { %v3549_v62 = vpop.f32.mrb[38].mxu0  ;;  %v6401_v60 = vcombine.high %v3804_v56, %v3812_v57 }
0x1807   : > { %v6989_v37 = vpop.f32.mrb[39].mxu0  ;;  %v6423_v62 = vcombine.high %v3823_v33, %v3831_v8 }
0x1808   : > { %4341 = vmatprep.subr.bf16.mxu1 %v6401_v60  ;;  %v3808_v37 = vld [vmem:[%s7671_s25 + $0x20] sm:$0xff]  ;;  %v3826_v60 = vld [vmem:[%s7671_s25 + $0xb0] sm:$0xff] }
0x1809   : > { %v6429_v2 = vcombine.high %v3826_v60, %v3834_v61 }
0x1861   : > { %v3640_v38 = vpop.xlane.xlu1 %3639 }
0x1862   : > { %7280 = vrcp.f32 %v3640_v38  ;;  %v3816_v38 = vld [vmem:[%s7671_s25 + $0x60] sm:$0xff] }
0x186c   : > { %v7281_v39 = vpop.eup %7280 }
0x186d   : > { %v3642_v40 = vmul.f32 %v7281_v39, %v7279_v30  ;;  %v3822_v30 = vld [vmem:[%s7671_s25 + $0x90] sm:$0xff]  ;;  %v3809_v39 = vld [vmem:[%s7671_s25 + $0x28] sm:$0xff] }
0x186e   : > { %v6421_v36 = vcombine.high %v3822_v30, %v3830_v32 }
0x186f   : > { %6998 = vmatmul.mubr.msk.f32.vlgmr.msra.gmra.mrb[40].mxu1 %vm1725_vm6, %v3642_v40  ;;  %v3817_v40 = vld [vmem:[%s7671_s25 + $0x68] sm:$0xff] }
0x1870   : > { %4373 = vmatprep.mubr.bf16.mxu1 %v7381_v15 }
0x1942   : > { %v3715_v41 = vpop.f32.mrb[40].mxu1 }
0x1943   : > { %v3719_v42 = vpack.c.bf16 %v3715_v41, %v3715_v41  ;;  %v6999_v43 = vpop.f32.mrb[41].mxu1  ;;  %v6420_v41 = vcombine.low %v3822_v30, %v3830_v32  ;;  %v7138_v30 = vld [vmem:[%s7680_s23 + $0x68] sm:$0xff]  }
0x1944   : > { %v6409_v43 = vcombine.high %v3808_v37, %v3816_v38  ;;  %v7139_v32 = vld [vmem:[%s7680_s23 + $0xe8] sm:$0xff]  }
0x1945   : > { %7003 = vmatmul.mubr.msk.bf16.vlgmr.msra.gmra.mrb[40].mxu0 %vm1725_vm6, %v3719_v42  ;;  %v6422_v42 = vcombine.low %v3823_v33, %v3831_v8  ;;  %v7140_v33 = vld [vmem:[%s7680_s23 + $0x28] sm:$0xff]  }
0x1946   : > { %4383 = vmatpush1.bf16.msra.mxu0 %v6402_v63  ;;  %4414 = vmatprep.mubr.bf16.mxu0 %v7381_v15  ;;  %v3835_v63 = vld [vmem:[%s7671_s25 + $0xf8] sm:$0xff]  ;;  %v7141_v8 = vld [vmem:[%s7680_s23 + $0xa8] sm:$0xff]  }
0x1947   : > { %4384 = vmatprep.subr.bf16.mxu0 %v6419_v11  ;;  %v7120_v11 = vld [vmem:[%s7680_s23] sm:$0xff]  }
0x194a   : > { %4385 = vmatpush1.bf16.msra.mxu0 %v6418_v9  ;;  %v7119_v9 = vld [vmem:[%s7680_s23 + $0xc0] sm:$0xff]  }
0x194b   : > { %4464 = vmatprep.subr.bf16.mxu0 %v6407_v20  ;;  %v7129_v20 = vld [vmem:[%s7680_s23 + $0x90] sm:$0xff]  }
0x1a18   : > { %v3760_v44 = vpop.f32.mrb[40].mxu0 }
0x1a19   : > { %v3766_v45 = vadd.f32 %v3760_v44, %v3552_v35  ;;  %v7004_v46 = vpop.f32.mrb[41].mxu0  ;;  %v3824_v44 = vld [vmem:[%s7671_s25 + $0xa0] sm:$0xff] }
0x1a1a   : > { %v3763_v47 = vpop.f32.mrb[42].mxu0  ;;  %v3825_v46 = vld [vmem:[%s7671_s25 + $0xa8] sm:$0xff] }
0x1a1b   : > { %v3773_v48 = vadd.f32 %v6397_v21, %v3766_v45  ;;  %v7005_v49 = vpop.f32.mrb[43].mxu0  ;;  %v6411_v21 = vcombine.high %v3809_v39, %v3817_v40  ;;  %v3832_v45 = vld [vmem:[%s7671_s25 + $0xe0] sm:$0xff]  ;;  %v3833_v47 = vld [vmem:[%s7671_s25 + $0xe8] sm:$0xff] }
0x1a1c   : > { %v6410_v49 = vcombine.low %v3809_v39, %v3817_v40  ;;  %v7147_v39 = vld [vmem:[%s7680_s23 + $0xf8] sm:$0xff]  }
0x1a1d   : > { %v3774_v14 = vadd.f32 %v3773_v48, %v7876_v58  ;;  %v6400_v58 = vcombine.low %v3804_v56, %v3812_v57  ;;  %v6408_v48 = vcombine.low %v3808_v37, %v3816_v38  ;;  %v6426_v56 = vcombine.low %v3825_v46, %v3833_v47  ;;  %v7145_v37 = vld [vmem:[%s7680_s23 + $0xb0] sm:$0xff]   ;;  %v7146_v38 = vld [vmem:[%s7680_s23 + $0x78] sm:$0xff]  }
0x1a1e   : > { %v7148_v40 = vld [vmem:[%s7680_s23 + $0x38] sm:$0xff]  }
0x1a1f   : > { %v3777_v50 = vsel %vm1678_vm5, %v3774_v14, 0.0  ;;  %4342 = vmatpush1.bf16.msra.mxu1 %v6400_v58  ;;  %v3827_v58 = vld [vmem:[%s7671_s25 + $0xb8] sm:$0xff] }
0x1a20   : > { %3778 = vadd.xlane.f32.xlu1 %v3777_v50  ;;  %4343 = vmatprep.subr.bf16.mxu1 %v6417_v5  ;;  %v6427_v50 = vcombine.high %v3825_v46, %v3833_v47  ;;  %v6431_v3 = vcombine.high %v3827_v58, %v3835_v63  ;;  %v6428_v5 = vcombine.low %v3826_v60, %v3834_v61  ;;  %v4108_v46 = vsub.s32 2, %v7839_v28  ;;  %v8096_v47 = vld [vmem:[%s7674_s27] sm:$0xff] }
0x1a21   : > { %v6430_v6 = vcombine.low %v3827_v58, %v3835_v63 }
0x1a23   : > { %4344 = vmatpush1.bf16.msra.mxu1 %v6416_v7  ;;  %v7118_v7 = vld [vmem:[%s7680_s23 + $0x40] sm:$0xff]  }
0x1a24   : > { %4423 = vmatprep.subr.bf16.mxu1 %v6405_v16  ;;  %v7125_v16 = vld [vmem:[%s7680_s23 + $0x88] sm:$0xff]  }
0x1aad   : > { %v3779_v51 = vpop.xlane.xlu1 %3778 }
0x1aae   : > { %v3780_v52 = vmul.f32 0.03125, %v3779_v51  ;;  %v3810_v51 = vld [vmem:[%s7671_s25 + $0x30] sm:$0xff] }
0x1ab0   : > { %v3781_v53 = vsub.f32 %v3774_v14, %v3780_v52  ;;  %v6425_v14 = vcombine.high %v3824_v44, %v3832_v45  ;;  %v3818_v52 = vld [vmem:[%s7671_s25 + $0x70] sm:$0xff] }
0x1ab1   : > { %v6413_v57 = vcombine.high %v3810_v51, %v3818_v52  ;;  %v6412_v0 = vcombine.low %v3810_v51, %v3818_v52 }
0x1ab2   : > { %v3782_v54 = vmul.f32 %v3781_v53, %v3781_v53 }
0x1ab4   : > { %v3783_v55 = vsel %vm1678_vm5, %v3782_v54, 0.0  ;;  %v3819_v54 = vld [vmem:[%s7671_s25 + $0x78] sm:$0xff] }
0x1ab5   : > { %3784 = vadd.xlane.f32.xlu1 %v3783_v55  ;;  %v6424_v55 = vcombine.low %v3824_v44, %v3832_v45  ;;  %v8087_v44 = vld [vmem:[%s7674_s27 + $0x8] sm:$0xff] }
0x1b42   : > { %v3785_v22 = vpop.xlane.xlu1 %3784 }
0x1b43   : > { %v3786_v23 = vmul.f32 0.03125, %v3785_v22  ;;  %v7130_v22 = vld [vmem:[%s7680_s23 + $0x58] sm:$0xff]  }
0x1b45   : > { %v3787_v10 = vadd.f32 1e-05, %v3786_v23  ;;  %v7131_v23 = vld [vmem:[%s7680_s23 + $0xd8] sm:$0xff]  }
0x1b47   : > { %7282 = vrsqrt.f32 %v3787_v10  ;;  %v7132_v10 = vld [vmem:[%s7680_s23 + $0x18] sm:$0xff]  }
0x1b51   : > { %v7283_v24 = vpop.eup %7282 }
0x1b52   : > { %v3789_v26 = vmul.f32 %v7283_v24, %v3781_v53  ;;  %v3811_v53 = vld [vmem:[%s7671_s25 + $0x38] sm:$0xff] }
0x1b53   : > { %v6415_v59 = vcombine.high %v3811_v53, %v3819_v54  ;;  %v6414_v1 = vcombine.low %v3811_v53, %v3819_v54  ;;  %v7133_v24 = vld [vmem:[%s7680_s23 + $0x98] sm:$0xff]  }
0x1b54   : > { %v3796_v29 = vmul.f32 %v6398_v25, %v3789_v26  ;;  %v7134_v25 = vld [vmem:[%s7680_s23 + $0x60] sm:$0xff]  }
0x1b55   : > { %v7135_v26 = vld [vmem:[%s7680_s23 + $0xe0] sm:$0xff]  }
0x1b56   : > { %v8007_v34 = vadd.f32 %v6399_v27, %v3796_v29  ;;  %v7136_v27 = vld [vmem:[%s7680_s23 + $0x20] sm:$0xff]  }
0x1b57   : > { %v7137_v29 = vld [vmem:[%s7680_s23 + $0xa0] sm:$0xff]  }
0x1b58   : > { %v8011_v35 = vpack.c.bf16 %v8007_v34, %v8007_v34 }
0x1b5a   : > { %6432 = vmatmul.mubr.msk.bf16.vlgmr.msra.gmra.mrb[44].mxu1 %vm1678_vm5, %v8011_v35  ;;  %6433 = vmatmul.mubr.msk.bf16.vlgmr.msra.gmra.mrb[44].mxu0 %vm1678_vm5, %v8011_v35 }
0x1b5b   : > { %4424 = vmatpush1.bf16.msra.mxu1 %v6404_v18  ;;  %4465 = vmatpush1.bf16.msra.mxu0 %v6406_v19  ;;  %v7127_v18 = vld [vmem:[%s7680_s23 + $0xd0] sm:$0xff]  }
0x1b5c   : > { %4425 = vmatprep.subr.bf16.mxu1 %v6421_v36  ;;  %4466 = vmatprep.subr.bf16.mxu0 %v6423_v62  ;;  %v7128_v19 = vld [vmem:[%s7680_s23 + $0x10] sm:$0xff]  }
0x1b5d   : > { %4455 = vmatprep.mubr.bf16.mxu1 %v7381_v15  ;;  %4496 = vmatprep.mubr.bf16.mxu0 %v7381_v15  ;;  %v7143_v36 = vld [vmem:[%s7680_s23 + $0xf0] sm:$0xff]  }
0x1b5e   : > { %v7144_v62 = vld [vmem:[%s7680_s23 + $0x30] sm:$0xff]  }
0x1b5f   : > { %4426 = vmatpush1.bf16.msra.mxu1 %v6420_v41  ;;  %4467 = vmatpush1.bf16.msra.mxu0 %v6422_v42  ;;  %v7149_v41 = vld [vmem:[%s7680_s23 + $0xb8] sm:$0xff]   ;;  %v7150_v42 = vld [vmem:[%s7680_s23 + $0x140] sm:$0xff]  }
0x1b60   : > { %4505 = vmatprep.subr.bf16.mxu1 %v6409_v43  ;;  %4546 = vmatprep.subr.bf16.mxu0 %v6411_v21  ;;  %v7151_v43 = vld [vmem:[%s7680_s23 + $0x1c0] sm:$0xff]   ;;  %v4124_v21 = vsub.s32 6, %v7839_v28 }
0x1b62   : > { %6434 = vmatmul.mubr.msk.bf16.vlgmr.msra.gmra.mrb[48].mxu1 %vm1678_vm5, %v8011_v35  ;;  %6435 = vmatmul.mubr.msk.bf16.vlgmr.msra.gmra.mrb[48].mxu0 %vm1678_vm5, %v8011_v35  ;;  %v8092_v45 = vrot.slane %v8087_v44, %v4124_v21 }
0x1b63   : > { %4506 = vmatpush1.bf16.msra.mxu1 %v6408_v48  ;;  %4547 = vmatpush1.bf16.msra.mxu0 %v6410_v49  ;;  %v4104_v48 = vsub.s32 1, %v7839_v28  ;;  %v4112_v49 = vsub.s32 3, %v7839_v28 }
0x1b64   : > { %4507 = vmatprep.subr.bf16.mxu1 %v6425_v14  ;;  %4548 = vmatprep.subr.bf16.mxu0 %v6427_v50  ;;  %v4101_v14 = vrot.slane %v8096_v47, %v7845_v31  ;;  %v4109_v50 = vrot.slane %v8096_v47, %v4108_v46 }
0x1b65   : > { %4537 = vmatprep.mubr.bf16.mxu1 %v7381_v15  ;;  %4578 = vmatprep.mubr.bf16.mxu0 %v7381_v15  ;;  %v4105_v51 = vrot.slane %v8096_v47, %v4104_v48  ;;  %v4113_v52 = vrot.slane %v8096_v47, %v4112_v49 }
0x1b67   : > { %4508 = vmatpush1.bf16.msra.mxu1 %v6424_v55  ;;  %4549 = vmatpush1.bf16.msra.mxu0 %v6426_v56 }
0x1b68   : > { %4587 = vmatprep.subr.bf16.mxu1 %v6413_v57  ;;  %4628 = vmatprep.subr.bf16.mxu0 %v6415_v59 }
0x1b6a   : > { %6436 = vmatmul.mubr.msk.bf16.vlgmr.msra.gmra.mrb[52].mxu1 %vm1678_vm5, %v8011_v35  ;;  %6437 = vmatmul.mubr.msk.bf16.vlgmr.msra.gmra.mrb[52].mxu0 %vm1678_vm5, %v8011_v35 }
0x1b6b   : > { %4588 = vmatpush1.bf16.msra.mxu1 %v6412_v0  ;;  %4629 = vmatpush1.bf16.msra.mxu0 %v6414_v1  ;;  %v4120_v0 = vsub.s32 5, %v7839_v28  ;;  %v4128_v1 = vsub.s32 7, %v7839_v28 }
0x1b6c   : > { %4589 = vmatprep.subr.bf16.mxu1 %v6429_v2  ;;  %4630 = vmatprep.subr.bf16.mxu0 %v6431_v3 }
0x1b6d   : > { %4619 = vmatprep.mubr.bf16.mxu1 %v7381_v15  ;;  %4660 = vmatprep.mubr.bf16.mxu0 %v7381_v15  ;;  %v7124_v15 = vld [vmem:[%s7680_s23 + $0x8] sm:$0xff]  }
0x1b6f   : > { %4590 = vmatpush1.bf16.msra.mxu1 %v6428_v5  ;;  %4631 = vmatpush1.bf16.msra.mxu0 %v6430_v6 }
0x1b70   : > { %6654 = vmatprep.subr.bf16.mxu1 %v7118_v7  ;;  %6676 = vmatprep.subr.bf16.mxu0 %v7119_v9 }
0x1b72   : > { %6438 = vmatmul.mubr.msk.bf16.vlgmr.msra.gmra.mrb[56].mxu1 %vm1678_vm5, %v8011_v35  ;;  %6439 = vmatmul.mubr.msk.bf16.vlgmr.msra.gmra.mrb[56].mxu0 %vm1678_vm5, %v8011_v35  ;;  %v7142_v35 = vld [vmem:[%s7680_s23 + $0x70] sm:$0xff]  }
0x1b73   : > { %6655 = vmatpush3.bf16.msra.mxu1 %v7120_v11  ;;  %6677 = vmatpush3.bf16.msra.mxu0 %v7121_v12 }
0x1b74   : > { %6656 = vmatprep.subr.bf16.mxu1 %v7122_v4  ;;  %6678 = vmatprep.subr.bf16.mxu0 %v7123_v13  ;;  %v4121_v4 = vrot.slane %v8096_v47, %v4120_v0  ;;  %v4129_v13 = vrot.slane %v8096_v47, %v4128_v1 }
0x1b77   : > { %6657 = vmatpush3.bf16.msra.mxu1 %v7124_v15  ;;  %6679 = vmatpush3.bf16.msra.mxu0 %v7125_v16  ;;  %v7152_v15 = vld [vmem:[%s7680_s23 + $0x100] sm:$0xff]  }
0x1b78   : > { %6658 = vmatprep.subr.bf16.mxu1 %v7126_v17  ;;  %6680 = vmatprep.subr.bf16.mxu0 %v7127_v18  ;;  %v7153_v16 = vld [vmem:[%s7680_s23 + $0x180] sm:$0xff]  }
0x1b7b   : > { %6659 = vmatpush3.bf16.msra.mxu1 %v7128_v19  ;;  %6681 = vmatpush3.bf16.msra.mxu0 %v7129_v20  ;;  %v7154_v19 = vld [vmem:[%s7680_s23 + $0x148] sm:$0xff]  }
0x1b7c   : > { %6660 = vmatprep.subr.bf16.mxu1 %v7130_v22  ;;  %6682 = vmatprep.subr.bf16.mxu0 %v7131_v23  ;;  %v7155_v20 = vld [vmem:[%s7680_s23 + $0x1c8] sm:$0xff]  }
0x1b7f   : > { %6661 = vmatpush3.bf16.msra.mxu1 %v7132_v10  ;;  %6683 = vmatpush3.bf16.msra.mxu0 %v7133_v24 }
0x1b80   : > { %6662 = vmatprep.subr.bf16.mxu1 %v7134_v25  ;;  %6684 = vmatprep.subr.bf16.mxu0 %v7135_v26 }
0x1b83   : > { %6663 = vmatpush3.bf16.msra.mxu1 %v7136_v27  ;;  %6685 = vmatpush3.bf16.msra.mxu0 %v7137_v29 }
0x1b84   : > { %6664 = vmatprep.subr.bf16.mxu1 %v7138_v30  ;;  %6686 = vmatprep.subr.bf16.mxu0 %v7139_v32  ;;  %v7156_v30 = vld [vmem:[%s7680_s23 + $0x108] sm:$0xff]  }
0x1b85   : > { %v7157_v32 = vld [vmem:[%s7680_s23 + $0x188] sm:$0xff]  }
0x1b87   : > { %6665 = vmatpush3.bf16.msra.mxu1 %v7140_v33  ;;  %6687 = vmatpush3.bf16.msra.mxu0 %v7141_v8 }
0x1b88   : > { %6666 = vmatprep.subr.bf16.mxu1 %v7142_v35  ;;  %6688 = vmatprep.subr.bf16.mxu0 %v7143_v36  ;;  %v7158_v35 = vld [vmem:[%s7680_s23 + $0x150] sm:$0xff]  }
0x1b89   : > { %v7159_v36 = vld [vmem:[%s7680_s23 + $0x1d0] sm:$0xff]  }
0x1b8b   : > { %6667 = vmatpush3.bf16.msra.mxu1 %v7144_v62  ;;  %6689 = vmatpush3.bf16.msra.mxu0 %v7145_v37 }
0x1b8c   : > { %6668 = vmatprep.subr.bf16.mxu1 %v7146_v38  ;;  %6690 = vmatprep.subr.bf16.mxu0 %v7147_v39  ;;  %v4141_v38 = vrot.slane %v8087_v44, %v4108_v46 }
0x1b8f   : > { %6669 = vmatpush3.bf16.msra.mxu1 %v7148_v40  ;;  %6691 = vmatpush3.bf16.msra.mxu0 %v7149_v41  ;;  %v7160_v41 = vld [vmem:[%s7680_s23 + $0x110] sm:$0xff]  }
0x1b90   : > { %6698 = vmatprep.subr.bf16.mxu1 %v7150_v42  ;;  %6720 = vmatprep.subr.bf16.mxu0 %v7151_v43  ;;  %v7161_v42 = vld [vmem:[%s7680_s23 + $0x190] sm:$0xff]   ;;  %v7162_v43 = vld [vmem:[%s7680_s23 + $0x158] sm:$0xff]  }
0x1c2d   : > { %v4375_v53 = vpop.f32.mrb[44].mxu1  ;;  %v4416_v54 = vpop.f32.mrb[44].mxu0 }
0x1c2e   : > { %v4376_v55 = vadd.f32 %v4375_v53, %v4101_v14  ;;  %v4417_v56 = vadd.f32 %v4416_v54, %v4109_v50  ;;  %v4377_v57 = vpop.f32.mrb[45].mxu1  ;;  %v4418_v59 = vpop.f32.mrb[45].mxu0  ;;  %v7163_v14 = vld [vmem:[%s7680_s23 + $0x1d8] sm:$0xff]  }
0x1c2f   : > { %v4378_v60 = vadd.f32 %v4377_v57, %v4105_v51  ;;  %v4419_v61 = vadd.f32 %v4418_v59, %v4113_v52  ;;  %v4379_v58 = vpop.f32.mrb[46].mxu1  ;;  %v4420_v63 = vpop.f32.mrb[46].mxu0  ;;  %v7165_v57 = vld [vmem:[%s7680_s23 + $0x198] sm:$0xff]   ;;  %v4116_v59 = vsub.s32 4, %v7839_v28 }
0x1c30   : > { %v4669_v2 = vmax.f32 %v4376_v55, 0.0  ;;  %v4671_v3 = vmax.f32 %v4417_v56, 0.0  ;;  %v4380_v5 = vpop.f32.mrb[47].mxu1  ;;  %v4421_v6 = vpop.f32.mrb[47].mxu0  ;;  %v7164_v56 = vld [vmem:[%s7680_s23 + $0x118] sm:$0xff]   ;;  %v7166_v58 = vld [vmem:[%s7680_s23 + $0x160] sm:$0xff]  }
0x1c31   : > { %v4670_v7 = vmax.f32 %v4378_v60, 0.0  ;;  %v4672_v9 = vmax.f32 %v4419_v61, 0.0  ;;  %v7167_v63 = vld [vmem:[%s7680_s23 + $0x1e0] sm:$0xff]   ;;  %v7170_v6 = vld [vmem:[%s7680_s23 + $0x168] sm:$0xff]  }
0x1c32   : > { %v4685_v17 = vpack.c.bf16 %v4669_v2, %v4669_v2  ;;  %v4687_v18 = vpack.c.bf16 %v4671_v3, %v4671_v3  ;;  %v4149_v2 = vrot.slane %v8087_v44, %v4116_v59  ;;  %v7168_v3 = vld [vmem:[%s7680_s23 + $0x120] sm:$0xff]  }
0x1c33   : > { %v4686_v11 = vpack.c.bf16 %v4670_v7, %v4670_v7  ;;  %v4688_v12 = vpack.c.bf16 %v4672_v9, %v4672_v9  ;;  %v7169_v5 = vld [vmem:[%s7680_s23 + $0x1a0] sm:$0xff]   ;;  %v7171_v7 = vld [vmem:[%s7680_s23 + $0x1e8] sm:$0xff]  }
0x1c35   : > { %v8121_v22 = vpop.f32.mrb[48].mxu1  ;;  %v8123_v23 = vpop.f32.mrb[48].mxu0  ;;  %5507 = vmatprep.mubr.bf16.mxu1 %v4686_v11  ;;  %5547 = vmatprep.mubr.bf16.mxu0 %v4688_v12 }
0x1c36   : > { %v4459_v10 = vpop.f32.mrb[49].mxu1  ;;  %v4500_v24 = vpop.f32.mrb[49].mxu0  ;;  %5508 = vmatmul.mubr.bf16.vlgmr.msra.gmra.mrb[60].mxu1 %v4685_v17  ;;  %5548 = vmatmul.mubr.bf16.vlgmr.msra.gmra.mrb[60].mxu0 %v4687_v18  ;;  %v7172_v18 = vld [vmem:[%s7680_s23 + $0x128] sm:$0xff]  }
0x1c37   : > { %v4460_v25 = vadd.f32 %v4459_v10, %v4121_v4  ;;  %v4501_v26 = vadd.f32 %v4500_v24, %v4129_v13  ;;  %6699 = vmatpush3.bf16.msra.mxu1 %v7152_v15  ;;  %6721 = vmatpush3.bf16.msra.mxu0 %v7153_v16  ;;  %v4461_v27 = vpop.f32.mrb[50].mxu1  ;;  %v4502_v29 = vpop.f32.mrb[50].mxu0 }
0x1c38   : > { %v4462_v33 = vpop.f32.mrb[51].mxu1  ;;  %v4503_v8 = vpop.f32.mrb[51].mxu0  ;;  %6700 = vmatprep.subr.bf16.mxu1 %v7154_v19  ;;  %6722 = vmatprep.subr.bf16.mxu0 %v7155_v20  ;;  %v7173_v19 = vld [vmem:[%s7680_s23 + $0x1a8] sm:$0xff]   ;;  %v4117_v20 = vrot.slane %v8096_v47, %v4116_v59  ;;  %v4137_v27 = vrot.slane %v8087_v44, %v4104_v48  ;;  %v4145_v29 = vrot.slane %v8087_v44, %v4112_v49  ;;  %v7179_v48 = vld [vmem:[%s7680_s23 + $0x1f8] sm:$0xff]   ;;  %v7192_v59 = vld [vmem:[%s7680_s23 + $0x210] sm:$0xff]  }
0x1c39   : > { %v4674_v62 = vmax.f32 %v4460_v25, 0.0  ;;  %v4676_v37 = vmax.f32 %v4501_v26, 0.0  ;;  %v7174_v25 = vld [vmem:[%s7680_s23 + $0x170] sm:$0xff]   ;;  %v7178_v33 = vld [vmem:[%s7680_s23 + $0x178] sm:$0xff]  }
0x1c3a   : > { %v7175_v26 = vld [vmem:[%s7680_s23 + $0x1f0] sm:$0xff]   ;;  %v7180_v49 = vld [vmem:[%s7680_s23 + $0x138] sm:$0xff]  }
0x1c3b   : > { %v4690_v39 = vpack.c.bf16 %v4674_v62, %v4674_v62  ;;  %v4692_v40 = vpack.c.bf16 %v4676_v37, %v4676_v37  ;;  %6701 = vmatpush3.bf16.msra.mxu1 %v7156_v30  ;;  %6723 = vmatpush3.bf16.msra.mxu0 %v7157_v32  ;;  %v4458_v30 = vadd.f32 %v8121_v22, %v4117_v20  ;;  %v7182_v22 = vld [vmem:[%s7680_s23 + $0x240] sm:$0xff]   ;;  %v7207_v20 = vld [vmem:[%s7680_s23 + $0x2f0] sm:$0xff]  }
0x1c3c   : > { %6702 = vmatprep.subr.bf16.mxu1 %v7158_v35  ;;  %6724 = vmatprep.subr.bf16.mxu0 %v7159_v36  ;;  %v7181_v36 = vld [vmem:[%s7680_s23 + $0x1b8] sm:$0xff]  }
0x1c3d   : > { %v8134_v50 = vpop.f32.mrb[52].mxu1  ;;  %v4580_v51 = vpop.f32.mrb[52].mxu0  ;;  %5587 = vmatprep.mubr.bf16.mxu1 %v4690_v39  ;;  %5627 = vmatprep.mubr.bf16.mxu0 %v4692_v40  ;;  %v4673_v62 = vmax.f32 %v4458_v30, 0.0  ;;  %v7184_v40 = vld [vmem:[%s7680_s23 + $0x200] sm:$0xff]  }
0x1c3e   : > { %v8136_v46 = vadd.f32 %v4580_v51, %v4141_v38  ;;  %v4541_v52 = vpop.f32.mrb[53].mxu1  ;;  %v4582_v53 = vpop.f32.mrb[53].mxu0  ;;  %v7186_v51 = vld [vmem:[%s7680_s23 + $0x248] sm:$0xff]  }
0x1c3f   : > { %6703 = vmatpush3.bf16.msra.mxu1 %v7160_v41  ;;  %6725 = vmatpush3.bf16.msra.mxu0 %v7161_v42  ;;  %v4543_v54 = vpop.f32.mrb[54].mxu1  ;;  %v4584_v55 = vpop.f32.mrb[54].mxu0  ;;  %v4542_v8 = vadd.f32 %v4541_v52, %v4137_v27  ;;  %v4583_v35 = vadd.f32 %v4582_v53, %v4145_v29  ;;  %v4689_v41 = vpack.c.bf16 %v4673_v62, %v4673_v62  ;;  %v7187_v52 = vld [vmem:[%s7680_s23 + $0x2c8] sm:$0xff]   ;;  %v7211_v27 = vld [vmem:[%s7680_s23 + $0x2f8] sm:$0xff]   ;;  %v7214_v29 = vld [vmem:[%s7680_s23 + $0x340] sm:$0xff]  }
0x1c40   : > { %v4544_v60 = vpop.f32.mrb[55].mxu1  ;;  %v4585_v61 = vpop.f32.mrb[55].mxu0  ;;  %6704 = vmatprep.subr.bf16.mxu1 %v7162_v43  ;;  %6726 = vmatprep.subr.bf16.mxu0 %v7163_v14  ;;  %v7185_v43 = vld [vmem:[%s7680_s23 + $0x280] sm:$0xff]   ;;  %v7188_v54 = vld [vmem:[%s7680_s23 + $0x208] sm:$0xff]  }
0x1c41   : > { %v4678_v38 = vmax.f32 %v4542_v8, 0.0  ;;  %v4680_v39 = vmax.f32 %v4583_v35, 0.0  ;;  %v7189_v55 = vld [vmem:[%s7680_s23 + $0x288] sm:$0xff]   ;;  %v7193_v60 = vld [vmem:[%s7680_s23 + $0x290] sm:$0xff]   ;;  %v7194_v61 = vld [vmem:[%s7680_s23 + $0x258] sm:$0xff]  }
0x1c42   : > { %v7218_v8 = vld [vmem:[%s7680_s23 + $0x348] sm:$0xff]  }
0x1c43   : > { %6705 = vmatpush3.bf16.msra.mxu1 %v7164_v56  ;;  %6727 = vmatpush3.bf16.msra.mxu0 %v7165_v57  ;;  %v4694_v14 = vpack.c.bf16 %v4678_v38, %v4678_v38  ;;  %v4696_v53 = vpack.c.bf16 %v4680_v39, %v4680_v39  ;;  %v7190_v56 = vld [vmem:[%s7680_s23 + $0x250] sm:$0xff]   ;;  %v7221_v62 = vld [vmem:[%s7680_s23 + $0x388] sm:$0xff]   ;;  %v7226_v39 = vld [vmem:[%s7680_s23 + $0x358] sm:$0xff]  }
0x1c44   : > { %6706 = vmatprep.subr.bf16.mxu1 %v7166_v58  ;;  %6728 = vmatprep.subr.bf16.mxu0 %v7167_v63  ;;  %v7191_v57 = vld [vmem:[%s7680_s23 + $0x2d0] sm:$0xff]   ;;  %v7195_v58 = vld [vmem:[%s7680_s23 + $0x2d8] sm:$0xff]  }
0x1c45   : > { %v4621_v9 = vpop.f32.mrb[56].mxu1  ;;  %v4662_v11 = vpop.f32.mrb[56].mxu0  ;;  %v7196_v63 = vld [vmem:[%s7680_s23 + $0x218] sm:$0xff]   ;;  %v7225_v38 = vld [vmem:[%s7680_s23 + $0x390] sm:$0xff]  }
0x1c46   : > { %v8148_v12 = vadd.f32 %v4621_v9, %v4149_v2  ;;  %v8151_v4 = vadd.f32 %v4662_v11, %v8092_v45  ;;  %v8153_v13 = vpop.f32.mrb[57].mxu1  ;;  %v8155_v15 = vpop.f32.mrb[57].mxu0  ;;  %v4125_v45 = vrot.slane %v8096_v47, %v4124_v21  ;;  %v7176_v21 = vld [vmem:[%s7680_s23 + $0x130] sm:$0xff]   ;;  %v7197_v2 = vld [vmem:[%s7680_s23 + $0x298] sm:$0xff]   ;;  %v7202_v9 = vld [vmem:[%s7680_s23 + $0x268] sm:$0xff]  }
0x1c47   : > { %6707 = vmatpush3.bf16.msra.mxu1 %v7168_v3  ;;  %6729 = vmatpush3.bf16.msra.mxu0 %v7169_v5  ;;  %v4625_v16 = vpop.f32.mrb[58].mxu1  ;;  %v4666_v17 = vpop.f32.mrb[58].mxu0  ;;  %v7177_v47 = vld [vmem:[%s7680_s23 + $0x1b0] sm:$0xff]   ;;  %v7198_v3 = vld [vmem:[%s7680_s23 + $0x260] sm:$0xff]   ;;  %v7203_v11 = vld [vmem:[%s7680_s23 + $0x2e8] sm:$0xff]  }
0x1c48   : > { %v4626_v10 = vpop.f32.mrb[59].mxu1  ;;  %v4667_v24 = vpop.f32.mrb[59].mxu0  ;;  %6708 = vmatprep.subr.bf16.mxu1 %v7170_v6  ;;  %6730 = vmatprep.subr.bf16.mxu0 %v7171_v7  ;;  %v4499_v32 = vadd.f32 %v8123_v23, %v4125_v45  ;;  %v7183_v23 = vld [vmem:[%s7680_s23 + $0x2c0] sm:$0xff]   ;;  %v7204_v16 = vld [vmem:[%s7680_s23 + $0x228] sm:$0xff]   ;;  %v4133_v17 = vrot.slane %v8087_v44, %v7845_v31  ;;  %v4153_v45 = vrot.slane %v8087_v44, %v4120_v0 }
0x1c49   : > { %v7199_v5 = vld [vmem:[%s7680_s23 + $0x2e0] sm:$0xff]   ;;  %v4161_v10 = vrot.slane %v8087_v44, %v4128_v1  ;;  %v7208_v24 = vld [vmem:[%s7680_s23 + $0x230] sm:$0xff]   ;;  %v7212_v44 = vld [vmem:[%s7680_s23 + $0x238] sm:$0xff]  }
0x1c4a   : > { %v4675_v37 = vmax.f32 %v4499_v32, 0.0  ;;  %v7200_v6 = vld [vmem:[%s7680_s23 + $0x220] sm:$0xff]   ;;  %v4540_v31 = vadd.f32 %v8134_v50, %v4133_v17  ;;  %v4624_v0 = vadd.f32 %v8153_v13, %v4153_v45  ;;  %v7213_v50 = vld [vmem:[%s7680_s23 + $0x2b8] sm:$0xff]  }
0x1c4b   : > { %6709 = vmatpush3.bf16.msra.mxu1 %v7172_v18  ;;  %6731 = vmatpush3.bf16.msra.mxu0 %v7173_v19  ;;  %v7201_v7 = vld [vmem:[%s7680_s23 + $0x2a0] sm:$0xff]   ;;  %v7205_v18 = vld [vmem:[%s7680_s23 + $0x2a8] sm:$0xff]   ;;  %v7206_v19 = vld [vmem:[%s7680_s23 + $0x270] sm:$0xff]   ;;  %v4665_v28 = vadd.f32 %v8155_v15, %v4161_v10 }
0x1c4c   : > { %6710 = vmatprep.subr.bf16.mxu1 %v7174_v25  ;;  %6732 = vmatprep.subr.bf16.mxu0 %v7175_v26  ;;  %v4691_v42 = vpack.c.bf16 %v4675_v37, %v4675_v37  ;;  %v7209_v25 = vld [vmem:[%s7680_s23 + $0x2b0] sm:$0xff]   ;;  %v7210_v26 = vld [vmem:[%s7680_s23 + $0x278] sm:$0xff]   ;;  %v4677_v1 = vmax.f32 %v4540_v31, 0.0  ;;  %v4682_v30 = vmax.f32 %v4624_v0, 0.0  ;;  %v7216_v13 = vld [vmem:[%s7680_s23 + $0x300] sm:$0xff]  }
0x1c4d   : > { %v4684_v32 = vmax.f32 %v4665_v28, 0.0  ;;  %v7222_v37 = vld [vmem:[%s7680_s23 + $0x350] sm:$0xff]   ;;  %v6440_v17 = vld [vmem:[%s1547_s14] ss:$0 sm:$0xff]  ;;  %s8434_s14 = sld [smem:[#allocation40_spill]] }
0x1c4e   : > { %v4693_v15 = vpack.c.bf16 %v4677_v1, %v4677_v1  ;;  %v4698_v35 = vpack.c.bf16 %v4682_v30, %v4682_v30 }
0x1c4f   : > { %6711 = vmatpush3.bf16.msra.mxu1 %v7176_v21  ;;  %6733 = vmatpush3.bf16.msra.mxu0 %v7177_v47  ;;  %v4679_v21 = vmax.f32 %v8136_v46, 0.0  ;;  %v7215_v47 = vld [vmem:[%s7680_s23 + $0x3c0] sm:$0xff]   ;;  %v7219_v46 = vld [vmem:[%s7680_s23 + $0x3c8] sm:$0xff]  }
0x1c50   : > { %6712 = vmatprep.subr.bf16.mxu1 %v7178_v33  ;;  %6734 = vmatprep.subr.bf16.mxu0 %v7179_v48  ;;  %v7217_v33 = vld [vmem:[%s7680_s23 + $0x380] sm:$0xff]  }
0x1c51   : > { %v4695_v48 = vpack.c.bf16 %v4679_v21, %v4679_v21 }
0x1c53   : > { %6713 = vmatpush3.bf16.msra.mxu1 %v7180_v49  ;;  %6735 = vmatpush3.bf16.msra.mxu0 %v7181_v36  ;;  %v4700_v49 = vpack.c.bf16 %v4684_v32, %v4684_v32  ;;  %v7220_v36 = vld [vmem:[%s7680_s23 + $0x308] sm:$0xff]   ;;  %p6571_p8 = scmp.ne.s32.totalorder %s8434_s14, 1 }
0x1c54   : > { %6742 = vmatprep.subr.bf16.mxu1 %v7182_v22  ;;  %6764 = vmatprep.subr.bf16.mxu0 %v7183_v23  ;;  %v7223_v22 = vld [vmem:[%s7680_s23 + $0x3d0] sm:$0xff]   ;;  %s8435_s27 = sld [smem:[#allocation37_spill]] (!%p6571_p8)  ;;  %s8437_s15 = sld [smem:[#allocation36_spill]] (!%p6571_p8)  ;;  %vm7383_vm8 = vmmov (!%p6571_p8), 0  }
0x1c55   : > { %v7224_v23 = vld [vmem:[%s7680_s23 + $0x310] sm:$0xff]  }
0x1c56   : > { %5588 = vmatmul.mubr.bf16.vlgmr.msra.gmra.mrb[64].mxu1 %v4689_v41  ;;  %5628 = vmatmul.mubr.bf16.vlgmr.msra.gmra.mrb[64].mxu0 %v4691_v42  ;;  %v7228_v41 = vld [vmem:[%s7680_s23 + $0x318] sm:$0xff]  }
0x1c57   : > { %6743 = vmatpush3.bf16.msra.mxu1 %v7184_v40  ;;  %5667 = vmatprep.mubr.bf16.mxu1 %v4694_v14  ;;  %v7227_v40 = vld [vmem:[%s7680_s23 + $0x3d8] sm:$0xff]   ;;  %v7231_v14 = vld [vmem:[%s7680_s23 + $0x3e0] sm:$0xff]  }
0x1c58   : > { %6765 = vmatpush3.bf16.msra.mxu0 %v7185_v43  ;;  %5707 = vmatprep.mubr.bf16.mxu0 %v4696_v53  ;;  %v7229_v42 = vld [vmem:[%s7680_s23 + $0x398] sm:$0xff]   ;;  %v7230_v43 = vld [vmem:[%s7680_s23 + $0x360] sm:$0xff]   ;;  %v7234_v53 = vld [vmem:[%s7680_s23 + $0x368] sm:$0xff]  }
0x1c59   : > { %6744 = vmatprep.subr.bf16.mxu1 %v7186_v51  ;;  %6766 = vmatprep.subr.bf16.mxu0 %v7187_v52  ;;  %v7232_v51 = vld [vmem:[%s7680_s23 + $0x320] sm:$0xff]  }
0x1c5a   : > { %v7233_v52 = vld [vmem:[%s7680_s23 + $0x3a0] sm:$0xff]  }
0x1c5b   : > { %6745 = vmatpush3.bf16.msra.mxu1 %v7188_v54  ;;  %v7235_v54 = vld [vmem:[%s7680_s23 + $0x3e8] sm:$0xff]  }
0x1c5c   : > { %6767 = vmatpush3.bf16.msra.mxu0 %v7189_v55  ;;  %6746 = vmatprep.subr.bf16.mxu1 %v7190_v56  ;;  %v7236_v55 = vld [vmem:[%s7680_s23 + $0x328] sm:$0xff]  }
0x1c5d   : > { %6768 = vmatprep.subr.bf16.mxu0 %v7191_v57  ;;  %v7237_v56 = vld [vmem:[%s7680_s23 + $0x3a8] sm:$0xff]   ;;  %v7238_v57 = vld [vmem:[%s7680_s23 + $0x370] sm:$0xff]  }
0x1c5f   : > { %6747 = vmatpush3.bf16.msra.mxu1 %v7192_v59  ;;  %v7239_v59 = vld [vmem:[%s7680_s23 + $0x3f0] sm:$0xff]  }
0x1c60   : > { %6769 = vmatpush3.bf16.msra.mxu0 %v7193_v60  ;;  %6748 = vmatprep.subr.bf16.mxu1 %v7194_v61  ;;  %v7240_v60 = vld [vmem:[%s7680_s23 + $0x330] sm:$0xff]  }
0x1c61   : > { %6770 = vmatprep.subr.bf16.mxu0 %v7195_v58  ;;  %v7241_v61 = vld [vmem:[%s7680_s23 + $0x3b0] sm:$0xff]   ;;  %v7242_v58 = vld [vmem:[%s7680_s23 + $0x378] sm:$0xff]  }
0x1c63   : > { %6749 = vmatpush3.bf16.msra.mxu1 %v7196_v63  ;;  %v7243_v63 = vld [vmem:[%s7680_s23 + $0x3f8] sm:$0xff]  }
0x1c64   : > { %6771 = vmatpush3.bf16.msra.mxu0 %v7197_v2  ;;  %6750 = vmatprep.subr.bf16.mxu1 %v7198_v3  ;;  %v7244_v2 = vld [vmem:[%s7680_s23 + $0x338] sm:$0xff]   ;;  %v4681_v3 = vmax.f32 %v8148_v12, 0.0 }
0x1c65   : > { %6772 = vmatprep.subr.bf16.mxu0 %v7199_v5  ;;  %v7245_v5 = vld [vmem:[%s7680_s23 + $0x3b8] sm:$0xff]   ;;  %s8438_s23 = sld [smem:[#allocation38_spill]] (!%p6571_p8) }
0x1c67   : > { %6751 = vmatpush3.bf16.msra.mxu1 %v7200_v6  ;;  %v4683_v6 = vmax.f32 %v8151_v4, 0.0 }
0x1c68   : > { %6773 = vmatpush3.bf16.msra.mxu0 %v7201_v7  ;;  %6752 = vmatprep.subr.bf16.mxu1 %v7202_v9  ;;  %v4697_v7 = vpack.c.bf16 %v4681_v3, %v4681_v3 }
0x1c69   : > { %6774 = vmatprep.subr.bf16.mxu0 %v7203_v11  ;;  %v4699_v9 = vpack.c.bf16 %v4683_v6, %v4683_v6  ;;  %v6569_v6 = vld [vmem:[%s1550_s19] ss:$0 sm:$0xff]  ;;  %s8436_s19 = sld [smem:[#allocation35_spill]] (!%p6571_p8) }
0x1c6b   : > { %6753 = vmatpush3.bf16.msra.mxu1 %v7204_v16 }
0x1c6c   : > { %6775 = vmatpush3.bf16.msra.mxu0 %v7205_v18  ;;  %6754 = vmatprep.subr.bf16.mxu1 %v7206_v19 }
0x1c6d   : > { %6776 = vmatprep.subr.bf16.mxu0 %v7207_v20 }
0x1c6f   : > { %6755 = vmatpush3.bf16.msra.mxu1 %v7208_v24 }
0x1c70   : > { %6777 = vmatpush3.bf16.msra.mxu0 %v7209_v25  ;;  %6756 = vmatprep.subr.bf16.mxu1 %v7210_v26 }
0x1c71   : > { %6778 = vmatprep.subr.bf16.mxu0 %v7211_v27 }
0x1c73   : > { %6757 = vmatpush3.bf16.msra.mxu1 %v7212_v44 }
0x1c74   : > { %6779 = vmatpush3.bf16.msra.mxu0 %v7213_v50  ;;  %6786 = vmatprep.subr.bf16.mxu1 %v7214_v29 }
0x1c75   : > { %6808 = vmatprep.subr.bf16.mxu0 %v7215_v47 }
0x1c76   : > { %5668 = vmatmul.mubr.bf16.vlgmr.msra.gmra.mrb[68].mxu1 %v4693_v15 }
0x1c77   : > { %5708 = vmatmul.mubr.bf16.vlgmr.msra.gmra.mrb[68].mxu0 %v4695_v48  ;;  %6787 = vmatpush3.bf16.msra.mxu1 %v7216_v13 }
0x1c78   : > { %5747 = vmatprep.mubr.bf16.mxu1 %v4698_v35  ;;  %6809 = vmatpush3.bf16.msra.mxu0 %v7217_v33 }
0x1c79   : > { %5787 = vmatprep.mubr.bf16.mxu0 %v4700_v49  ;;  %6788 = vmatprep.subr.bf16.mxu1 %v7218_v8 }
0x1c7a   : > { %6810 = vmatprep.subr.bf16.mxu0 %v7219_v46 }
0x1c7b   : > { %6789 = vmatpush3.bf16.msra.mxu1 %v7220_v36 }
0x1c7c   : > { %6811 = vmatpush3.bf16.msra.mxu0 %v7221_v62  ;;  %6790 = vmatprep.subr.bf16.mxu1 %v7222_v37 }
0x1c7d   : > { %6812 = vmatprep.subr.bf16.mxu0 %v7223_v22 }
0x1c7f   : > { %6791 = vmatpush3.bf16.msra.mxu1 %v7224_v23 }
0x1c80   : > { %6813 = vmatpush3.bf16.msra.mxu0 %v7225_v38  ;;  %6792 = vmatprep.subr.bf16.mxu1 %v7226_v39 }
0x1c81   : > { %6814 = vmatprep.subr.bf16.mxu0 %v7227_v40 }
0x1c83   : > { %6793 = vmatpush3.bf16.msra.mxu1 %v7228_v41 }
0x1c84   : > { %6815 = vmatpush3.bf16.msra.mxu0 %v7229_v42  ;;  %6794 = vmatprep.subr.bf16.mxu1 %v7230_v43 }
0x1c85   : > { %6816 = vmatprep.subr.bf16.mxu0 %v7231_v14 }
0x1c87   : > { %6795 = vmatpush3.bf16.msra.mxu1 %v7232_v51 }
0x1c88   : > { %6817 = vmatpush3.bf16.msra.mxu0 %v7233_v52  ;;  %6796 = vmatprep.subr.bf16.mxu1 %v7234_v53 }
0x1c89   : > { %6818 = vmatprep.subr.bf16.mxu0 %v7235_v54 }
0x1c8b   : > { %6797 = vmatpush3.bf16.msra.mxu1 %v7236_v55 }
0x1c8c   : > { %6819 = vmatpush3.bf16.msra.mxu0 %v7237_v56  ;;  %6798 = vmatprep.subr.bf16.mxu1 %v7238_v57 }
0x1c8d   : > { %6820 = vmatprep.subr.bf16.mxu0 %v7239_v59 }
0x1c8f   : > { %6799 = vmatpush3.bf16.msra.mxu1 %v7240_v60 }
0x1c90   : > { %6821 = vmatpush3.bf16.msra.mxu0 %v7241_v61  ;;  %6800 = vmatprep.subr.bf16.mxu1 %v7242_v58 }
0x1c91   : > { %6822 = vmatprep.subr.bf16.mxu0 %v7243_v63 }
0x1c93   : > { %6801 = vmatpush3.bf16.msra.mxu1 %v7244_v2 }
0x1c94   : > { %6823 = vmatpush3.bf16.msra.mxu0 %v7245_v5 }
0x1c96   : > { %5748 = vmatmul.mubr.bf16.vlgmr.msra.gmra.mrb[72].mxu1 %v4697_v7  ;;  %v6570_v7 = vld [vmem:[%s1553_s11] ss:$0 sm:$0xff] }
0x1c97   : > { %5788 = vmatmul.mubr.bf16.vlgmr.msra.gmra.mrb[72].mxu0 %v4699_v9 }
0x1d09   : > { %v6670_v11 = vpop.f32.mrb[60].mxu1  ;;  %v6692_v16 = vpop.f32.mrb[60].mxu0 }
0x1d0a   : > { %v6671_v18 = vpop.f32.mrb[61].mxu1  ;;  %v6693_v19 = vpop.f32.mrb[61].mxu0 }
0x1d0b   : > { %v6672_v20 = vadd.f32 %v6671_v18, %v6670_v11  ;;  %v6694_v12 = vadd.f32 %v6693_v19, %v6692_v16  ;;  %v6673_v45 = vpop.f32.mrb[62].mxu1  ;;  %v6695_v10 = vpop.f32.mrb[62].mxu0 }
0x1d0c   : > { %v6674_v24 = vpop.f32.mrb[63].mxu1  ;;  %v6696_v31 = vpop.f32.mrb[63].mxu0  ;;  %v7286_v45 = vld [vmem:[%s8435_s27] sm:$0xff] (!%p6571_p8)   ;;  %v7382_v10 = vmov (!%p6571_p8), 0.0  }
0x1d0d   : > { %v5510_v4 = vadd.f32 %v6672_v20, %v6440_v17  ;;  %7006 = vmatprep.subr.bf16.mxu0 (!%p6571_p8), %v7382_v10  ;;  %7010 = vmatprep.mubr.msk.bf16.mxu0 (!%p6571_p8), %vm7383_vm8, %v7382_v10  ;;  %v7287_v24 = vld [vmem:[%s8435_s27 + $0x8] sm:$0xff] (!%p6571_p8)  }
0x1d0e   : > { %7007 = vmatpush3.bf16.msra.mxu0 (!%p6571_p8), %v7286_v45 }
0x1d0f   : > { %v5550_v25 = vadd.f32 %v6694_v12, %v5510_v4  ;;  %7008 = vmatprep.subr.bf16.mxu0 (!%p6571_p8), %v7382_v10 }
0x1d12   : > { %7009 = vmatpush3.bf16.msra.mxu0 (!%p6571_p8), %v7287_v24 }
0x1d29   : > { %v6714_v26 = vpop.f32.mrb[64].mxu1  ;;  %v6736_v27 = vpop.f32.mrb[64].mxu0 }
0x1d2a   : > { %v6715_v0 = vpop.f32.mrb[65].mxu1  ;;  %v6737_v28 = vpop.f32.mrb[65].mxu0 }
0x1d2b   : > { %v6716_v44 = vadd.f32 %v6715_v0, %v6714_v26  ;;  %v6738_v1 = vadd.f32 %v6737_v28, %v6736_v27  ;;  %v6717_v50 = vpop.f32.mrb[66].mxu1  ;;  %v6739_v29 = vpop.f32.mrb[66].mxu0  ;;  %v6572_v27 = vld [vmem:[%s8436_s19] ss:$0 sm:$0xff] (!%p6571_p8) }
0x1d2c   : > { %v6718_v21 = vpop.f32.mrb[67].mxu1  ;;  %v6740_v47 = vpop.f32.mrb[67].mxu0  ;;  %v6573_v28 = vld [vmem:[%s8437_s15] ss:$0 sm:$0xff] (!%p6571_p8) }
0x1d2d   : > { %v5590_v30 = vadd.f32 %v6716_v44, %v5550_v25  ;;  %v6574_v29 = vld [vmem:[%s8438_s23] ss:$0 sm:$0xff] (!%p6571_p8) }
0x1d2f   : > { %v5630_v32 = vadd.f32 %v6738_v1, %v5590_v30 }
0x1d49   : > { %v6758_v13 = vpop.f32.mrb[68].mxu1 }
0x1d4a   : > { %v6780_v15 = vpop.f32.mrb[68].mxu0  ;;  %v6759_v33 = vpop.f32.mrb[69].mxu1 }
0x1d4b   : > { %v6760_v48 = vadd.f32 %v6759_v33, %v6758_v13  ;;  %v6781_v8 = vpop.f32.mrb[69].mxu0  ;;  %v6761_v35 = vpop.f32.mrb[70].mxu1 }
0x1d4c   : > { %v6782_v46 = vadd.f32 %v6781_v8, %v6780_v15  ;;  %v6783_v49 = vpop.f32.mrb[70].mxu0  ;;  %v6762_v36 = vpop.f32.mrb[71].mxu1 }
0x1d4d   : > { %v5670_v62 = vadd.f32 %v6760_v48, %v5630_v32  ;;  %v6784_v37 = vpop.f32.mrb[71].mxu0 }
0x1d4f   : > { %v5710_v22 = vadd.f32 %v6782_v46, %v5670_v62 }
0x1d69   : > { %v6802_v23 = vpop.f32.mrb[72].mxu1 }
0x1d6a   : > { %v6824_v38 = vpop.f32.mrb[72].mxu0  ;;  %v6803_v39 = vpop.f32.mrb[73].mxu1 }
0x1d6b   : > { %v6804_v40 = vadd.f32 %v6803_v39, %v6802_v23  ;;  %v6825_v41 = vpop.f32.mrb[73].mxu0  ;;  %v6805_v42 = vpop.f32.mrb[74].mxu1 }
0x1d6c   : > { %v6826_v43 = vadd.f32 %v6825_v41, %v6824_v38  ;;  %v6827_v14 = vpop.f32.mrb[74].mxu0  ;;  %v6806_v51 = vpop.f32.mrb[75].mxu1 }
0x1d6d   : > { %v5750_v52 = vadd.f32 %v6804_v40, %v5710_v22  ;;  %v6828_v53 = vpop.f32.mrb[75].mxu0 }
0x1d6f   : > { %v5790_v54 = vadd.f32 %v6826_v43, %v5750_v52 }
0x1d71   : > { %v5795_v55 = vadd.f32 %v5790_v54, %v8007_v34 }
0x1d73   : > { %v5798_v56 = vsel %vm1678_vm5, %v5795_v55, 0.0 }
0x1d74   : > { %5799 = vadd.xlane.f32.xlu1 %v5798_v56 }
0x1e01   : > { %v5800_v57 = vpop.xlane.xlu1 %5799 }
0x1e02   : > { %v5801_v59 = vmul.f32 0.03125, %v5800_v57 }
0x1e04   : > { %v5802_v60 = vsub.f32 %v5795_v55, %v5801_v59 }
0x1e06   : > { %v5803_v61 = vmul.f32 %v5802_v60, %v5802_v60 }
0x1e08   : > { %v5804_v58 = vsel %vm1678_vm5, %v5803_v61, 0.0 }
0x1e09   : > { %5805 = vadd.xlane.f32.xlu1 %v5804_v58 }
0x1e96   : > { %v5806_v63 = vpop.xlane.xlu1 %5805 }
0x1e97   : > { %v5807_v2 = vmul.f32 0.03125, %v5806_v63 }
0x1e99   : > { %v5808_v3 = vadd.f32 1e-05, %v5807_v2 }
0x1e9b   : > { %7284 = vrsqrt.f32 %v5808_v3 }
0x1ea5   : > { %v7285_v5 = vpop.eup %7284 }
0x1ea6   : > { %v5810_v34 = vmul.f32 %v7285_v5, %v5802_v60  ;;  %5829 = sbr.rel (%p6571_p8) target bundleno = 8382 (0x20be), region = 172 }
0x1ea8   : > { %v5817_v9 = vmul.f32 %v6569_v6, %v5810_v34 }
0x1eaa   : > { %v5824_v11 = vadd.f32 %v6570_v7, %v5817_v9 }
0x1eac   : > { %5825 = vst.msk [vmem:[#allocation2] sm:$0xff] %vm1678_vm5, %v5824_v11  ;;  %v5832_v16 = vsel (!%p6571_p8), %vm1678_vm5, %v5824_v11, 0.0 }
0x1ead   : > { %5833 = vadd.xlane.f32.xlu0 %v5832_v16 }
0x1f3a   : > { %v5834_v17 = vpop.xlane.xlu0 %5833 }
0x1f3b   : > { %v5835_v18 = vmul.f32 0.03125, %v5834_v17 }
0x1f3d   : > { %v5836_v19 = vsub.f32 %v5824_v11, %v5835_v18 }
0x1f3f   : > { %v5837_v20 = vmul.f32 %v5836_v19, %v5836_v19 }
0x1f41   : > { %v5838_v12 = vsel %vm1678_vm5, %v5837_v20, 0.0 }
0x1f42   : > { %5839 = vadd.xlane.f32.xlu0 %v5838_v12 }
0x1fcf   : > { %v5840_v31 = vpop.xlane.xlu0 %5839 }
0x1fd0   : > { %v5841_v4 = vmul.f32 0.03125, %v5840_v31 }
0x1fd2   : > { %v5842_v25 = vadd.f32 1e-05, %v5841_v4 }
0x1fd4   : > { %7288 = vrsqrt.f32 %v5842_v25 }
0x1fde   : > { %v7289_v26 = vpop.eup %7288 }
0x1fdf   : > { %v5844_v0 = vmul.f32 %v7289_v26, %v5836_v19 }
0x1fe1   : > { %v5851_v44 = vmul.f32 %v6572_v27, %v5844_v0 }
0x1fe3   : > { %v5858_v1 = vadd.f32 %v6573_v28, %v5851_v44 }
0x1fe5   : > { %v5859_v50 = vpack.c.bf16 %v5858_v1, %v5858_v1 }
0x1fe7   : > { %7011 = vmatmul.mubr.msk.bf16.vlgmr.msra.gmra.mrb[0].mxu0 %vm1678_vm5, %v5859_v50 }
0x20ba   : > { %v5920_v21 = vpop.f32.mrb[0].mxu0 }
0x20bb   : > { %v5921_v47 = vadd.f32 %v6574_v29, %v5920_v21  ;;  %v7012_v30 = vpop.f32.mrb[1].mxu0 }
0x20bc   : > { %v5923_v32 = vpop.f32.mrb[2].mxu0 }
0x20bd   : > { %5926 = vst [vmem:[%s1557_s24] sm:$0xff] %v5921_v47  ;;  %v7013_v13 = vpop.f32.mrb[3].mxu0 }
0x20be PF: > { %s8441_s0 = sld [smem:[#allocation43_spill]]  ;;  %s8442_s28 = sld [smem:[#allocation41_spill]] }
0x20bf   : > { %s8443_s1 = sld [smem:[#allocation42_spill]]  ;;  %s8444_s2 = sld [smem:[#allocation44_spill]] }
0x20c0   : > { %s8445_s7 = sld [smem:[#allocation45_spill]] }
0x20c4   : > { %s83_s10 = sadd.s32 1, %s8441_s0  }
0x20c5   : > { %p80_p9 = scmp.ge.s32.totalorder %s83_s10, 6  }
0x20c7   :  { %82 = sbr.rel (!%p80_p9) target bundleno = 86 (0x56), region = 322 }

</bundles_post_ra>
